<compile_context>
chip_gen: v5e
topology: v5e:2x2
jax: 0.10.0
libtpu: 0.0.40
codegen_flags: <defaults>
</compile_context>

<pallas_src>
import functools

import jax
import jax.numpy as jnp
from jax.experimental import pallas as pl
from jax.experimental.pallas import tpu as pltpu

KSIZE = 7
PAD = KSIZE // 2  # 3


def _round_up(v, m):
    return (v + m - 1) // m * m


def spatial_attention_kernel(w_ref, x_ref, o_ref, sum_sc, max_sc, pad_sum, pad_max,
                             *, n_channels):
    # w_ref   : SMEM (2*7*7,) f32 — flattened conv1.weight[0] in [in_ch, kh, kw] order
    # x_ref   : VMEM (1, ct, HW) — lane-dense channel tile of one batch element
    # o_ref   : VMEM (1, 1, H, W)
    # sum_sc  : VMEM (1, HW) f32 — running channel sum (flat, aligned at offset 0)
    # max_sc  : VMEM (1, HW) f32 — running channel max (flat, aligned at offset 0)
    # pad_sum : VMEM (HPA, WPA) f32 — zero-padded avg map, built once at finalize
    # pad_max : VMEM (HPA, WPA) f32 — zero-padded max map, built once at finalize
    k = pl.program_id(1)
    n_k = pl.num_programs(1)
    H, W = o_ref.shape[2], o_ref.shape[3]

    # --- fused, vectorized single pass over this channel tile: one load feeds both
    # --- the running sum (f32) and the running max.
    tile = x_ref[0]                                             # (ct, HW)
    s = jnp.sum(tile.astype(jnp.float32), axis=0, keepdims=True)   # (1, HW)
    m = jnp.max(tile, axis=0, keepdims=True).astype(jnp.float32)   # (1, HW)

    @pl.when(k == 0)
    def _init():
        sum_sc[...] = s
        max_sc[...] = m

    @pl.when(k > 0)
    def _accumulate():
        # Full-tile, origin-aligned RMW — plain vld/vadd/vmax/vst, no masking.
        sum_sc[...] = sum_sc[...] + s
        max_sc[...] = jnp.maximum(max_sc[...], m)

    # --- last channel tile: 7x7 conv over [avg, max] + sigmoid.
    @pl.when(k == n_k - 1)
    def _finalize():
        HPA, WPA = pad_sum.shape

        # Hoisted scalar weight reads (98 SMEM loads, once — not per conv term).
        w_avg = [[w_ref[kh * KSIZE + kw] for kw in range(KSIZE)]
                 for kh in range(KSIZE)]
        w_max = [[w_ref[KSIZE * KSIZE + kh * KSIZE + kw] for kw in range(KSIZE)]
                 for kh in range(KSIZE)]

        avg_flat = sum_sc[0, :] * (1.0 / n_channels)            # (HW,)
        max_flat = max_sc[0, :]                                 # (HW,)

        # One-time scatter of the flat reduced maps into zero-padded 2-D conv
        # inputs (border stays 0 == F.conv2d zero padding).  O(1) per batch.
        pad_sum[...] = jnp.zeros_like(pad_sum)
        pad_max[...] = jnp.zeros_like(pad_max)
        for i in range(H):
            pad_sum[PAD + i, PAD:PAD + W] = avg_flat[i * W:(i + 1) * W]
            pad_max[PAD + i, PAD:PAD + W] = max_flat[i * W:(i + 1) * W]

        avg_map = pad_sum[...]
        mx_map = pad_max[...]

        # Shifted operands via XLU rolls: shift (dim - k) % dim moves element
        # (i + k) to position i (jnp.roll semantics).  No wraparound reaches the
        # extracted [0:H, 0:W) interior because the padded map has a 3-wide halo.
        acc = jnp.zeros((HPA, WPA), jnp.float32)
        for kw in range(KSIZE):
            a_kw = pltpu.roll(avg_map, (WPA - kw) % WPA, axis=1) if kw else avg_map
            m_kw = pltpu.roll(mx_map, (WPA - kw) % WPA, axis=1) if kw else mx_map
            for kh in range(KSIZE):
                a_s = pltpu.roll(a_kw, (HPA - kh) % HPA, axis=0) if kh else a_kw
                m_s = pltpu.roll(m_kw, (HPA - kh) % HPA, axis=0) if kh else m_kw
                acc = acc + a_s * w_avg[kh][kw] + m_s * w_max[kh][kw]

        o_ref[0, 0] = jax.nn.sigmoid(acc[:H, :W]).astype(o_ref.dtype)


def _vmem_capacity_bytes():
    """Physical VMEM of the current generation (fallback: v7x-sized 64 MiB)."""
    try:
        info = pltpu.get_tpu_info()
        cap = getattr(info, "vmem_capacity_bytes", None)
        if cap:
            return int(cap)
    except Exception:
        pass
    return 64 << 20


def _pick_channel_tile(C, HW, itemsize, budget_bytes):
    """Largest channel tile (divisor of C, multiple of 8 or == C) whose real
    padded, double-buffered VMEM footprint fits the budget."""
    sub = max(8, 32 // itemsize)            # sublane packing: f32->8, bf16->16, i8->32
    lanes = _round_up(HW, 128)

    def cost(ct):
        blk = _round_up(ct, sub) * lanes * itemsize
        cast = _round_up(ct, sub) * lanes * 4 if itemsize < 4 else 0  # f32 cast copy
        return 2 * blk + cast

    valid = sorted((d for d in range(1, C + 1)
                    if C % d == 0 and (d == C or d % 8 == 0)), reverse=True)
    for ct in valid:
        if cost(ct) <= budget_bytes:
            return ct
    return valid[-1]


def spatial_attention(x, w):
    """x: (B, C, H, W); w: (1, 2, 7, 7) conv weight (OIHW, no bias)."""
    B, C, H, W = x.shape
    HW = H * W
    itemsize = jnp.dtype(x.dtype).itemsize
    sub = max(8, 32 // itemsize)

    HPA = _round_up(H + 2 * PAD, 8)
    WPA = _round_up(W + 2 * PAD, 128)
    lanes_hw = _round_up(HW, 128)

    # Fixed (ct-independent) VMEM footprint, computed from PADDED tile dims.
    o_block = _round_up(H, 8) * _round_up(W, 128) * itemsize       # (1,1,H,W) block
    flat_scr = 2 * 8 * lanes_hw * 4                                # sum/max (1,HW) f32
    pad_scr = 2 * HPA * WPA * 4                                    # padded conv inputs
    conv_work = 6 * HPA * WPA * 4                                  # rolls/acc temps
    fixed = 2 * o_block + flat_scr + pad_scr + conv_work + (2 << 20)

    # Generation-aware budget: use up to half of this chip's physical VMEM.
    cap = _vmem_capacity_bytes()
    scoped_cap = cap // 2
    budget_x = max(scoped_cap - fixed, 1 << 20)

    ct = _pick_channel_tile(C, HW, itemsize, budget_x)
    assert C % ct == 0
    num_k = C // ct
    x_block = _round_up(ct, sub) * lanes_hw * itemsize
    cast_bytes = _round_up(ct, sub) * lanes_hw * 4 if itemsize < 4 else 0

    # Deeper pipelining only when the channel tile is forced small and the
    # reduction axis is long (hides per-step DMA issue latency).
    n_buf = 3 if (x_block < (1 << 20) and num_k > 2) else 2
    x_spec_kwargs = {}
    if n_buf == 3:
        x_spec_kwargs["pipeline_mode"] = pl.Buffered(3)

    vmem_limit = int(max(4 << 20,
                         min(n_buf * x_block + cast_bytes + fixed,
                             int(cap * 0.9))))

    # Free metadata reshape of the contiguous NCHW array -> lane-dense channel slabs.
    x_flat = x.reshape(B, C, HW)
    w_flat = w[0].reshape(-1).astype(jnp.float32)  # (2*7*7,) in [in_ch, kh, kw] order

    kernel = functools.partial(spatial_attention_kernel, n_channels=C)

    return pl.pallas_call(
        kernel,
        out_shape=jax.ShapeDtypeStruct((B, 1, H, W), x.dtype),
        grid=(B, num_k),
        in_specs=[
            pl.BlockSpec(memory_space=pltpu.MemorySpace.SMEM),              # weights
            pl.BlockSpec((1, ct, HW), lambda b, k: (b, k, 0), **x_spec_kwargs),
        ],
        # NOTE: out block index is constant across k (innermost, "arbitrary") so the
        # output stays VMEM-resident across the channel reduction; it is written only
        # under pl.when(k == last).  Do not reorder the grid axes.
        out_specs=pl.BlockSpec((1, 1, H, W), lambda b, k: (b, 0, 0, 0)),
        scratch_shapes=[
            pltpu.VMEM((1, HW), jnp.float32),       # running channel sum (flat)
            pltpu.VMEM((1, HW), jnp.float32),       # running channel max (flat)
            pltpu.VMEM((HPA, WPA), jnp.float32),    # zero-padded avg map (finalize)
            pltpu.VMEM((HPA, WPA), jnp.float32),    # zero-padded max map (finalize)
        ],
        compiler_params=pltpu.CompilerParams(
            dimension_semantics=("parallel", "arbitrary"),
            vmem_limit_bytes=vmem_limit,
        ),
    )(w_flat, x_flat)


def reference(x, w):
    avg = jnp.mean(x, axis=1, keepdims=True)
    mx = jnp.max(x, axis=1, keepdims=True)
    cat = jnp.concatenate([avg, mx], axis=1)
    out = jax.lax.conv_general_dilated(
        cat, w, window_strides=(1, 1),
        padding=[(PAD, PAD), (PAD, PAD)],
        dimension_numbers=("NCHW", "OIHW", "NCHW"))
    return jax.nn.sigmoid(out)


if __name__ == "__main__":
    key = jax.random.PRNGKey(0)
    kx, kw_key = jax.random.split(key)

    B, C, H, W = 2, 4, 16, 16
    x = jax.random.normal(kx, (B, C, H, W), dtype=jnp.float32)

    # Deterministic conv1 weights: nn.Conv2d(2, 1, 7, bias=False) -> (1, 2, 7, 7),
    # kaiming-uniform-style bound 1/sqrt(fan_in), fan_in = 2*7*7.
    bound = 1.0 / jnp.sqrt(2.0 * KSIZE * KSIZE)
    w = jax.random.uniform(kw_key, (1, 2, KSIZE, KSIZE),
                           minval=-bound, maxval=bound, dtype=jnp.float32)

    out = spatial_attention(x, w)
    out = jax.block_until_ready(out)

    ref = reference(x, w)
    assert out.shape == (B, 1, H, W)
    assert jnp.allclose(out, ref, atol=1e-5, rtol=1e-5), "mismatch vs reference"

    print("KERNEL_OK")
</pallas_src>

<mosaic_0001>
module attributes {stable_mosaic.version = 11 : i64} {
  func.func @spatial_attention_kernel(%arg0: i32, %arg1: i32, %arg2: memref<98xf32, #tpu.memory_space<smem>>, %arg3: memref<1x4x256xf32, #tpu.memory_space<vmem>>, %arg4: memref<1x1x16x16xf32, #tpu.memory_space<vmem>>, %arg5: memref<1x256xf32, #tpu.memory_space<vmem>>, %arg6: memref<1x256xf32, #tpu.memory_space<vmem>>, %arg7: memref<24x128xf32, #tpu.memory_space<vmem>>, %arg8: memref<24x128xf32, #tpu.memory_space<vmem>>) attributes {dimension_semantics = [#tpu.dimension_semantics<parallel>, #tpu.dimension_semantics<arbitrary>], iteration_bounds = array<i64: 2, 1>, scalar_prefetch = 0 : i64, scratch_operands = 4 : i64, tpu.core_type = #tpu.core_type<tc>, window_params = [{transform_indices = @transform_0, window_bounds = array<i64: 98>}, {transform_indices = @transform_1, window_bounds = array<i64: 1, 4, 256>}, {transform_indices = @transform_2, window_bounds = array<i64: 1, 1, 16, 16>}]} {
    %c0 = arith.constant 0 : index
    %c0_0 = arith.constant 0 : index
    %c0_1 = arith.constant 0 : index
    %0 = vector.load %arg3[%c0, %c0_0, %c0_1] : memref<1x4x256xf32, #tpu.memory_space<vmem>>, vector<1x4x256xf32>
    %1 = vector.shape_cast %0 : vector<1x4x256xf32> to vector<4x256xf32>
    %cst = arith.constant dense<0.000000e+00> : vector<256xf32>
    %2 = vector.multi_reduction <add>, %1, %cst [0] : vector<4x256xf32> to vector<256xf32>
    %3 = vector.shape_cast %2 : vector<256xf32> to vector<1x256xf32>
    %cst_2 = arith.constant dense<0xFF800000> : vector<256xf32>
    %4 = vector.multi_reduction <maximumf>, %1, %cst_2 [0] : vector<4x256xf32> to vector<256xf32>
    %5 = vector.shape_cast %4 : vector<256xf32> to vector<1x256xf32>
    %c0_i32 = arith.constant 0 : i32
    %6 = arith.cmpi eq, %arg1, %c0_i32 : i32
    %7 = arith.extui %6 : i1 to i32
    %c0_i32_3 = arith.constant 0 : i32
    %8 = arith.cmpi ne, %7, %c0_i32_3 : i32
    scf.if %8 {
      %c0_8 = arith.constant 0 : index
      %c0_9 = arith.constant 0 : index
      %15 = vector.load %arg5[%c0_8, %c0_9] : memref<1x256xf32, #tpu.memory_space<vmem>>, vector<1x256xf32>
      tpu.vector_store %arg5[%c0_8, %c0_9], %3 {strides = array<i32>} : memref<1x256xf32, #tpu.memory_space<vmem>>, vector<1x256xf32>,
      %c0_10 = arith.constant 0 : index
      %c0_11 = arith.constant 0 : index
      %16 = vector.load %arg6[%c0_10, %c0_11] : memref<1x256xf32, #tpu.memory_space<vmem>>, vector<1x256xf32>
      tpu.vector_store %arg6[%c0_10, %c0_11], %5 {strides = array<i32>} : memref<1x256xf32, #tpu.memory_space<vmem>>, vector<1x256xf32>,
    } else {
    }
    %c0_i32_4 = arith.constant 0 : i32
    %9 = arith.cmpi sgt, %arg1, %c0_i32_4 : i32
    %10 = arith.extui %9 : i1 to i32
    %c0_i32_5 = arith.constant 0 : i32
    %11 = arith.cmpi ne, %10, %c0_i32_5 : i32
    scf.if %11 {
      %c0_8 = arith.constant 0 : index
      %c0_9 = arith.constant 0 : index
      %15 = vector.load %arg5[%c0_8, %c0_9] : memref<1x256xf32, #tpu.memory_space<vmem>>, vector<1x256xf32>
      %16 = arith.addf %15, %3 : vector<1x256xf32>
      %c0_10 = arith.constant 0 : index
      %c0_11 = arith.constant 0 : index
      %17 = vector.load %arg5[%c0_10, %c0_11] : memref<1x256xf32, #tpu.memory_space<vmem>>, vector<1x256xf32>
      tpu.vector_store %arg5[%c0_10, %c0_11], %16 {strides = array<i32>} : memref<1x256xf32, #tpu.memory_space<vmem>>, vector<1x256xf32>,
      %c0_12 = arith.constant 0 : index
      %c0_13 = arith.constant 0 : index
      %18 = vector.load %arg6[%c0_12, %c0_13] : memref<1x256xf32, #tpu.memory_space<vmem>>, vector<1x256xf32>
      %19 = arith.maximumf %18, %5 : vector<1x256xf32>
      %c0_14 = arith.constant 0 : index
      %c0_15 = arith.constant 0 : index
      %20 = vector.load %arg6[%c0_14, %c0_15] : memref<1x256xf32, #tpu.memory_space<vmem>>, vector<1x256xf32>
      tpu.vector_store %arg6[%c0_14, %c0_15], %19 {strides = array<i32>} : memref<1x256xf32, #tpu.memory_space<vmem>>, vector<1x256xf32>,
    } else {
    }
    %c0_i32_6 = arith.constant 0 : i32
    %12 = arith.cmpi eq, %arg1, %c0_i32_6 : i32
    %13 = arith.extui %12 : i1 to i32
    %c0_i32_7 = arith.constant 0 : i32
    %14 = arith.cmpi ne, %13, %c0_i32_7 : i32
    scf.if %14 {
      %c0_8 = arith.constant 0 : index
      %15 = memref.load %arg2[%c0_8] : memref<98xf32, #tpu.memory_space<smem>>
      %c1 = arith.constant 1 : index
      %16 = memref.load %arg2[%c1] : memref<98xf32, #tpu.memory_space<smem>>
      %c2 = arith.constant 2 : index
      %17 = memref.load %arg2[%c2] : memref<98xf32, #tpu.memory_space<smem>>
      %c3 = arith.constant 3 : index
      %18 = memref.load %arg2[%c3] : memref<98xf32, #tpu.memory_space<smem>>
      %c4 = arith.constant 4 : index
      %19 = memref.load %arg2[%c4] : memref<98xf32, #tpu.memory_space<smem>>
      %c5 = arith.constant 5 : index
      %20 = memref.load %arg2[%c5] : memref<98xf32, #tpu.memory_space<smem>>
      %c6 = arith.constant 6 : index
      %21 = memref.load %arg2[%c6] : memref<98xf32, #tpu.memory_space<smem>>
      %c7 = arith.constant 7 : index
      %22 = memref.load %arg2[%c7] : memref<98xf32, #tpu.memory_space<smem>>
      %c8 = arith.constant 8 : index
      %23 = memref.load %arg2[%c8] : memref<98xf32, #tpu.memory_space<smem>>
      %c9 = arith.constant 9 : index
      %24 = memref.load %arg2[%c9] : memref<98xf32, #tpu.memory_space<smem>>
      %c10 = arith.constant 10 : index
      %25 = memref.load %arg2[%c10] : memref<98xf32, #tpu.memory_space<smem>>
      %c11 = arith.constant 11 : index
      %26 = memref.load %arg2[%c11] : memref<98xf32, #tpu.memory_space<smem>>
      %c12 = arith.constant 12 : index
      %27 = memref.load %arg2[%c12] : memref<98xf32, #tpu.memory_space<smem>>
      %c13 = arith.constant 13 : index
      %28 = memref.load %arg2[%c13] : memref<98xf32, #tpu.memory_space<smem>>
      %c14 = arith.constant 14 : index
      %29 = memref.load %arg2[%c14] : memref<98xf32, #tpu.memory_space<smem>>
      %c15 = arith.constant 15 : index
      %30 = memref.load %arg2[%c15] : memref<98xf32, #tpu.memory_space<smem>>
      %c16 = arith.constant 16 : index
      %31 = memref.load %arg2[%c16] : memref<98xf32, #tpu.memory_space<smem>>
      %c17 = arith.constant 17 : index
      %32 = memref.load %arg2[%c17] : memref<98xf32, #tpu.memory_space<smem>>
      %c18 = arith.constant 18 : index
      %33 = memref.load %arg2[%c18] : memref<98xf32, #tpu.memory_space<smem>>
      %c19 = arith.constant 19 : index
      %34 = memref.load %arg2[%c19] : memref<98xf32, #tpu.memory_space<smem>>
      %c20 = arith.constant 20 : index
      %35 = memref.load %arg2[%c20] : memref<98xf32, #tpu.memory_space<smem>>
      %c21 = arith.constant 21 : index
      %36 = memref.load %arg2[%c21] : memref<98xf32, #tpu.memory_space<smem>>
      %c22 = arith.constant 22 : index
      %37 = memref.load %arg2[%c22] : memref<98xf32, #tpu.memory_space<smem>>
      %c23 = arith.constant 23 : index
      %38 = memref.load %arg2[%c23] : memref<98xf32, #tpu.memory_space<smem>>
      %c24 = arith.constant 24 : index
      %39 = memref.load %arg2[%c24] : memref<98xf32, #tpu.memory_space<smem>>
      %c25 = arith.constant 25 : index
      %40 = memref.load %arg2[%c25] : memref<98xf32, #tpu.memory_space<smem>>
      %c26 = arith.constant 26 : index
      %41 = memref.load %arg2[%c26] : memref<98xf32, #tpu.memory_space<smem>>
      %c27 = arith.constant 27 : index
      %42 = memref.load %arg2[%c27] : memref<98xf32, #tpu.memory_space<smem>>
      %c28 = arith.constant 28 : index
      %43 = memref.load %arg2[%c28] : memref<98xf32, #tpu.memory_space<smem>>
      %c29 = arith.constant 29 : index
      %44 = memref.load %arg2[%c29] : memref<98xf32, #tpu.memory_space<smem>>
      %c30 = arith.constant 30 : index
      %45 = memref.load %arg2[%c30] : memref<98xf32, #tpu.memory_space<smem>>
      %c31 = arith.constant 31 : index
      %46 = memref.load %arg2[%c31] : memref<98xf32, #tpu.memory_space<smem>>
      %c32 = arith.constant 32 : index
      %47 = memref.load %arg2[%c32] : memref<98xf32, #tpu.memory_space<smem>>
      %c33 = arith.constant 33 : index
      %48 = memref.load %arg2[%c33] : memref<98xf32, #tpu.memory_space<smem>>
      %c34 = arith.constant 34 : index
      %49 = memref.load %arg2[%c34] : memref<98xf32, #tpu.memory_space<smem>>
      %c35 = arith.constant 35 : index
      %50 = memref.load %arg2[%c35] : memref<98xf32, #tpu.memory_space<smem>>
      %c36 = arith.constant 36 : index
      %51 = memref.load %arg2[%c36] : memref<98xf32, #tpu.memory_space<smem>>
      %c37 = arith.constant 37 : index
      %52 = memref.load %arg2[%c37] : memref<98xf32, #tpu.memory_space<smem>>
      %c38 = arith.constant 38 : index
      %53 = memref.load %arg2[%c38] : memref<98xf32, #tpu.memory_space<smem>>
      %c39 = arith.constant 39 : index
      %54 = memref.load %arg2[%c39] : memref<98xf32, #tpu.memory_space<smem>>
      %c40 = arith.constant 40 : index
      %55 = memref.load %arg2[%c40] : memref<98xf32, #tpu.memory_space<smem>>
      %c41 = arith.constant 41 : index
      %56 = memref.load %arg2[%c41] : memref<98xf32, #tpu.memory_space<smem>>
      %c42 = arith.constant 42 : index
      %57 = memref.load %arg2[%c42] : memref<98xf32, #tpu.memory_space<smem>>
      %c43 = arith.constant 43 : index
      %58 = memref.load %arg2[%c43] : memref<98xf32, #tpu.memory_space<smem>>
      %c44 = arith.constant 44 : index
      %59 = memref.load %arg2[%c44] : memref<98xf32, #tpu.memory_space<smem>>
      %c45 = arith.constant 45 : index
      %60 = memref.load %arg2[%c45] : memref<98xf32, #tpu.memory_space<smem>>
      %c46 = arith.constant 46 : index
      %61 = memref.load %arg2[%c46] : memref<98xf32, #tpu.memory_space<smem>>
      %c47 = arith.constant 47 : index
      %62 = memref.load %arg2[%c47] : memref<98xf32, #tpu.memory_space<smem>>
      %c48 = arith.constant 48 : index
      %63 = memref.load %arg2[%c48] : memref<98xf32, #tpu.memory_space<smem>>
      %c49 = arith.constant 49 : index
      %64 = memref.load %arg2[%c49] : memref<98xf32, #tpu.memory_space<smem>>
      %c50 = arith.constant 50 : index
      %65 = memref.load %arg2[%c50] : memref<98xf32, #tpu.memory_space<smem>>
      %c51 = arith.constant 51 : index
      %66 = memref.load %arg2[%c51] : memref<98xf32, #tpu.memory_space<smem>>
      %c52 = arith.constant 52 : index
      %67 = memref.load %arg2[%c52] : memref<98xf32, #tpu.memory_space<smem>>
      %c53 = arith.constant 53 : index
      %68 = memref.load %arg2[%c53] : memref<98xf32, #tpu.memory_space<smem>>
      %c54 = arith.constant 54 : index
      %69 = memref.load %arg2[%c54] : memref<98xf32, #tpu.memory_space<smem>>
      %c55 = arith.constant 55 : index
      %70 = memref.load %arg2[%c55] : memref<98xf32, #tpu.memory_space<smem>>
      %c56 = arith.constant 56 : index
      %71 = memref.load %arg2[%c56] : memref<98xf32, #tpu.memory_space<smem>>
      %c57 = arith.constant 57 : index
      %72 = memref.load %arg2[%c57] : memref<98xf32, #tpu.memory_space<smem>>
      %c58 = arith.constant 58 : index
      %73 = memref.load %arg2[%c58] : memref<98xf32, #tpu.memory_space<smem>>
      %c59 = arith.constant 59 : index
      %74 = memref.load %arg2[%c59] : memref<98xf32, #tpu.memory_space<smem>>
      %c60 = arith.constant 60 : index
      %75 = memref.load %arg2[%c60] : memref<98xf32, #tpu.memory_space<smem>>
      %c61 = arith.constant 61 : index
      %76 = memref.load %arg2[%c61] : memref<98xf32, #tpu.memory_space<smem>>
      %c62 = arith.constant 62 : index
      %77 = memref.load %arg2[%c62] : memref<98xf32, #tpu.memory_space<smem>>
      %c63 = arith.constant 63 : index
      %78 = memref.load %arg2[%c63] : memref<98xf32, #tpu.memory_space<smem>>
      %c64 = arith.constant 64 : index
      %79 = memref.load %arg2[%c64] : memref<98xf32, #tpu.memory_space<smem>>
      %c65 = arith.constant 65 : index
      %80 = memref.load %arg2[%c65] : memref<98xf32, #tpu.memory_space<smem>>
      %c66 = arith.constant 66 : index
      %81 = memref.load %arg2[%c66] : memref<98xf32, #tpu.memory_space<smem>>
      %c67 = arith.constant 67 : index
      %82 = memref.load %arg2[%c67] : memref<98xf32, #tpu.memory_space<smem>>
      %c68 = arith.constant 68 : index
      %83 = memref.load %arg2[%c68] : memref<98xf32, #tpu.memory_space<smem>>
      %c69 = arith.constant 69 : index
      %84 = memref.load %arg2[%c69] : memref<98xf32, #tpu.memory_space<smem>>
      %c70 = arith.constant 70 : index
      %85 = memref.load %arg2[%c70] : memref<98xf32, #tpu.memory_space<smem>>
      %c71 = arith.constant 71 : index
      %86 = memref.load %arg2[%c71] : memref<98xf32, #tpu.memory_space<smem>>
      %c72 = arith.constant 72 : index
      %87 = memref.load %arg2[%c72] : memref<98xf32, #tpu.memory_space<smem>>
      %c73 = arith.constant 73 : index
      %88 = memref.load %arg2[%c73] : memref<98xf32, #tpu.memory_space<smem>>
      %c74 = arith.constant 74 : index
      %89 = memref.load %arg2[%c74] : memref<98xf32, #tpu.memory_space<smem>>
      %c75 = arith.constant 75 : index
      %90 = memref.load %arg2[%c75] : memref<98xf32, #tpu.memory_space<smem>>
      %c76 = arith.constant 76 : index
      %91 = memref.load %arg2[%c76] : memref<98xf32, #tpu.memory_space<smem>>
      %c77 = arith.constant 77 : index
      %92 = memref.load %arg2[%c77] : memref<98xf32, #tpu.memory_space<smem>>
      %c78 = arith.constant 78 : index
      %93 = memref.load %arg2[%c78] : memref<98xf32, #tpu.memory_space<smem>>
      %c79 = arith.constant 79 : index
      %94 = memref.load %arg2[%c79] : memref<98xf32, #tpu.memory_space<smem>>
      %c80 = arith.constant 80 : index
      %95 = memref.load %arg2[%c80] : memref<98xf32, #tpu.memory_space<smem>>
      %c81 = arith.constant 81 : index
      %96 = memref.load %arg2[%c81] : memref<98xf32, #tpu.memory_space<smem>>
      %c82 = arith.constant 82 : index
      %97 = memref.load %arg2[%c82] : memref<98xf32, #tpu.memory_space<smem>>
      %c83 = arith.constant 83 : index
      %98 = memref.load %arg2[%c83] : memref<98xf32, #tpu.memory_space<smem>>
      %c84 = arith.constant 84 : index
      %99 = memref.load %arg2[%c84] : memref<98xf32, #tpu.memory_space<smem>>
      %c85 = arith.constant 85 : index
      %100 = memref.load %arg2[%c85] : memref<98xf32, #tpu.memory_space<smem>>
      %c86 = arith.constant 86 : index
      %101 = memref.load %arg2[%c86] : memref<98xf32, #tpu.memory_space<smem>>
      %c87 = arith.constant 87 : index
      %102 = memref.load %arg2[%c87] : memref<98xf32, #tpu.memory_space<smem>>
      %c88 = arith.constant 88 : index
      %103 = memref.load %arg2[%c88] : memref<98xf32, #tpu.memory_space<smem>>
      %c89 = arith.constant 89 : index
      %104 = memref.load %arg2[%c89] : memref<98xf32, #tpu.memory_space<smem>>
      %c90 = arith.constant 90 : index
      %105 = memref.load %arg2[%c90] : memref<98xf32, #tpu.memory_space<smem>>
      %c91 = arith.constant 91 : index
      %106 = memref.load %arg2[%c91] : memref<98xf32, #tpu.memory_space<smem>>
      %c92 = arith.constant 92 : index
      %107 = memref.load %arg2[%c92] : memref<98xf32, #tpu.memory_space<smem>>
      %c93 = arith.constant 93 : index
      %108 = memref.load %arg2[%c93] : memref<98xf32, #tpu.memory_space<smem>>
      %c94 = arith.constant 94 : index
      %109 = memref.load %arg2[%c94] : memref<98xf32, #tpu.memory_space<smem>>
      %c95 = arith.constant 95 : index
      %110 = memref.load %arg2[%c95] : memref<98xf32, #tpu.memory_space<smem>>
      %c96 = arith.constant 96 : index
      %111 = memref.load %arg2[%c96] : memref<98xf32, #tpu.memory_space<smem>>
      %c97 = arith.constant 97 : index
      %112 = memref.load %arg2[%c97] : memref<98xf32, #tpu.memory_space<smem>>
      %c0_9 = arith.constant 0 : index
      %c0_10 = arith.constant 0 : index
      %113 = vector.load %arg5[%c0_9, %c0_10] : memref<1x256xf32, #tpu.memory_space<vmem>>, vector<1x256xf32>
      %114 = vector.shape_cast %113 : vector<1x256xf32> to vector<256xf32>
      %cst_11 = arith.constant 2.500000e-01 : f32
      %115 = vector.broadcast %cst_11 : f32 to vector<256xf32>
      %116 = arith.mulf %114, %115 : vector<256xf32>
      %c0_12 = arith.constant 0 : index
      %c0_13 = arith.constant 0 : index
      %117 = vector.load %arg6[%c0_12, %c0_13] : memref<1x256xf32, #tpu.memory_space<vmem>>, vector<1x256xf32>
      %118 = vector.shape_cast %117 : vector<1x256xf32> to vector<256xf32>
      %cst_14 = arith.constant 0.000000e+00 : f32
      %119 = vector.broadcast %cst_14 : f32 to vector<24x128xf32>
      %c0_15 = arith.constant 0 : index
      %c0_16 = arith.constant 0 : index
      %120 = vector.load %arg7[%c0_15, %c0_16] : memref<24x128xf32, #tpu.memory_space<vmem>>, vector<24x128xf32>
      tpu.vector_store %arg7[%c0_15, %c0_16], %119 {strides = array<i32>} : memref<24x128xf32, #tpu.memory_space<vmem>>, vector<24x128xf32>,
      %cst_17 = arith.constant 0.000000e+00 : f32
      %121 = vector.broadcast %cst_17 : f32 to vector<24x128xf32>
      %c0_18 = arith.constant 0 : index
      %c0_19 = arith.constant 0 : index
      %122 = vector.load %arg8[%c0_18, %c0_19] : memref<24x128xf32, #tpu.memory_space<vmem>>, vector<24x128xf32>
      tpu.vector_store %arg8[%c0_18, %c0_19], %121 {strides = array<i32>} : memref<24x128xf32, #tpu.memory_space<vmem>>, vector<24x128xf32>,
      %123 = vector.extract_strided_slice %116 {offsets = [0], sizes = [16], strides = [1]} : vector<256xf32> to vector<16xf32>
      %c3_20 = arith.constant 3 : index
      %c3_21 = arith.constant 3 : index
      %124 = vector.load %arg7[%c3_20, %c3_21] : memref<24x128xf32, #tpu.memory_space<vmem>>, vector<1x16xf32>
      %125 = vector.shape_cast %124 : vector<1x16xf32> to vector<16xf32>
      %126 = vector.shape_cast %123 : vector<16xf32> to vector<1x16xf32>
      tpu.vector_store %arg7[%c3_20, %c3_21], %126 {strides = array<i32>} : memref<24x128xf32, #tpu.memory_space<vmem>>, vector<1x16xf32>,
      %127 = vector.extract_strided_slice %118 {offsets = [0], sizes = [16], strides = [1]} : vector<256xf32> to vector<16xf32>
      %c3_22 = arith.constant 3 : index
      %c3_23 = arith.constant 3 : index
      %128 = vector.load %arg8[%c3_22, %c3_23] : memref<24x128xf32, #tpu.memory_space<vmem>>, vector<1x16xf32>
      %129 = vector.shape_cast %128 : vector<1x16xf32> to vector<16xf32>
      %130 = vector.shape_cast %127 : vector<16xf32> to vector<1x16xf32>
      tpu.vector_store %arg8[%c3_22, %c3_23], %130 {strides = array<i32>} : memref<24x128xf32, #tpu.memory_space<vmem>>, vector<1x16xf32>,
      %131 = vector.extract_strided_slice %116 {offsets = [16], sizes = [16], strides = [1]} : vector<256xf32> to vector<16xf32>
      %c4_24 = arith.constant 4 : index
      %c3_25 = arith.constant 3 : index
      %132 = vector.load %arg7[%c4_24, %c3_25] : memref<24x128xf32, #tpu.memory_space<vmem>>, vector<1x16xf32>
      %133 = vector.shape_cast %132 : vector<1x16xf32> to vector<16xf32>
      %134 = vector.shape_cast %131 : vector<16xf32> to vector<1x16xf32>
      tpu.vector_store %arg7[%c4_24, %c3_25], %134 {strides = array<i32>} : memref<24x128xf32, #tpu.memory_space<vmem>>, vector<1x16xf32>,
      %135 = vector.extract_strided_slice %118 {offsets = [16], sizes = [16], strides = [1]} : vector<256xf32> to vector<16xf32>
      %c4_26 = arith.constant 4 : index
      %c3_27 = arith.constant 3 : index
      %136 = vector.load %arg8[%c4_26, %c3_27] : memref<24x128xf32, #tpu.memory_space<vmem>>, vector<1x16xf32>
      %137 = vector.shape_cast %136 : vector<1x16xf32> to vector<16xf32>
      %138 = vector.shape_cast %135 : vector<16xf32> to vector<1x16xf32>
      tpu.vector_store %arg8[%c4_26, %c3_27], %138 {strides = array<i32>} : memref<24x128xf32, #tpu.memory_space<vmem>>, vector<1x16xf32>,
      %139 = vector.extract_strided_slice %116 {offsets = [32], sizes = [16], strides = [1]} : vector<256xf32> to vector<16xf32>
      %c5_28 = arith.constant 5 : index
      %c3_29 = arith.constant 3 : index
      %140 = vector.load %arg7[%c5_28, %c3_29] : memref<24x128xf32, #tpu.memory_space<vmem>>, vector<1x16xf32>
      %141 = vector.shape_cast %140 : vector<1x16xf32> to vector<16xf32>
      %142 = vector.shape_cast %139 : vector<16xf32> to vector<1x16xf32>
      tpu.vector_store %arg7[%c5_28, %c3_29], %142 {strides = array<i32>} : memref<24x128xf32, #tpu.memory_space<vmem>>, vector<1x16xf32>,
      %143 = vector.extract_strided_slice %118 {offsets = [32], sizes = [16], strides = [1]} : vector<256xf32> to vector<16xf32>
      %c5_30 = arith.constant 5 : index
      %c3_31 = arith.constant 3 : index
      %144 = vector.load %arg8[%c5_30, %c3_31] : memref<24x128xf32, #tpu.memory_space<vmem>>, vector<1x16xf32>
      %145 = vector.shape_cast %144 : vector<1x16xf32> to vector<16xf32>
      %146 = vector.shape_cast %143 : vector<16xf32> to vector<1x16xf32>
      tpu.vector_store %arg8[%c5_30, %c3_31], %146 {strides = array<i32>} : memref<24x128xf32, #tpu.memory_space<vmem>>, vector<1x16xf32>,
      %147 = vector.extract_strided_slice %116 {offsets = [48], sizes = [16], strides = [1]} : vector<256xf32> to vector<16xf32>
      %c6_32 = arith.constant 6 : index
      %c3_33 = arith.constant 3 : index
      %148 = vector.load %arg7[%c6_32, %c3_33] : memref<24x128xf32, #tpu.memory_space<vmem>>, vector<1x16xf32>
      %149 = vector.shape_cast %148 : vector<1x16xf32> to vector<16xf32>
      %150 = vector.shape_cast %147 : vector<16xf32> to vector<1x16xf32>
      tpu.vector_store %arg7[%c6_32, %c3_33], %150 {strides = array<i32>} : memref<24x128xf32, #tpu.memory_space<vmem>>, vector<1x16xf32>,
      %151 = vector.extract_strided_slice %118 {offsets = [48], sizes = [16], strides = [1]} : vector<256xf32> to vector<16xf32>
      %c6_34 = arith.constant 6 : index
      %c3_35 = arith.constant 3 : index
      %152 = vector.load %arg8[%c6_34, %c3_35] : memref<24x128xf32, #tpu.memory_space<vmem>>, vector<1x16xf32>
      %153 = vector.shape_cast %152 : vector<1x16xf32> to vector<16xf32>
      %154 = vector.shape_cast %151 : vector<16xf32> to vector<1x16xf32>
      tpu.vector_store %arg8[%c6_34, %c3_35], %154 {strides = array<i32>} : memref<24x128xf32, #tpu.memory_space<vmem>>, vector<1x16xf32>,
      %155 = vector.extract_strided_slice %116 {offsets = [64], sizes = [16], strides = [1]} : vector<256xf32> to vector<16xf32>
      %c7_36 = arith.constant 7 : index
      %c3_37 = arith.constant 3 : index
      %156 = vector.load %arg7[%c7_36, %c3_37] : memref<24x128xf32, #tpu.memory_space<vmem>>, vector<1x16xf32>
      %157 = vector.shape_cast %156 : vector<1x16xf32> to vector<16xf32>
      %158 = vector.shape_cast %155 : vector<16xf32> to vector<1x16xf32>
      tpu.vector_store %arg7[%c7_36, %c3_37], %158 {strides = array<i32>} : memref<24x128xf32, #tpu.memory_space<vmem>>, vector<1x16xf32>,
      %159 = vector.extract_strided_slice %118 {offsets = [64], sizes = [16], strides = [1]} : vector<256xf32> to vector<16xf32>
      %c7_38 = arith.constant 7 : index
      %c3_39 = arith.constant 3 : index
      %160 = vector.load %arg8[%c7_38, %c3_39] : memref<24x128xf32, #tpu.memory_space<vmem>>, vector<1x16xf32>
      %161 = vector.shape_cast %160 : vector<1x16xf32> to vector<16xf32>
      %162 = vector.shape_cast %159 : vector<16xf32> to vector<1x16xf32>
      tpu.vector_store %arg8[%c7_38, %c3_39], %162 {strides = array<i32>} : memref<24x128xf32, #tpu.memory_space<vmem>>, vector<1x16xf32>,
      %163 = vector.extract_strided_slice %116 {offsets = [80], sizes = [16], strides = [1]} : vector<256xf32> to vector<16xf32>
      %c8_40 = arith.constant 8 : index
      %c3_41 = arith.constant 3 : index
      %164 = vector.load %arg7[%c8_40, %c3_41] : memref<24x128xf32, #tpu.memory_space<vmem>>, vector<1x16xf32>
      %165 = vector.shape_cast %164 : vector<1x16xf32> to vector<16xf32>
      %166 = vector.shape_cast %163 : vector<16xf32> to vector<1x16xf32>
      tpu.vector_store %arg7[%c8_40, %c3_41], %166 {strides = array<i32>} : memref<24x128xf32, #tpu.memory_space<vmem>>, vector<1x16xf32>,
      %167 = vector.extract_strided_slice %118 {offsets = [80], sizes = [16], strides = [1]} : vector<256xf32> to vector<16xf32>
      %c8_42 = arith.constant 8 : index
      %c3_43 = arith.constant 3 : index
      %168 = vector.load %arg8[%c8_42, %c3_43] : memref<24x128xf32, #tpu.memory_space<vmem>>, vector<1x16xf32>
      %169 = vector.shape_cast %168 : vector<1x16xf32> to vector<16xf32>
      %170 = vector.shape_cast %167 : vector<16xf32> to vector<1x16xf32>
      tpu.vector_store %arg8[%c8_42, %c3_43], %170 {strides = array<i32>} : memref<24x128xf32, #tpu.memory_space<vmem>>, vector<1x16xf32>,
      %171 = vector.extract_strided_slice %116 {offsets = [96], sizes = [16], strides = [1]} : vector<256xf32> to vector<16xf32>
      %c9_44 = arith.constant 9 : index
      %c3_45 = arith.constant 3 : index
      %172 = vector.load %arg7[%c9_44, %c3_45] : memref<24x128xf32, #tpu.memory_space<vmem>>, vector<1x16xf32>
      %173 = vector.shape_cast %172 : vector<1x16xf32> to vector<16xf32>
      %174 = vector.shape_cast %171 : vector<16xf32> to vector<1x16xf32>
      tpu.vector_store %arg7[%c9_44, %c3_45], %174 {strides = array<i32>} : memref<24x128xf32, #tpu.memory_space<vmem>>, vector<1x16xf32>,
      %175 = vector.extract_strided_slice %118 {offsets = [96], sizes = [16], strides = [1]} : vector<256xf32> to vector<16xf32>
      %c9_46 = arith.constant 9 : index
      %c3_47 = arith.constant 3 : index
      %176 = vector.load %arg8[%c9_46, %c3_47] : memref<24x128xf32, #tpu.memory_space<vmem>>, vector<1x16xf32>
      %177 = vector.shape_cast %176 : vector<1x16xf32> to vector<16xf32>
      %178 = vector.shape_cast %175 : vector<16xf32> to vector<1x16xf32>
      tpu.vector_store %arg8[%c9_46, %c3_47], %178 {strides = array<i32>} : memref<24x128xf32, #tpu.memory_space<vmem>>, vector<1x16xf32>,
      %179 = vector.extract_strided_slice %116 {offsets = [112], sizes = [16], strides = [1]} : vector<256xf32> to vector<16xf32>
      %c10_48 = arith.constant 10 : index
      %c3_49 = arith.constant 3 : index
      %180 = vector.load %arg7[%c10_48, %c3_49] : memref<24x128xf32, #tpu.memory_space<vmem>>, vector<1x16xf32>
      %181 = vector.shape_cast %180 : vector<1x16xf32> to vector<16xf32>
      %182 = vector.shape_cast %179 : vector<16xf32> to vector<1x16xf32>
      tpu.vector_store %arg7[%c10_48, %c3_49], %182 {strides = array<i32>} : memref<24x128xf32, #tpu.memory_space<vmem>>, vector<1x16xf32>,
      %183 = vector.extract_strided_slice %118 {offsets = [112], sizes = [16], strides = [1]} : vector<256xf32> to vector<16xf32>
      %c10_50 = arith.constant 10 : index
      %c3_51 = arith.constant 3 : index
      %184 = vector.load %arg8[%c10_50, %c3_51] : memref<24x128xf32, #tpu.memory_space<vmem>>, vector<1x16xf32>
      %185 = vector.shape_cast %184 : vector<1x16xf32> to vector<16xf32>
      %186 = vector.shape_cast %183 : vector<16xf32> to vector<1x16xf32>
      tpu.vector_store %arg8[%c10_50, %c3_51], %186 {strides = array<i32>} : memref<24x128xf32, #tpu.memory_space<vmem>>, vector<1x16xf32>,
      %187 = vector.extract_strided_slice %116 {offsets = [128], sizes = [16], strides = [1]} : vector<256xf32> to vector<16xf32>
      %c11_52 = arith.constant 11 : index
      %c3_53 = arith.constant 3 : index
      %188 = vector.load %arg7[%c11_52, %c3_53] : memref<24x128xf32, #tpu.memory_space<vmem>>, vector<1x16xf32>
      %189 = vector.shape_cast %188 : vector<1x16xf32> to vector<16xf32>
      %190 = vector.shape_cast %187 : vector<16xf32> to vector<1x16xf32>
      tpu.vector_store %arg7[%c11_52, %c3_53], %190 {strides = array<i32>} : memref<24x128xf32, #tpu.memory_space<vmem>>, vector<1x16xf32>,
      %191 = vector.extract_strided_slice %118 {offsets = [128], sizes = [16], strides = [1]} : vector<256xf32> to vector<16xf32>
      %c11_54 = arith.constant 11 : index
      %c3_55 = arith.constant 3 : index
      %192 = vector.load %arg8[%c11_54, %c3_55] : memref<24x128xf32, #tpu.memory_space<vmem>>, vector<1x16xf32>
      %193 = vector.shape_cast %192 : vector<1x16xf32> to vector<16xf32>
      %194 = vector.shape_cast %191 : vector<16xf32> to vector<1x16xf32>
      tpu.vector_store %arg8[%c11_54, %c3_55], %194 {strides = array<i32>} : memref<24x128xf32, #tpu.memory_space<vmem>>, vector<1x16xf32>,
      %195 = vector.extract_strided_slice %116 {offsets = [144], sizes = [16], strides = [1]} : vector<256xf32> to vector<16xf32>
      %c12_56 = arith.constant 12 : index
      %c3_57 = arith.constant 3 : index
      %196 = vector.load %arg7[%c12_56, %c3_57] : memref<24x128xf32, #tpu.memory_space<vmem>>, vector<1x16xf32>
      %197 = vector.shape_cast %196 : vector<1x16xf32> to vector<16xf32>
      %198 = vector.shape_cast %195 : vector<16xf32> to vector<1x16xf32>
      tpu.vector_store %arg7[%c12_56, %c3_57], %198 {strides = array<i32>} : memref<24x128xf32, #tpu.memory_space<vmem>>, vector<1x16xf32>,
      %199 = vector.extract_strided_slice %118 {offsets = [144], sizes = [16], strides = [1]} : vector<256xf32> to vector<16xf32>
      %c12_58 = arith.constant 12 : index
      %c3_59 = arith.constant 3 : index
      %200 = vector.load %arg8[%c12_58, %c3_59] : memref<24x128xf32, #tpu.memory_space<vmem>>, vector<1x16xf32>
      %201 = vector.shape_cast %200 : vector<1x16xf32> to vector<16xf32>
      %202 = vector.shape_cast %199 : vector<16xf32> to vector<1x16xf32>
      tpu.vector_store %arg8[%c12_58, %c3_59], %202 {strides = array<i32>} : memref<24x128xf32, #tpu.memory_space<vmem>>, vector<1x16xf32>,
      %203 = vector.extract_strided_slice %116 {offsets = [160], sizes = [16], strides = [1]} : vector<256xf32> to vector<16xf32>
      %c13_60 = arith.constant 13 : index
      %c3_61 = arith.constant 3 : index
      %204 = vector.load %arg7[%c13_60, %c3_61] : memref<24x128xf32, #tpu.memory_space<vmem>>, vector<1x16xf32>
      %205 = vector.shape_cast %204 : vector<1x16xf32> to vector<16xf32>
      %206 = vector.shape_cast %203 : vector<16xf32> to vector<1x16xf32>
      tpu.vector_store %arg7[%c13_60, %c3_61], %206 {strides = array<i32>} : memref<24x128xf32, #tpu.memory_space<vmem>>, vector<1x16xf32>,
      %207 = vector.extract_strided_slice %118 {offsets = [160], sizes = [16], strides = [1]} : vector<256xf32> to vector<16xf32>
      %c13_62 = arith.constant 13 : index
      %c3_63 = arith.constant 3 : index
      %208 = vector.load %arg8[%c13_62, %c3_63] : memref<24x128xf32, #tpu.memory_space<vmem>>, vector<1x16xf32>
      %209 = vector.shape_cast %208 : vector<1x16xf32> to vector<16xf32>
      %210 = vector.shape_cast %207 : vector<16xf32> to vector<1x16xf32>
      tpu.vector_store %arg8[%c13_62, %c3_63], %210 {strides = array<i32>} : memref<24x128xf32, #tpu.memory_space<vmem>>, vector<1x16xf32>,
      %211 = vector.extract_strided_slice %116 {offsets = [176], sizes = [16], strides = [1]} : vector<256xf32> to vector<16xf32>
      %c14_64 = arith.constant 14 : index
      %c3_65 = arith.constant 3 : index
      %212 = vector.load %arg7[%c14_64, %c3_65] : memref<24x128xf32, #tpu.memory_space<vmem>>, vector<1x16xf32>
      %213 = vector.shape_cast %212 : vector<1x16xf32> to vector<16xf32>
      %214 = vector.shape_cast %211 : vector<16xf32> to vector<1x16xf32>
      tpu.vector_store %arg7[%c14_64, %c3_65], %214 {strides = array<i32>} : memref<24x128xf32, #tpu.memory_space<vmem>>, vector<1x16xf32>,
      %215 = vector.extract_strided_slice %118 {offsets = [176], sizes = [16], strides = [1]} : vector<256xf32> to vector<16xf32>
      %c14_66 = arith.constant 14 : index
      %c3_67 = arith.constant 3 : index
      %216 = vector.load %arg8[%c14_66, %c3_67] : memref<24x128xf32, #tpu.memory_space<vmem>>, vector<1x16xf32>
      %217 = vector.shape_cast %216 : vector<1x16xf32> to vector<16xf32>
      %218 = vector.shape_cast %215 : vector<16xf32> to vector<1x16xf32>
      tpu.vector_store %arg8[%c14_66, %c3_67], %218 {strides = array<i32>} : memref<24x128xf32, #tpu.memory_space<vmem>>, vector<1x16xf32>,
      %219 = vector.extract_strided_slice %116 {offsets = [192], sizes = [16], strides = [1]} : vector<256xf32> to vector<16xf32>
      %c15_68 = arith.constant 15 : index
      %c3_69 = arith.constant 3 : index
      %220 = vector.load %arg7[%c15_68, %c3_69] : memref<24x128xf32, #tpu.memory_space<vmem>>, vector<1x16xf32>
      %221 = vector.shape_cast %220 : vector<1x16xf32> to vector<16xf32>
      %222 = vector.shape_cast %219 : vector<16xf32> to vector<1x16xf32>
      tpu.vector_store %arg7[%c15_68, %c3_69], %222 {strides = array<i32>} : memref<24x128xf32, #tpu.memory_space<vmem>>, vector<1x16xf32>,
      %223 = vector.extract_strided_slice %118 {offsets = [192], sizes = [16], strides = [1]} : vector<256xf32> to vector<16xf32>
      %c15_70 = arith.constant 15 : index
      %c3_71 = arith.constant 3 : index
      %224 = vector.load %arg8[%c15_70, %c3_71] : memref<24x128xf32, #tpu.memory_space<vmem>>, vector<1x16xf32>
      %225 = vector.shape_cast %224 : vector<1x16xf32> to vector<16xf32>
      %226 = vector.shape_cast %223 : vector<16xf32> to vector<1x16xf32>
      tpu.vector_store %arg8[%c15_70, %c3_71], %226 {strides = array<i32>} : memref<24x128xf32, #tpu.memory_space<vmem>>, vector<1x16xf32>,
      %227 = vector.extract_strided_slice %116 {offsets = [208], sizes = [16], strides = [1]} : vector<256xf32> to vector<16xf32>
      %c16_72 = arith.constant 16 : index
      %c3_73 = arith.constant 3 : index
      %228 = vector.load %arg7[%c16_72, %c3_73] : memref<24x128xf32, #tpu.memory_space<vmem>>, vector<1x16xf32>
      %229 = vector.shape_cast %228 : vector<1x16xf32> to vector<16xf32>
      %230 = vector.shape_cast %227 : vector<16xf32> to vector<1x16xf32>
      tpu.vector_store %arg7[%c16_72, %c3_73], %230 {strides = array<i32>} : memref<24x128xf32, #tpu.memory_space<vmem>>, vector<1x16xf32>,
      %231 = vector.extract_strided_slice %118 {offsets = [208], sizes = [16], strides = [1]} : vector<256xf32> to vector<16xf32>
      %c16_74 = arith.constant 16 : index
      %c3_75 = arith.constant 3 : index
      %232 = vector.load %arg8[%c16_74, %c3_75] : memref<24x128xf32, #tpu.memory_space<vmem>>, vector<1x16xf32>
      %233 = vector.shape_cast %232 : vector<1x16xf32> to vector<16xf32>
      %234 = vector.shape_cast %231 : vector<16xf32> to vector<1x16xf32>
      tpu.vector_store %arg8[%c16_74, %c3_75], %234 {strides = array<i32>} : memref<24x128xf32, #tpu.memory_space<vmem>>, vector<1x16xf32>,
      %235 = vector.extract_strided_slice %116 {offsets = [224], sizes = [16], strides = [1]} : vector<256xf32> to vector<16xf32>
      %c17_76 = arith.constant 17 : index
      %c3_77 = arith.constant 3 : index
      %236 = vector.load %arg7[%c17_76, %c3_77] : memref<24x128xf32, #tpu.memory_space<vmem>>, vector<1x16xf32>
      %237 = vector.shape_cast %236 : vector<1x16xf32> to vector<16xf32>
      %238 = vector.shape_cast %235 : vector<16xf32> to vector<1x16xf32>
      tpu.vector_store %arg7[%c17_76, %c3_77], %238 {strides = array<i32>} : memref<24x128xf32, #tpu.memory_space<vmem>>, vector<1x16xf32>,
      %239 = vector.extract_strided_slice %118 {offsets = [224], sizes = [16], strides = [1]} : vector<256xf32> to vector<16xf32>
      %c17_78 = arith.constant 17 : index
      %c3_79 = arith.constant 3 : index
      %240 = vector.load %arg8[%c17_78, %c3_79] : memref<24x128xf32, #tpu.memory_space<vmem>>, vector<1x16xf32>
      %241 = vector.shape_cast %240 : vector<1x16xf32> to vector<16xf32>
      %242 = vector.shape_cast %239 : vector<16xf32> to vector<1x16xf32>
      tpu.vector_store %arg8[%c17_78, %c3_79], %242 {strides = array<i32>} : memref<24x128xf32, #tpu.memory_space<vmem>>, vector<1x16xf32>,
      %243 = vector.extract_strided_slice %116 {offsets = [240], sizes = [16], strides = [1]} : vector<256xf32> to vector<16xf32>
      %c18_80 = arith.constant 18 : index
      %c3_81 = arith.constant 3 : index
      %244 = vector.load %arg7[%c18_80, %c3_81] : memref<24x128xf32, #tpu.memory_space<vmem>>, vector<1x16xf32>
      %245 = vector.shape_cast %244 : vector<1x16xf32> to vector<16xf32>
      %246 = vector.shape_cast %243 : vector<16xf32> to vector<1x16xf32>
      tpu.vector_store %arg7[%c18_80, %c3_81], %246 {strides = array<i32>} : memref<24x128xf32, #tpu.memory_space<vmem>>, vector<1x16xf32>,
      %247 = vector.extract_strided_slice %118 {offsets = [240], sizes = [16], strides = [1]} : vector<256xf32> to vector<16xf32>
      %c18_82 = arith.constant 18 : index
      %c3_83 = arith.constant 3 : index
      %248 = vector.load %arg8[%c18_82, %c3_83] : memref<24x128xf32, #tpu.memory_space<vmem>>, vector<1x16xf32>
      %249 = vector.shape_cast %248 : vector<1x16xf32> to vector<16xf32>
      %250 = vector.shape_cast %247 : vector<16xf32> to vector<1x16xf32>
      tpu.vector_store %arg8[%c18_82, %c3_83], %250 {strides = array<i32>} : memref<24x128xf32, #tpu.memory_space<vmem>>, vector<1x16xf32>,
      %c0_84 = arith.constant 0 : index
      %c0_85 = arith.constant 0 : index
      %251 = vector.load %arg7[%c0_84, %c0_85] : memref<24x128xf32, #tpu.memory_space<vmem>>, vector<24x128xf32>
      %c0_86 = arith.constant 0 : index
      %c0_87 = arith.constant 0 : index
      %252 = vector.load %arg8[%c0_86, %c0_87] : memref<24x128xf32, #tpu.memory_space<vmem>>, vector<24x128xf32>
      %cst_88 = arith.constant 0.000000e+00 : f32
      %253 = vector.broadcast %cst_88 : f32 to vector<24x128xf32>
      %254 = vector.broadcast %15 : f32 to vector<24x128xf32>
      %255 = arith.mulf %251, %254 : vector<24x128xf32>
      %256 = arith.addf %253, %255 : vector<24x128xf32>
      %257 = vector.broadcast %64 : f32 to vector<24x128xf32>
      %258 = arith.mulf %252, %257 : vector<24x128xf32>
      %259 = arith.addf %256, %258 : vector<24x128xf32>
      %c23_i32 = arith.constant 23 : i32
      %260 = tpu.dynamic_rotate %251 by %c23_i32 dim 0 : vector<24x128xf32>, i32 -> vector<24x128xf32>
      %c23_i32_89 = arith.constant 23 : i32
      %261 = tpu.dynamic_rotate %252 by %c23_i32_89 dim 0 : vector<24x128xf32>, i32 -> vector<24x128xf32>
      %262 = vector.broadcast %22 : f32 to vector<24x128xf32>
      %263 = arith.mulf %260, %262 : vector<24x128xf32>
      %264 = arith.addf %259, %263 : vector<24x128xf32>
      %265 = vector.broadcast %71 : f32 to vector<24x128xf32>
      %266 = arith.mulf %261, %265 : vector<24x128xf32>
      %267 = arith.addf %264, %266 : vector<24x128xf32>
      %c22_i32 = arith.constant 22 : i32
      %268 = tpu.dynamic_rotate %251 by %c22_i32 dim 0 : vector<24x128xf32>, i32 -> vector<24x128xf32>
      %c22_i32_90 = arith.constant 22 : i32
      %269 = tpu.dynamic_rotate %252 by %c22_i32_90 dim 0 : vector<24x128xf32>, i32 -> vector<24x128xf32>
      %270 = vector.broadcast %29 : f32 to vector<24x128xf32>
      %271 = arith.mulf %268, %270 : vector<24x128xf32>
      %272 = arith.addf %267, %271 : vector<24x128xf32>
      %273 = vector.broadcast %78 : f32 to vector<24x128xf32>
      %274 = arith.mulf %269, %273 : vector<24x128xf32>
      %275 = arith.addf %272, %274 : vector<24x128xf32>
      %c21_i32 = arith.constant 21 : i32
      %276 = tpu.dynamic_rotate %251 by %c21_i32 dim 0 : vector<24x128xf32>, i32 -> vector<24x128xf32>
      %c21_i32_91 = arith.constant 21 : i32
      %277 = tpu.dynamic_rotate %252 by %c21_i32_91 dim 0 : vector<24x128xf32>, i32 -> vector<24x128xf32>
      %278 = vector.broadcast %36 : f32 to vector<24x128xf32>
      %279 = arith.mulf %276, %278 : vector<24x128xf32>
      %280 = arith.addf %275, %279 : vector<24x128xf32>
      %281 = vector.broadcast %85 : f32 to vector<24x128xf32>
      %282 = arith.mulf %277, %281 : vector<24x128xf32>
      %283 = arith.addf %280, %282 : vector<24x128xf32>
      %c20_i32 = arith.constant 20 : i32
      %284 = tpu.dynamic_rotate %251 by %c20_i32 dim 0 : vector<24x128xf32>, i32 -> vector<24x128xf32>
      %c20_i32_92 = arith.constant 20 : i32
      %285 = tpu.dynamic_rotate %252 by %c20_i32_92 dim 0 : vector<24x128xf32>, i32 -> vector<24x128xf32>
      %286 = vector.broadcast %43 : f32 to vector<24x128xf32>
      %287 = arith.mulf %284, %286 : vector<24x128xf32>
      %288 = arith.addf %283, %287 : vector<24x128xf32>
      %289 = vector.broadcast %92 : f32 to vector<24x128xf32>
      %290 = arith.mulf %285, %289 : vector<24x128xf32>
      %291 = arith.addf %288, %290 : vector<24x128xf32>
      %c19_i32 = arith.constant 19 : i32
      %292 = tpu.dynamic_rotate %251 by %c19_i32 dim 0 : vector<24x128xf32>, i32 -> vector<24x128xf32>
      %c19_i32_93 = arith.constant 19 : i32
      %293 = tpu.dynamic_rotate %252 by %c19_i32_93 dim 0 : vector<24x128xf32>, i32 -> vector<24x128xf32>
      %294 = vector.broadcast %50 : f32 to vector<24x128xf32>
      %295 = arith.mulf %292, %294 : vector<24x128xf32>
      %296 = arith.addf %291, %295 : vector<24x128xf32>
      %297 = vector.broadcast %99 : f32 to vector<24x128xf32>
      %298 = arith.mulf %293, %297 : vector<24x128xf32>
      %299 = arith.addf %296, %298 : vector<24x128xf32>
      %c18_i32 = arith.constant 18 : i32
      %300 = tpu.dynamic_rotate %251 by %c18_i32 dim 0 : vector<24x128xf32>, i32 -> vector<24x128xf32>
      %c18_i32_94 = arith.constant 18 : i32
      %301 = tpu.dynamic_rotate %252 by %c18_i32_94 dim 0 : vector<24x128xf32>, i32 -> vector<24x128xf32>
      %302 = vector.broadcast %57 : f32 to vector<24x128xf32>
      %303 = arith.mulf %300, %302 : vector<24x128xf32>
      %304 = arith.addf %299, %303 : vector<24x128xf32>
      %305 = vector.broadcast %106 : f32 to vector<24x128xf32>
      %306 = arith.mulf %301, %305 : vector<24x128xf32>
      %307 = arith.addf %304, %306 : vector<24x128xf32>
      %c127_i32 = arith.constant 127 : i32
      %308 = tpu.dynamic_rotate %251 by %c127_i32 dim 1 : vector<24x128xf32>, i32 -> vector<24x128xf32>
      %c127_i32_95 = arith.constant 127 : i32
      %309 = tpu.dynamic_rotate %252 by %c127_i32_95 dim 1 : vector<24x128xf32>, i32 -> vector<24x128xf32>
      %310 = vector.broadcast %16 : f32 to vector<24x128xf32>
      %311 = arith.mulf %308, %310 : vector<24x128xf32>
      %312 = arith.addf %307, %311 : vector<24x128xf32>
      %313 = vector.broadcast %65 : f32 to vector<24x128xf32>
      %314 = arith.mulf %309, %313 : vector<24x128xf32>
      %315 = arith.addf %312, %314 : vector<24x128xf32>
      %c23_i32_96 = arith.constant 23 : i32
      %316 = tpu.dynamic_rotate %308 by %c23_i32_96 dim 0 : vector<24x128xf32>, i32 -> vector<24x128xf32>
      %c23_i32_97 = arith.constant 23 : i32
      %317 = tpu.dynamic_rotate %309 by %c23_i32_97 dim 0 : vector<24x128xf32>, i32 -> vector<24x128xf32>
      %318 = vector.broadcast %23 : f32 to vector<24x128xf32>
      %319 = arith.mulf %316, %318 : vector<24x128xf32>
      %320 = arith.addf %315, %319 : vector<24x128xf32>
      %321 = vector.broadcast %72 : f32 to vector<24x128xf32>
      %322 = arith.mulf %317, %321 : vector<24x128xf32>
      %323 = arith.addf %320, %322 : vector<24x128xf32>
      %c22_i32_98 = arith.constant 22 : i32
      %324 = tpu.dynamic_rotate %308 by %c22_i32_98 dim 0 : vector<24x128xf32>, i32 -> vector<24x128xf32>
      %c22_i32_99 = arith.constant 22 : i32
      %325 = tpu.dynamic_rotate %309 by %c22_i32_99 dim 0 : vector<24x128xf32>, i32 -> vector<24x128xf32>
      %326 = vector.broadcast %30 : f32 to vector<24x128xf32>
      %327 = arith.mulf %324, %326 : vector<24x128xf32>
      %328 = arith.addf %323, %327 : vector<24x128xf32>
      %329 = vector.broadcast %79 : f32 to vector<24x128xf32>
      %330 = arith.mulf %325, %329 : vector<24x128xf32>
      %331 = arith.addf %328, %330 : vector<24x128xf32>
      %c21_i32_100 = arith.constant 21 : i32
      %332 = tpu.dynamic_rotate %308 by %c21_i32_100 dim 0 : vector<24x128xf32>, i32 -> vector<24x128xf32>
      %c21_i32_101 = arith.constant 21 : i32
      %333 = tpu.dynamic_rotate %309 by %c21_i32_101 dim 0 : vector<24x128xf32>, i32 -> vector<24x128xf32>
      %334 = vector.broadcast %37 : f32 to vector<24x128xf32>
      %335 = arith.mulf %332, %334 : vector<24x128xf32>
      %336 = arith.addf %331, %335 : vector<24x128xf32>
      %337 = vector.broadcast %86 : f32 to vector<24x128xf32>
      %338 = arith.mulf %333, %337 : vector<24x128xf32>
      %339 = arith.addf %336, %338 : vector<24x128xf32>
      %c20_i32_102 = arith.constant 20 : i32
      %340 = tpu.dynamic_rotate %308 by %c20_i32_102 dim 0 : vector<24x128xf32>, i32 -> vector<24x128xf32>
      %c20_i32_103 = arith.constant 20 : i32
      %341 = tpu.dynamic_rotate %309 by %c20_i32_103 dim 0 : vector<24x128xf32>, i32 -> vector<24x128xf32>
      %342 = vector.broadcast %44 : f32 to vector<24x128xf32>
      %343 = arith.mulf %340, %342 : vector<24x128xf32>
      %344 = arith.addf %339, %343 : vector<24x128xf32>
      %345 = vector.broadcast %93 : f32 to vector<24x128xf32>
      %346 = arith.mulf %341, %345 : vector<24x128xf32>
      %347 = arith.addf %344, %346 : vector<24x128xf32>
      %c19_i32_104 = arith.constant 19 : i32
      %348 = tpu.dynamic_rotate %308 by %c19_i32_104 dim 0 : vector<24x128xf32>, i32 -> vector<24x128xf32>
      %c19_i32_105 = arith.constant 19 : i32
      %349 = tpu.dynamic_rotate %309 by %c19_i32_105 dim 0 : vector<24x128xf32>, i32 -> vector<24x128xf32>
      %350 = vector.broadcast %51 : f32 to vector<24x128xf32>
      %351 = arith.mulf %348, %350 : vector<24x128xf32>
      %352 = arith.addf %347, %351 : vector<24x128xf32>
      %353 = vector.broadcast %100 : f32 to vector<24x128xf32>
      %354 = arith.mulf %349, %353 : vector<24x128xf32>
      %355 = arith.addf %352, %354 : vector<24x128xf32>
      %c18_i32_106 = arith.constant 18 : i32
      %356 = tpu.dynamic_rotate %308 by %c18_i32_106 dim 0 : vector<24x128xf32>, i32 -> vector<24x128xf32>
      %c18_i32_107 = arith.constant 18 : i32
      %357 = tpu.dynamic_rotate %309 by %c18_i32_107 dim 0 : vector<24x128xf32>, i32 -> vector<24x128xf32>
      %358 = vector.broadcast %58 : f32 to vector<24x128xf32>
      %359 = arith.mulf %356, %358 : vector<24x128xf32>
      %360 = arith.addf %355, %359 : vector<24x128xf32>
      %361 = vector.broadcast %107 : f32 to vector<24x128xf32>
      %362 = arith.mulf %357, %361 : vector<24x128xf32>
      %363 = arith.addf %360, %362 : vector<24x128xf32>
      %c126_i32 = arith.constant 126 : i32
      %364 = tpu.dynamic_rotate %251 by %c126_i32 dim 1 : vector<24x128xf32>, i32 -> vector<24x128xf32>
      %c126_i32_108 = arith.constant 126 : i32
      %365 = tpu.dynamic_rotate %252 by %c126_i32_108 dim 1 : vector<24x128xf32>, i32 -> vector<24x128xf32>
      %366 = vector.broadcast %17 : f32 to vector<24x128xf32>
      %367 = arith.mulf %364, %366 : vector<24x128xf32>
      %368 = arith.addf %363, %367 : vector<24x128xf32>
      %369 = vector.broadcast %66 : f32 to vector<24x128xf32>
      %370 = arith.mulf %365, %369 : vector<24x128xf32>
      %371 = arith.addf %368, %370 : vector<24x128xf32>
      %c23_i32_109 = arith.constant 23 : i32
      %372 = tpu.dynamic_rotate %364 by %c23_i32_109 dim 0 : vector<24x128xf32>, i32 -> vector<24x128xf32>
      %c23_i32_110 = arith.constant 23 : i32
      %373 = tpu.dynamic_rotate %365 by %c23_i32_110 dim 0 : vector<24x128xf32>, i32 -> vector<24x128xf32>
      %374 = vector.broadcast %24 : f32 to vector<24x128xf32>
      %375 = arith.mulf %372, %374 : vector<24x128xf32>
      %376 = arith.addf %371, %375 : vector<24x128xf32>
      %377 = vector.broadcast %73 : f32 to vector<24x128xf32>
      %378 = arith.mulf %373, %377 : vector<24x128xf32>
      %379 = arith.addf %376, %378 : vector<24x128xf32>
      %c22_i32_111 = arith.constant 22 : i32
      %380 = tpu.dynamic_rotate %364 by %c22_i32_111 dim 0 : vector<24x128xf32>, i32 -> vector<24x128xf32>
      %c22_i32_112 = arith.constant 22 : i32
      %381 = tpu.dynamic_rotate %365 by %c22_i32_112 dim 0 : vector<24x128xf32>, i32 -> vector<24x128xf32>
      %382 = vector.broadcast %31 : f32 to vector<24x128xf32>
      %383 = arith.mulf %380, %382 : vector<24x128xf32>
      %384 = arith.addf %379, %383 : vector<24x128xf32>
      %385 = vector.broadcast %80 : f32 to vector<24x128xf32>
      %386 = arith.mulf %381, %385 : vector<24x128xf32>
      %387 = arith.addf %384, %386 : vector<24x128xf32>
      %c21_i32_113 = arith.constant 21 : i32
      %388 = tpu.dynamic_rotate %364 by %c21_i32_113 dim 0 : vector<24x128xf32>, i32 -> vector<24x128xf32>
      %c21_i32_114 = arith.constant 21 : i32
      %389 = tpu.dynamic_rotate %365 by %c21_i32_114 dim 0 : vector<24x128xf32>, i32 -> vector<24x128xf32>
      %390 = vector.broadcast %38 : f32 to vector<24x128xf32>
      %391 = arith.mulf %388, %390 : vector<24x128xf32>
      %392 = arith.addf %387, %391 : vector<24x128xf32>
      %393 = vector.broadcast %87 : f32 to vector<24x128xf32>
      %394 = arith.mulf %389, %393 : vector<24x128xf32>
      %395 = arith.addf %392, %394 : vector<24x128xf32>
      %c20_i32_115 = arith.constant 20 : i32
      %396 = tpu.dynamic_rotate %364 by %c20_i32_115 dim 0 : vector<24x128xf32>, i32 -> vector<24x128xf32>
      %c20_i32_116 = arith.constant 20 : i32
      %397 = tpu.dynamic_rotate %365 by %c20_i32_116 dim 0 : vector<24x128xf32>, i32 -> vector<24x128xf32>
      %398 = vector.broadcast %45 : f32 to vector<24x128xf32>
      %399 = arith.mulf %396, %398 : vector<24x128xf32>
      %400 = arith.addf %395, %399 : vector<24x128xf32>
      %401 = vector.broadcast %94 : f32 to vector<24x128xf32>
      %402 = arith.mulf %397, %401 : vector<24x128xf32>
      %403 = arith.addf %400, %402 : vector<24x128xf32>
      %c19_i32_117 = arith.constant 19 : i32
      %404 = tpu.dynamic_rotate %364 by %c19_i32_117 dim 0 : vector<24x128xf32>, i32 -> vector<24x128xf32>
      %c19_i32_118 = arith.constant 19 : i32
      %405 = tpu.dynamic_rotate %365 by %c19_i32_118 dim 0 : vector<24x128xf32>, i32 -> vector<24x128xf32>
      %406 = vector.broadcast %52 : f32 to vector<24x128xf32>
      %407 = arith.mulf %404, %406 : vector<24x128xf32>
      %408 = arith.addf %403, %407 : vector<24x128xf32>
      %409 = vector.broadcast %101 : f32 to vector<24x128xf32>
      %410 = arith.mulf %405, %409 : vector<24x128xf32>
      %411 = arith.addf %408, %410 : vector<24x128xf32>
      %c18_i32_119 = arith.constant 18 : i32
      %412 = tpu.dynamic_rotate %364 by %c18_i32_119 dim 0 : vector<24x128xf32>, i32 -> vector<24x128xf32>
      %c18_i32_120 = arith.constant 18 : i32
      %413 = tpu.dynamic_rotate %365 by %c18_i32_120 dim 0 : vector<24x128xf32>, i32 -> vector<24x128xf32>
      %414 = vector.broadcast %59 : f32 to vector<24x128xf32>
      %415 = arith.mulf %412, %414 : vector<24x128xf32>
      %416 = arith.addf %411, %415 : vector<24x128xf32>
      %417 = vector.broadcast %108 : f32 to vector<24x128xf32>
      %418 = arith.mulf %413, %417 : vector<24x128xf32>
      %419 = arith.addf %416, %418 : vector<24x128xf32>
      %c125_i32 = arith.constant 125 : i32
      %420 = tpu.dynamic_rotate %251 by %c125_i32 dim 1 : vector<24x128xf32>, i32 -> vector<24x128xf32>
      %c125_i32_121 = arith.constant 125 : i32
      %421 = tpu.dynamic_rotate %252 by %c125_i32_121 dim 1 : vector<24x128xf32>, i32 -> vector<24x128xf32>
      %422 = vector.broadcast %18 : f32 to vector<24x128xf32>
      %423 = arith.mulf %420, %422 : vector<24x128xf32>
      %424 = arith.addf %419, %423 : vector<24x128xf32>
      %425 = vector.broadcast %67 : f32 to vector<24x128xf32>
      %426 = arith.mulf %421, %425 : vector<24x128xf32>
      %427 = arith.addf %424, %426 : vector<24x128xf32>
      %c23_i32_122 = arith.constant 23 : i32
      %428 = tpu.dynamic_rotate %420 by %c23_i32_122 dim 0 : vector<24x128xf32>, i32 -> vector<24x128xf32>
      %c23_i32_123 = arith.constant 23 : i32
      %429 = tpu.dynamic_rotate %421 by %c23_i32_123 dim 0 : vector<24x128xf32>, i32 -> vector<24x128xf32>
      %430 = vector.broadcast %25 : f32 to vector<24x128xf32>
      %431 = arith.mulf %428, %430 : vector<24x128xf32>
      %432 = arith.addf %427, %431 : vector<24x128xf32>
      %433 = vector.broadcast %74 : f32 to vector<24x128xf32>
      %434 = arith.mulf %429, %433 : vector<24x128xf32>
      %435 = arith.addf %432, %434 : vector<24x128xf32>
      %c22_i32_124 = arith.constant 22 : i32
      %436 = tpu.dynamic_rotate %420 by %c22_i32_124 dim 0 : vector<24x128xf32>, i32 -> vector<24x128xf32>
      %c22_i32_125 = arith.constant 22 : i32
      %437 = tpu.dynamic_rotate %421 by %c22_i32_125 dim 0 : vector<24x128xf32>, i32 -> vector<24x128xf32>
      %438 = vector.broadcast %32 : f32 to vector<24x128xf32>
      %439 = arith.mulf %436, %438 : vector<24x128xf32>
      %440 = arith.addf %435, %439 : vector<24x128xf32>
      %441 = vector.broadcast %81 : f32 to vector<24x128xf32>
      %442 = arith.mulf %437, %441 : vector<24x128xf32>
      %443 = arith.addf %440, %442 : vector<24x128xf32>
      %c21_i32_126 = arith.constant 21 : i32
      %444 = tpu.dynamic_rotate %420 by %c21_i32_126 dim 0 : vector<24x128xf32>, i32 -> vector<24x128xf32>
      %c21_i32_127 = arith.constant 21 : i32
      %445 = tpu.dynamic_rotate %421 by %c21_i32_127 dim 0 : vector<24x128xf32>, i32 -> vector<24x128xf32>
      %446 = vector.broadcast %39 : f32 to vector<24x128xf32>
      %447 = arith.mulf %444, %446 : vector<24x128xf32>
      %448 = arith.addf %443, %447 : vector<24x128xf32>
      %449 = vector.broadcast %88 : f32 to vector<24x128xf32>
      %450 = arith.mulf %445, %449 : vector<24x128xf32>
      %451 = arith.addf %448, %450 : vector<24x128xf32>
      %c20_i32_128 = arith.constant 20 : i32
      %452 = tpu.dynamic_rotate %420 by %c20_i32_128 dim 0 : vector<24x128xf32>, i32 -> vector<24x128xf32>
      %c20_i32_129 = arith.constant 20 : i32
      %453 = tpu.dynamic_rotate %421 by %c20_i32_129 dim 0 : vector<24x128xf32>, i32 -> vector<24x128xf32>
      %454 = vector.broadcast %46 : f32 to vector<24x128xf32>
      %455 = arith.mulf %452, %454 : vector<24x128xf32>
      %456 = arith.addf %451, %455 : vector<24x128xf32>
      %457 = vector.broadcast %95 : f32 to vector<24x128xf32>
      %458 = arith.mulf %453, %457 : vector<24x128xf32>
      %459 = arith.addf %456, %458 : vector<24x128xf32>
      %c19_i32_130 = arith.constant 19 : i32
      %460 = tpu.dynamic_rotate %420 by %c19_i32_130 dim 0 : vector<24x128xf32>, i32 -> vector<24x128xf32>
      %c19_i32_131 = arith.constant 19 : i32
      %461 = tpu.dynamic_rotate %421 by %c19_i32_131 dim 0 : vector<24x128xf32>, i32 -> vector<24x128xf32>
      %462 = vector.broadcast %53 : f32 to vector<24x128xf32>
      %463 = arith.mulf %460, %462 : vector<24x128xf32>
      %464 = arith.addf %459, %463 : vector<24x128xf32>
      %465 = vector.broadcast %102 : f32 to vector<24x128xf32>
      %466 = arith.mulf %461, %465 : vector<24x128xf32>
      %467 = arith.addf %464, %466 : vector<24x128xf32>
      %c18_i32_132 = arith.constant 18 : i32
      %468 = tpu.dynamic_rotate %420 by %c18_i32_132 dim 0 : vector<24x128xf32>, i32 -> vector<24x128xf32>
      %c18_i32_133 = arith.constant 18 : i32
      %469 = tpu.dynamic_rotate %421 by %c18_i32_133 dim 0 : vector<24x128xf32>, i32 -> vector<24x128xf32>
      %470 = vector.broadcast %60 : f32 to vector<24x128xf32>
      %471 = arith.mulf %468, %470 : vector<24x128xf32>
      %472 = arith.addf %467, %471 : vector<24x128xf32>
      %473 = vector.broadcast %109 : f32 to vector<24x128xf32>
      %474 = arith.mulf %469, %473 : vector<24x128xf32>
      %475 = arith.addf %472, %474 : vector<24x128xf32>
      %c124_i32 = arith.constant 124 : i32
      %476 = tpu.dynamic_rotate %251 by %c124_i32 dim 1 : vector<24x128xf32>, i32 -> vector<24x128xf32>
      %c124_i32_134 = arith.constant 124 : i32
      %477 = tpu.dynamic_rotate %252 by %c124_i32_134 dim 1 : vector<24x128xf32>, i32 -> vector<24x128xf32>
      %478 = vector.broadcast %19 : f32 to vector<24x128xf32>
      %479 = arith.mulf %476, %478 : vector<24x128xf32>
      %480 = arith.addf %475, %479 : vector<24x128xf32>
      %481 = vector.broadcast %68 : f32 to vector<24x128xf32>
      %482 = arith.mulf %477, %481 : vector<24x128xf32>
      %483 = arith.addf %480, %482 : vector<24x128xf32>
      %c23_i32_135 = arith.constant 23 : i32
      %484 = tpu.dynamic_rotate %476 by %c23_i32_135 dim 0 : vector<24x128xf32>, i32 -> vector<24x128xf32>
      %c23_i32_136 = arith.constant 23 : i32
      %485 = tpu.dynamic_rotate %477 by %c23_i32_136 dim 0 : vector<24x128xf32>, i32 -> vector<24x128xf32>
      %486 = vector.broadcast %26 : f32 to vector<24x128xf32>
      %487 = arith.mulf %484, %486 : vector<24x128xf32>
      %488 = arith.addf %483, %487 : vector<24x128xf32>
      %489 = vector.broadcast %75 : f32 to vector<24x128xf32>
      %490 = arith.mulf %485, %489 : vector<24x128xf32>
      %491 = arith.addf %488, %490 : vector<24x128xf32>
      %c22_i32_137 = arith.constant 22 : i32
      %492 = tpu.dynamic_rotate %476 by %c22_i32_137 dim 0 : vector<24x128xf32>, i32 -> vector<24x128xf32>
      %c22_i32_138 = arith.constant 22 : i32
      %493 = tpu.dynamic_rotate %477 by %c22_i32_138 dim 0 : vector<24x128xf32>, i32 -> vector<24x128xf32>
      %494 = vector.broadcast %33 : f32 to vector<24x128xf32>
      %495 = arith.mulf %492, %494 : vector<24x128xf32>
      %496 = arith.addf %491, %495 : vector<24x128xf32>
      %497 = vector.broadcast %82 : f32 to vector<24x128xf32>
      %498 = arith.mulf %493, %497 : vector<24x128xf32>
      %499 = arith.addf %496, %498 : vector<24x128xf32>
      %c21_i32_139 = arith.constant 21 : i32
      %500 = tpu.dynamic_rotate %476 by %c21_i32_139 dim 0 : vector<24x128xf32>, i32 -> vector<24x128xf32>
      %c21_i32_140 = arith.constant 21 : i32
      %501 = tpu.dynamic_rotate %477 by %c21_i32_140 dim 0 : vector<24x128xf32>, i32 -> vector<24x128xf32>
      %502 = vector.broadcast %40 : f32 to vector<24x128xf32>
      %503 = arith.mulf %500, %502 : vector<24x128xf32>
      %504 = arith.addf %499, %503 : vector<24x128xf32>
      %505 = vector.broadcast %89 : f32 to vector<24x128xf32>
      %506 = arith.mulf %501, %505 : vector<24x128xf32>
      %507 = arith.addf %504, %506 : vector<24x128xf32>
      %c20_i32_141 = arith.constant 20 : i32
      %508 = tpu.dynamic_rotate %476 by %c20_i32_141 dim 0 : vector<24x128xf32>, i32 -> vector<24x128xf32>
      %c20_i32_142 = arith.constant 20 : i32
      %509 = tpu.dynamic_rotate %477 by %c20_i32_142 dim 0 : vector<24x128xf32>, i32 -> vector<24x128xf32>
      %510 = vector.broadcast %47 : f32 to vector<24x128xf32>
      %511 = arith.mulf %508, %510 : vector<24x128xf32>
      %512 = arith.addf %507, %511 : vector<24x128xf32>
      %513 = vector.broadcast %96 : f32 to vector<24x128xf32>
      %514 = arith.mulf %509, %513 : vector<24x128xf32>
      %515 = arith.addf %512, %514 : vector<24x128xf32>
      %c19_i32_143 = arith.constant 19 : i32
      %516 = tpu.dynamic_rotate %476 by %c19_i32_143 dim 0 : vector<24x128xf32>, i32 -> vector<24x128xf32>
      %c19_i32_144 = arith.constant 19 : i32
      %517 = tpu.dynamic_rotate %477 by %c19_i32_144 dim 0 : vector<24x128xf32>, i32 -> vector<24x128xf32>
      %518 = vector.broadcast %54 : f32 to vector<24x128xf32>
      %519 = arith.mulf %516, %518 : vector<24x128xf32>
      %520 = arith.addf %515, %519 : vector<24x128xf32>
      %521 = vector.broadcast %103 : f32 to vector<24x128xf32>
      %522 = arith.mulf %517, %521 : vector<24x128xf32>
      %523 = arith.addf %520, %522 : vector<24x128xf32>
      %c18_i32_145 = arith.constant 18 : i32
      %524 = tpu.dynamic_rotate %476 by %c18_i32_145 dim 0 : vector<24x128xf32>, i32 -> vector<24x128xf32>
      %c18_i32_146 = arith.constant 18 : i32
      %525 = tpu.dynamic_rotate %477 by %c18_i32_146 dim 0 : vector<24x128xf32>, i32 -> vector<24x128xf32>
      %526 = vector.broadcast %61 : f32 to vector<24x128xf32>
      %527 = arith.mulf %524, %526 : vector<24x128xf32>
      %528 = arith.addf %523, %527 : vector<24x128xf32>
      %529 = vector.broadcast %110 : f32 to vector<24x128xf32>
      %530 = arith.mulf %525, %529 : vector<24x128xf32>
      %531 = arith.addf %528, %530 : vector<24x128xf32>
      %c123_i32 = arith.constant 123 : i32
      %532 = tpu.dynamic_rotate %251 by %c123_i32 dim 1 : vector<24x128xf32>, i32 -> vector<24x128xf32>
      %c123_i32_147 = arith.constant 123 : i32
      %533 = tpu.dynamic_rotate %252 by %c123_i32_147 dim 1 : vector<24x128xf32>, i32 -> vector<24x128xf32>
      %534 = vector.broadcast %20 : f32 to vector<24x128xf32>
      %535 = arith.mulf %532, %534 : vector<24x128xf32>
      %536 = arith.addf %531, %535 : vector<24x128xf32>
      %537 = vector.broadcast %69 : f32 to vector<24x128xf32>
      %538 = arith.mulf %533, %537 : vector<24x128xf32>
      %539 = arith.addf %536, %538 : vector<24x128xf32>
      %c23_i32_148 = arith.constant 23 : i32
      %540 = tpu.dynamic_rotate %532 by %c23_i32_148 dim 0 : vector<24x128xf32>, i32 -> vector<24x128xf32>
      %c23_i32_149 = arith.constant 23 : i32
      %541 = tpu.dynamic_rotate %533 by %c23_i32_149 dim 0 : vector<24x128xf32>, i32 -> vector<24x128xf32>
      %542 = vector.broadcast %27 : f32 to vector<24x128xf32>
      %543 = arith.mulf %540, %542 : vector<24x128xf32>
      %544 = arith.addf %539, %543 : vector<24x128xf32>
      %545 = vector.broadcast %76 : f32 to vector<24x128xf32>
      %546 = arith.mulf %541, %545 : vector<24x128xf32>
      %547 = arith.addf %544, %546 : vector<24x128xf32>
      %c22_i32_150 = arith.constant 22 : i32
      %548 = tpu.dynamic_rotate %532 by %c22_i32_150 dim 0 : vector<24x128xf32>, i32 -> vector<24x128xf32>
      %c22_i32_151 = arith.constant 22 : i32
      %549 = tpu.dynamic_rotate %533 by %c22_i32_151 dim 0 : vector<24x128xf32>, i32 -> vector<24x128xf32>
      %550 = vector.broadcast %34 : f32 to vector<24x128xf32>
      %551 = arith.mulf %548, %550 : vector<24x128xf32>
      %552 = arith.addf %547, %551 : vector<24x128xf32>
      %553 = vector.broadcast %83 : f32 to vector<24x128xf32>
      %554 = arith.mulf %549, %553 : vector<24x128xf32>
      %555 = arith.addf %552, %554 : vector<24x128xf32>
      %c21_i32_152 = arith.constant 21 : i32
      %556 = tpu.dynamic_rotate %532 by %c21_i32_152 dim 0 : vector<24x128xf32>, i32 -> vector<24x128xf32>
      %c21_i32_153 = arith.constant 21 : i32
      %557 = tpu.dynamic_rotate %533 by %c21_i32_153 dim 0 : vector<24x128xf32>, i32 -> vector<24x128xf32>
      %558 = vector.broadcast %41 : f32 to vector<24x128xf32>
      %559 = arith.mulf %556, %558 : vector<24x128xf32>
      %560 = arith.addf %555, %559 : vector<24x128xf32>
      %561 = vector.broadcast %90 : f32 to vector<24x128xf32>
      %562 = arith.mulf %557, %561 : vector<24x128xf32>
      %563 = arith.addf %560, %562 : vector<24x128xf32>
      %c20_i32_154 = arith.constant 20 : i32
      %564 = tpu.dynamic_rotate %532 by %c20_i32_154 dim 0 : vector<24x128xf32>, i32 -> vector<24x128xf32>
      %c20_i32_155 = arith.constant 20 : i32
      %565 = tpu.dynamic_rotate %533 by %c20_i32_155 dim 0 : vector<24x128xf32>, i32 -> vector<24x128xf32>
      %566 = vector.broadcast %48 : f32 to vector<24x128xf32>
      %567 = arith.mulf %564, %566 : vector<24x128xf32>
      %568 = arith.addf %563, %567 : vector<24x128xf32>
      %569 = vector.broadcast %97 : f32 to vector<24x128xf32>
      %570 = arith.mulf %565, %569 : vector<24x128xf32>
      %571 = arith.addf %568, %570 : vector<24x128xf32>
      %c19_i32_156 = arith.constant 19 : i32
      %572 = tpu.dynamic_rotate %532 by %c19_i32_156 dim 0 : vector<24x128xf32>, i32 -> vector<24x128xf32>
      %c19_i32_157 = arith.constant 19 : i32
      %573 = tpu.dynamic_rotate %533 by %c19_i32_157 dim 0 : vector<24x128xf32>, i32 -> vector<24x128xf32>
      %574 = vector.broadcast %55 : f32 to vector<24x128xf32>
      %575 = arith.mulf %572, %574 : vector<24x128xf32>
      %576 = arith.addf %571, %575 : vector<24x128xf32>
      %577 = vector.broadcast %104 : f32 to vector<24x128xf32>
      %578 = arith.mulf %573, %577 : vector<24x128xf32>
      %579 = arith.addf %576, %578 : vector<24x128xf32>
      %c18_i32_158 = arith.constant 18 : i32
      %580 = tpu.dynamic_rotate %532 by %c18_i32_158 dim 0 : vector<24x128xf32>, i32 -> vector<24x128xf32>
      %c18_i32_159 = arith.constant 18 : i32
      %581 = tpu.dynamic_rotate %533 by %c18_i32_159 dim 0 : vector<24x128xf32>, i32 -> vector<24x128xf32>
      %582 = vector.broadcast %62 : f32 to vector<24x128xf32>
      %583 = arith.mulf %580, %582 : vector<24x128xf32>
      %584 = arith.addf %579, %583 : vector<24x128xf32>
      %585 = vector.broadcast %111 : f32 to vector<24x128xf32>
      %586 = arith.mulf %581, %585 : vector<24x128xf32>
      %587 = arith.addf %584, %586 : vector<24x128xf32>
      %c122_i32 = arith.constant 122 : i32
      %588 = tpu.dynamic_rotate %251 by %c122_i32 dim 1 : vector<24x128xf32>, i32 -> vector<24x128xf32>
      %c122_i32_160 = arith.constant 122 : i32
      %589 = tpu.dynamic_rotate %252 by %c122_i32_160 dim 1 : vector<24x128xf32>, i32 -> vector<24x128xf32>
      %590 = vector.broadcast %21 : f32 to vector<24x128xf32>
      %591 = arith.mulf %588, %590 : vector<24x128xf32>
      %592 = arith.addf %587, %591 : vector<24x128xf32>
      %593 = vector.broadcast %70 : f32 to vector<24x128xf32>
      %594 = arith.mulf %589, %593 : vector<24x128xf32>
      %595 = arith.addf %592, %594 : vector<24x128xf32>
      %c23_i32_161 = arith.constant 23 : i32
      %596 = tpu.dynamic_rotate %588 by %c23_i32_161 dim 0 : vector<24x128xf32>, i32 -> vector<24x128xf32>
      %c23_i32_162 = arith.constant 23 : i32
      %597 = tpu.dynamic_rotate %589 by %c23_i32_162 dim 0 : vector<24x128xf32>, i32 -> vector<24x128xf32>
      %598 = vector.broadcast %28 : f32 to vector<24x128xf32>
      %599 = arith.mulf %596, %598 : vector<24x128xf32>
      %600 = arith.addf %595, %599 : vector<24x128xf32>
      %601 = vector.broadcast %77 : f32 to vector<24x128xf32>
      %602 = arith.mulf %597, %601 : vector<24x128xf32>
      %603 = arith.addf %600, %602 : vector<24x128xf32>
      %c22_i32_163 = arith.constant 22 : i32
      %604 = tpu.dynamic_rotate %588 by %c22_i32_163 dim 0 : vector<24x128xf32>, i32 -> vector<24x128xf32>
      %c22_i32_164 = arith.constant 22 : i32
      %605 = tpu.dynamic_rotate %589 by %c22_i32_164 dim 0 : vector<24x128xf32>, i32 -> vector<24x128xf32>
      %606 = vector.broadcast %35 : f32 to vector<24x128xf32>
      %607 = arith.mulf %604, %606 : vector<24x128xf32>
      %608 = arith.addf %603, %607 : vector<24x128xf32>
      %609 = vector.broadcast %84 : f32 to vector<24x128xf32>
      %610 = arith.mulf %605, %609 : vector<24x128xf32>
      %611 = arith.addf %608, %610 : vector<24x128xf32>
      %c21_i32_165 = arith.constant 21 : i32
      %612 = tpu.dynamic_rotate %588 by %c21_i32_165 dim 0 : vector<24x128xf32>, i32 -> vector<24x128xf32>
      %c21_i32_166 = arith.constant 21 : i32
      %613 = tpu.dynamic_rotate %589 by %c21_i32_166 dim 0 : vector<24x128xf32>, i32 -> vector<24x128xf32>
      %614 = vector.broadcast %42 : f32 to vector<24x128xf32>
      %615 = arith.mulf %612, %614 : vector<24x128xf32>
      %616 = arith.addf %611, %615 : vector<24x128xf32>
      %617 = vector.broadcast %91 : f32 to vector<24x128xf32>
      %618 = arith.mulf %613, %617 : vector<24x128xf32>
      %619 = arith.addf %616, %618 : vector<24x128xf32>
      %c20_i32_167 = arith.constant 20 : i32
      %620 = tpu.dynamic_rotate %588 by %c20_i32_167 dim 0 : vector<24x128xf32>, i32 -> vector<24x128xf32>
      %c20_i32_168 = arith.constant 20 : i32
      %621 = tpu.dynamic_rotate %589 by %c20_i32_168 dim 0 : vector<24x128xf32>, i32 -> vector<24x128xf32>
      %622 = vector.broadcast %49 : f32 to vector<24x128xf32>
      %623 = arith.mulf %620, %622 : vector<24x128xf32>
      %624 = arith.addf %619, %623 : vector<24x128xf32>
      %625 = vector.broadcast %98 : f32 to vector<24x128xf32>
      %626 = arith.mulf %621, %625 : vector<24x128xf32>
      %627 = arith.addf %624, %626 : vector<24x128xf32>
      %c19_i32_169 = arith.constant 19 : i32
      %628 = tpu.dynamic_rotate %588 by %c19_i32_169 dim 0 : vector<24x128xf32>, i32 -> vector<24x128xf32>
      %c19_i32_170 = arith.constant 19 : i32
      %629 = tpu.dynamic_rotate %589 by %c19_i32_170 dim 0 : vector<24x128xf32>, i32 -> vector<24x128xf32>
      %630 = vector.broadcast %56 : f32 to vector<24x128xf32>
      %631 = arith.mulf %628, %630 : vector<24x128xf32>
      %632 = arith.addf %627, %631 : vector<24x128xf32>
      %633 = vector.broadcast %105 : f32 to vector<24x128xf32>
      %634 = arith.mulf %629, %633 : vector<24x128xf32>
      %635 = arith.addf %632, %634 : vector<24x128xf32>
      %c18_i32_171 = arith.constant 18 : i32
      %636 = tpu.dynamic_rotate %588 by %c18_i32_171 dim 0 : vector<24x128xf32>, i32 -> vector<24x128xf32>
      %c18_i32_172 = arith.constant 18 : i32
      %637 = tpu.dynamic_rotate %589 by %c18_i32_172 dim 0 : vector<24x128xf32>, i32 -> vector<24x128xf32>
      %638 = vector.broadcast %63 : f32 to vector<24x128xf32>
      %639 = arith.mulf %636, %638 : vector<24x128xf32>
      %640 = arith.addf %635, %639 : vector<24x128xf32>
      %641 = vector.broadcast %112 : f32 to vector<24x128xf32>
      %642 = arith.mulf %637, %641 : vector<24x128xf32>
      %643 = arith.addf %640, %642 : vector<24x128xf32>
      %644 = vector.extract_strided_slice %643 {offsets = [0, 0], sizes = [16, 16], strides = [1, 1]} : vector<24x128xf32> to vector<16x16xf32>
      %645 = arith.negf %644 : vector<16x16xf32>
      %646 = math.exp %645 : vector<16x16xf32>
      %cst_173 = arith.constant 1.000000e+00 : f32
      %647 = vector.broadcast %cst_173 : f32 to vector<16x16xf32>
      %648 = arith.addf %647, %646 : vector<16x16xf32>
      %649 = arith.divf %647, %648 : vector<16x16xf32>
      %c0_174 = arith.constant 0 : index
      %c0_175 = arith.constant 0 : index
      %c0_176 = arith.constant 0 : index
      %c0_177 = arith.constant 0 : index
      %650 = vector.load %arg4[%c0_174, %c0_175, %c0_176, %c0_177] : memref<1x1x16x16xf32, #tpu.memory_space<vmem>>, vector<1x1x16x16xf32>
      %651 = vector.shape_cast %650 : vector<1x1x16x16xf32> to vector<16x16xf32>
      %652 = vector.shape_cast %649 : vector<16x16xf32> to vector<1x1x16x16xf32>
      tpu.vector_store %arg4[%c0_174, %c0_175, %c0_176, %c0_177], %652 {strides = array<i32>} : memref<1x1x16x16xf32, #tpu.memory_space<vmem>>, vector<1x1x16x16xf32>,
    } else {
    }
    return
  }
  func.func @transform_0(%arg0: i32, %arg1: i32) -> i32 {
    %c0_i32 = arith.constant 0 : i32
    %c0_i32_0 = arith.constant 0 : i32
    return %c0_i32 : i32
  }
  func.func @transform_1(%arg0: i32, %arg1: i32) -> (i32, i32, i32) {
    %c0_i32 = arith.constant 0 : i32
    %c0_i32_0 = arith.constant 0 : i32
    return %arg0, %arg1, %c0_i32 : i32, i32, i32
  }
  func.func @transform_2(%arg0: i32, %arg1: i32) -> (i32, i32, i32, i32) {
    %c0_i32 = arith.constant 0 : i32
    %c0_i32_0 = arith.constant 0 : i32
    %c0_i32_1 = arith.constant 0 : i32
    %c0_i32_2 = arith.constant 0 : i32
    return %arg0, %c0_i32, %c0_i32_0, %c0_i32_1 : i32, i32, i32, i32
  }
}

</mosaic_0001>

<bundles_post_ra>
// kernel: tpu_custom_call.1
= control target key start
LH: loop header
LB: loop body
LE: loop exit
PB: predicated region body
PF: predicated region fallthrough
CT: control target
= control target key end

     0   :  { %s4163_s0 = inlined_call_operand.hbm [shape: f32[98], index: 0, kind: input, shape index: {}]   ;;  %s4164_s1 = inlined_call_operand.hbm [shape: f32[2,4,256], index: 1, kind: input, shape index: {}]   ;;  %s4165_s2 = inlined_call_operand.hbm [shape: f32[2,1,16,16], index: 2, kind: output, shape index: {}]  }
   0x1   :  { %4189 = sst [smem:[#allocation26_spill]] %s4163_s0 }
   0x2   :  { %4190 = sst [smem:[#allocation27_spill]] %s4164_s1 }
   0x3   :  { %4191 = sst [smem:[#allocation28_spill]] %s4165_s2 }
   0x4   :  { %7 = vsyncpa [#allocation9], 0 }
   0x5   :  { %8 = vsyncpa [#allocation7], 0 }
   0x6   :  { %10 = vsyncpa [#allocation7 + $0x1], 0 }
   0x7   :  { %11 = vsyncpa [#allocation8], 0 }
   0x8   :  { %13 = vsyncpa [#allocation8 + $0x1], 0  ;;  %s2127_s9 = smov 0   ;;  %s2129_s10 = smov 0  }
   0x9   :  { %s2131_s11 = smov 0   ;;  %s2133_s12 = smov 0  }
   0xa   :  { %s2135_s13 = smov 0   ;;  %s2137_s14 = smov 0  }
   0xb LB: > { %4192 = sst [smem:[#allocation15_spill]] %s2065_s9  ;;  %s1731_s15 = sadd.s32 4294967295, %s2085_s14   ;;  %s2085_s14 = sphi %s2137_s14, %s19_s14   ;;  %s2081_s13 = sphi %s2135_s13, %s4301_s13   ;;  %s2077_s12 = sphi %s2133_s12, %s4300_s12   ;;  %s2073_s11 = sphi %s2131_s11, %s4299_s11   ;;  %s2069_s10 = sphi %s2129_s10, %s4298_s10   ;;  %s2065_s9 = sphi %s2127_s9, %s4297_s9  }
   0xc   : > { %4193 = sst [smem:[#allocation16_spill]] %s2069_s10  ;;  %s1732_s16 = sadd.s32 4294967294, %s2085_s14  }
   0xd   : > { %4194 = sst [smem:[#allocation17_spill]] %s2073_s11  ;;  %p74_p0 = scmp.ne.s32.totalorder %s2069_s10, %s2065_s9 }
   0xe   : > { %4195 = sst [smem:[#allocation18_spill]] %s2077_s12  ;;  %p2161_p1 = scmp.eq.s32.totalorder %s1731_s15, 0 }
   0xf   : > { %4196 = sst [smem:[#allocation19_spill]] %s2081_s13  ;;  %p2165_p2 = scmp.eq.s32.totalorder %s1731_s15, 1 }
  0x10   : > { %4197 = sst [smem:[#allocation20_spill]] %s2085_s14  ;;  %p104_p3 = scmp.eq.s32.totalorder %s1732_s16, 1 }
  0x11   : > { %p2171_p4 = por %p2161_p1, %p74_p0  ;;  %p1733_p5 = scmp.ge.s32.totalorder %s2085_s14, 1 }
  0x12   : > { %p2176_p6 = por %p104_p3, %p74_p0  ;;  %p111_p7 = scmp.lt.s32.totalorder %s2085_s14, 3 }
  0x13   : > { %s4203_s0 = sld [smem:[#allocation26_spill]]  ;;  %s31_s25 = sadd.s32 1, %s2081_s13 }
  0x14   : > { %s4201_s20 = scalar_select %p2176_p6, 1, 0 }
  0x15   : > { %p2184_p8 = pnand %p1733_p5, %p111_p7  ;;  %s61_s26 = sadd.s32 1, %s2073_s11 }
  0x16   : > { %4202 = sst [smem:[#allocation21_spill]] %s4201_s20  ;;  %p33_p12 = scmp.ge.s32.totalorder %s31_s25, 2 }
  0x17   : > { %p1857_p10 = pneg %p2184_p8  ;;  %s2087_s27 = smov [#allocation6]  }
  0x18   : > { %s4303_s25 = smov (%p33_p12, %s31_s25), 0  ;;  %p68_p13 = scmp.ne.s32.totalorder %s2073_s11, %s2069_s10 }
  0x19   : > { %s123_s23 = sshll.u32 %s4203_s0, 4  ;;  %p1858_p11 = pnand %p1857_p10, %p2161_p1  ;;  %s124_s23 = int_to_ptr.hbm [resolvable:$true] %s123_s23 }
  0x1a   : > { %4205 = sst [smem:[#allocation22_spill]] %s4303_s25  ;;  %p69_p0 = scmp.eq.s32.totalorder %s2085_s14, 0 }
  0x1b   : > { %1860 = dma.hbm_to_smem (!%p1858_p11), %s124_s23, 16, %s2087_s27, [#allocation9]  }
  0x1c   : > { %s56_s28 = ssub.s32 %s2081_s13, %s4303_s25  ;;  %p1870_p3 = scmp.lt.s32.totalorder %s2085_s14, 2 }
  0x1d   : > { %p59_p5 = scmp.eq.s32.totalorder %s56_s28, 0  ;;  %p70_p7 = por %p69_p0, %p68_p13 }
  0x1e   : > { %p2205_p9 = por %p2165_p2, %p68_p13  ;;  %s134_s30 = sand.u32 1, %s2073_s11  }
  0x1f   : > { %s2211_s3 = scalar_select %p59_p5, %s2073_s11, %s61_s26  }
  0x20   : > { %s4206_s29 = scalar_select %p2205_p9, 1, 0 }
  0x21   : > { %4208 = sst [smem:[#allocation24_spill]] %s2211_s3  ;;  %s1736_s4 = sshll.u32 %s134_s30, 3 }
  0x22   : > { %4207 = sst [smem:[#allocation23_spill]] %s4206_s29  ;;  %s1847_s5 = sshll.u32 %s2081_s13, 3 }
  0x23   : > { %s4209_s1 = sld [smem:[#allocation27_spill]]  ;;  %s138_s15 = scalar_lea.vmem [#allocation10], %s1736_s4 }
  0x24   : > { %s149_s16 = sshll.u32 %s138_s15, 4  ;;  %p1862_p10 = pnand %p1870_p3, %p70_p7  ;;  %s150_s16 = int_to_ptr.vmem [resolvable:$true] %s149_s16 }
  0x25   : > { %s135_s18 = scalar_lea.sflag [#allocation7], %s134_s30 }
  0x27   : > { %158 = sbr.rel (%p2184_p8) target bundleno = 695 (0x2b7), region = 28 }
  0x29   : > { %s145_s8 = scalar_lea.hbm %s4209_s1, %s1847_s5 }
  0x2a   : > { %s147_s21 = sshll.u32 %s145_s8, 4  ;;  %s148_s21 = int_to_ptr.hbm [resolvable:$true] %s147_s21 }
  0x2b   : > { %1864 = dma.hbm_to_vmem [thread:$0]  (!%p1862_p10), %s148_s21, 128, %s150_s16, %s135_s18  }
  0x2c   : > { %2052 = dma.done.wait (%p2161_p1), [#allocation9], 16  }
  0x2d   : > { %2054 = vsyncadd (%p2161_p1), [#allocation9], 4294967280  ;;  %s2226_s22 = sand.u32 1, %s2069_s10  }
  0x2e   : > { %4210 = sst [smem:[#allocation25_spill]] %s2226_s22  ;;  %s1741_s23 = sshll.u32 %s2226_s22, 3 }
  0x2f   : > { %s166_s26 = scalar_lea.sflag [#allocation7], %s2226_s22  ;;  %s169_s27 = scalar_lea.vmem [#allocation10], %s1741_s23 }
  0x30   : > { %2056 = dma.done.wait (%p2171_p4), %s166_s26, 128  }
  0x31   : > { %2058 = vsyncadd (%p2171_p4), %s166_s26, 4294967168 }
  0x32   : > { %175 = sfence }
  0x33   : > { %v192_v0 = vld [vmem:[%s169_s27] sm:$0xff]  ;;  %vm199_vm0 = vcmask 1043456   ;;  %v243_v15 = vlaneseq  ;;  %vm240_vm1 = vcmask 1040384   ;;  %s2088_s17 = smov 80   ;;  %s2089_s19 = smov 112   ;;  %v2103_v49 = vmov 0.0  }
  0x34   : > { %194 = vst [vmem:[#allocation1] ss:$2 sm:$0xff] %v192_v0  ;;  %s2090_s24 = smov 48   ;;  %s2091_s28 = smov 64   ;;  %vm394_vm3 = vcmask 147480   ;;  %vm1616_vm13 = vcmask 130048  }
  0x35   : > { %vm245_vm2 = vcmp.lt.s32.totalorder %v243_v15, 256  ;;  %s2092_s30 = smov 96   ;;  %s2093_s4 = smov 32   ;;  %383 = vst [vmem:[#allocation4] sm:$0xff] %v2103_v49 }
  0x36   : > { %s2094_s5 = smov 16   ;;  %s2095_s6 = smov 99   ;;  %384 = vst [vmem:[#allocation4 + $0x8] sm:$0xff] %v2103_v49 }
  0x37   : > { %s2096_s7 = smov 3   ;;  %s2097_s8 = smov 115   ;;  %385 = vst [vmem:[#allocation4 + $0x10] sm:$0xff] %v2103_v49 }
  0x38   : > { %s2098_s15 = smov 83   ;;  %s2099_s16 = smov 51   ;;  %386 = vst [vmem:[#allocation5] sm:$0xff] %v2103_v49 }
  0x39   : > { %s2100_s21 = smov 67   ;;  %s2101_s18 = smov 35   ;;  %387 = vst [vmem:[#allocation5 + $0x8] sm:$0xff] %v2103_v49 }
  0x3a   : > { %s2102_s23 = smov 19   ;;  %388 = vst [vmem:[#allocation5 + $0x10] sm:$0xff] %v2103_v49  ;;  %s2104_s26 = smov 127  }
  0x3b   : > { %v195_v1 = vld.sshfl [vmem:[#allocation1] sm:$0xff pattern:$0x75316420]  ;;  %v196_v2 = vld.sshfl [vmem:[#allocation1 + $0x8] sm:$0xff pattern:$0x75316420] }
  0x3c   : > { %v200_v3 = vsel %vm199_vm0, %v195_v1, 0.0  ;;  %v207_v4 = vsel %vm199_vm0, %v196_v2, 0.0  ;;  %214 = vst [vmem:[#allocation1] ss:$2 sm:$0xff] %v192_v0  ;;  %s2105_s27 = smov 126   ;;  %s2623_s0 = sld [smem:[#allocation6 + $0x47]] }
  0x3d   : > { %v201_v5 = vrot.slane %v200_v3, 4  ;;  %v208_v6 = vrot.slane %v207_v4, 4  ;;  %s2631_s1 = sld [smem:[#allocation6 + $0x4e]] }
  0x3e   : > { %s2648_s25 = sld [smem:[#allocation6 + $0x55]] }
  0x3f   : > { %v202_v7 = vadd.f32 %v201_v5, %v200_v3  ;;  %v209_v8 = vadd.f32 %v208_v6, %v207_v4  ;;  %s2658_s13 = sld [smem:[#allocation6 + $0x5c]] }
  0x40   : > { %s2680_s3 = sld [smem:[#allocation6 + $0x6]] }
  0x41   : > { %v203_v9 = vrot.slane %v202_v7, 2  ;;  %v210_v10 = vrot.slane %v209_v8, 2  ;;  %s2697_s11 = sld [smem:[#allocation6 + $0x9]] }
  0x42   : > { %s2708_s10 = sld [smem:[#allocation6 + $0x10]] }
  0x43   : > { %v204_v11 = vadd.f32 %v203_v9, %v202_v7  ;;  %v211_v12 = vadd.f32 %v210_v10, %v209_v8  ;;  %v215_v13 = vld.sshfl [vmem:[#allocation1] sm:$0xff pattern:$0x75316420]  ;;  %v216_v14 = vld.sshfl [vmem:[#allocation1 + $0x8] sm:$0xff pattern:$0x75316420] }
  0x44   : > { %v219_v16 = vsel %vm199_vm0, %v215_v13, -inf  ;;  %v226_v17 = vsel %vm199_vm0, %v216_v14, -inf  ;;  %s2717_s14 = sld [smem:[#allocation6 + $0x17]] }
  0x45   : > { %v205_v18 = vrot.slane %v204_v11, 1  ;;  %v212_v19 = vrot.slane %v211_v12, 1  ;;  %v220_v20 = vrot.slane %v219_v16, 4  ;;  %v227_v21 = vrot.slane %v226_v17, 4  ;;  %s2731_s20 = sld [smem:[#allocation6 + $0x37]] }
  0x46   : > { %s2742_s9 = sld [smem:[#allocation6 + $0x1e]] }
  0x47   : > { %v206_v22 = vadd.f32 %v205_v18, %v204_v11  ;;  %v213_v23 = vadd.f32 %v212_v19, %v211_v12  ;;  %v221_v24 = vmax.f32 %v219_v16, %v220_v20  ;;  %v228_v25 = vmax.f32 %v226_v17, %v227_v21  ;;  %s2748_s29 = sld [smem:[#allocation6 + $0x25]] }
  0x48   : > { %s2758_s2 = sld [smem:[#allocation6 + $0x2c]] }
  0x49   : > { %v239_v26 = vrot.slane %v213_v23, 7  ;;  %v222_v27 = vrot.slane %v221_v24, 2  ;;  %v229_v28 = vrot.slane %v228_v25, 2  ;;  %s2791_s12 = sld [smem:[#allocation6 + $0x3a]] }
  0x4a   : > { %s2814_s22 = sld [smem:[#allocation6 + $0x48]] }
  0x4b   : > { %v241_v29 = vsel %vm240_vm1, %v206_v22, %v239_v26  ;;  %v223_v30 = vmax.f32 %v221_v24, %v222_v27  ;;  %v230_v31 = vmax.f32 %v228_v25, %v229_v28 }
  0x4c   : > { %247 = vst.msk [vmem:[#allocation2] sm:$0x3] %vm245_vm2, %v241_v29 }
  0x4d   : > { %v224_v32 = vrot.slane %v223_v30, 1  ;;  %v231_v33 = vrot.slane %v230_v31, 1 }
  0x4f   : > { %v225_v34 = vmax.f32 %v223_v30, %v224_v32  ;;  %v232_v35 = vmax.f32 %v230_v31, %v231_v33 }
  0x51   : > { %v250_v36 = vrot.slane %v232_v35, 7 }
  0x53   : > { %v380_v37 = vld [vmem:[#allocation2] sm:$0x3]  ;;  %v251_v38 = vsel %vm240_vm1, %v225_v34, %v250_v36 }
  0x54   : > { %v381_v39 = vmul.f32 0.25, %v380_v37  ;;  %253 = vst.msk [vmem:[#allocation3] sm:$0x3] %vm245_vm2, %v251_v38 }
  0x56   : > { %502 = vrot.lane.b32.xlu1 %v381_v39, %s2088_s17  ;;  %470 = vrot.lane.b32.xlu0 %v381_v39, %s2089_s19  ;;  %v390_v40 = vperm.slane %v381_v39, 0  ;;  %v458_v42 = vrot.slane %v381_v39, 1 }
  0x57   : > { %534 = vrot.lane.b32.xlu2 %v381_v39, %s2090_s24 }
  0x58   : > { %v459_v43 = vperm.slane %v458_v42, 0 }
  0x5b   : > { %v382_v41 = vld [vmem:[#allocation3] sm:$0x3] }
  0x5c   : > { %v397_v44 = vperm.slane %v382_v41, 0  ;;  %v464_v45 = vrot.slane %v382_v41, 1 }
  0x5e   : > { %518 = vrot.lane.b32.xlu1 %v381_v39, %s2091_s28  ;;  %486 = vrot.lane.b32.xlu0 %v381_v39, %s2092_s30  ;;  %v465_v46 = vperm.slane %v464_v45, 0 }
  0x5f   : > { %550 = vrot.lane.b32.xlu2 %v381_v39, %s2093_s4 }
  0x66   : > { %566 = vrot.lane.b32.xlu0 %v381_v39, %s2094_s5  ;;  %410 = vrot.lane.b32.xlu1 %v390_v40, %s2095_s6 }
  0x67   : > { %391 = vrot.lane.b32.xlu2 %v390_v40, %s2096_s7 }
  0x6e   : > { %478 = vrot.lane.b32.xlu1 %v382_v41, %s2089_s19  ;;  %402 = vrot.lane.b32.xlu0 %v390_v40, %s2097_s8  ;;  %s2107_s19 = smov 124  }
  0x6f   : > { %418 = vrot.lane.b32.xlu2 %v390_v40, %s2098_s15 }
  0x76   : > { %526 = vrot.lane.b32.xlu1 %v382_v41, %s2091_s28  ;;  %510 = vrot.lane.b32.xlu0 %v382_v41, %s2088_s17  ;;  %s2106_s17 = smov 125   ;;  %s2109_s28 = smov 122  }
  0x77   : > { %494 = vrot.lane.b32.xlu2 %v382_v41, %s2092_s30  ;;  %s1791_s30 = sld [smem:[#allocation6 + $0x31]] }
  0x7e   : > { %574 = vrot.lane.b32.xlu1 %v382_v41, %s2094_s5  ;;  %558 = vrot.lane.b32.xlu0 %v382_v41, %s2093_s4  ;;  %s2343_s4 = sld [smem:[#allocation6]] }
  0x7f   : > { %542 = vrot.lane.b32.xlu2 %v382_v41, %s2090_s24  ;;  %s2108_s24 = smov 123   ;;  %s2345_s5 = sld [smem:[#allocation6 + $0x7]] }
  0x86   : > { %434 = vrot.lane.b32.xlu1 %v390_v40, %s2099_s16  ;;  %426 = vrot.lane.b32.xlu0 %v390_v40, %s2100_s21 }
  0x87   : > { %442 = vrot.lane.b32.xlu2 %v390_v40, %s2101_s18 }
  0x8e   : > { %460 = vrot.lane.b32.xlu1 %v459_v43, %s2096_s7  ;;  %450 = vrot.lane.b32.xlu0 %v390_v40, %s2102_s23 }
  0x8f   : > { %414 = vrot.lane.b32.xlu2 %v397_v44, %s2095_s6  ;;  %s2350_s6 = sld [smem:[#allocation6 + $0x38]] }
  0x96   : > { %406 = vrot.lane.b32.xlu1 %v397_v44, %s2097_s8  ;;  %398 = vrot.lane.b32.xlu0 %v397_v44, %s2096_s7  ;;  %s2375_s8 = sld [smem:[#allocation6 + $0x3f]] }
  0x97   : > { %438 = vrot.lane.b32.xlu2 %v397_v44, %s2099_s16  ;;  %s2401_s16 = sld [smem:[#allocation6 + $0x46]] }
  0x9e   : > { %430 = vrot.lane.b32.xlu1 %v397_v44, %s2100_s21  ;;  %422 = vrot.lane.b32.xlu0 %v397_v44, %s2098_s15  ;;  %s2391_s15 = sld [smem:[#allocation6 + $0x15]] }
  0x9f   : > { %466 = vrot.lane.b32.xlu2 %v465_v46, %s2096_s7  ;;  %s2416_s21 = sld [smem:[#allocation6 + $0x1c]] }
  0xa6   : > { %454 = vrot.lane.b32.xlu1 %v397_v44, %s2102_s23  ;;  %446 = vrot.lane.b32.xlu0 %v397_v44, %s2101_s18  ;;  %s2426_s18 = sld [smem:[#allocation6 + $0x4d]] }
  0xa7   : > { %s2443_s23 = sld [smem:[#allocation6 + $0x23]] }
  0xb1   : > { %v535_v47 = vpop.permute.xlu2 %534 }
  0xb2   : > { %v536_v4 = vrot.slane %v535_v47, 1 }
  0xb4   : > { %v537_v10 = vperm.slane %v536_v4, 0 }
  0xb9   : > { %v551_v48 = vpop.permute.xlu2 %550 }
  0xba   : > { %v552_v58 = vrot.slane %v551_v48, 1 }
  0xbc   : > { %v553_v61 = vperm.slane %v552_v58, 0 }
  0xc1   : > { %v392_v50 = vpop.permute.xlu2 %391 }
  0xc2   : > { %395 = vst.msk [vmem:[#allocation4 + $0x3] sm:$0x1] %vm394_vm3, %v392_v50 }
  0xc8   : > { %v503_v51 = vpop.permute.xlu1 %502  ;;  %v471_v52 = vpop.permute.xlu0 %470 }
  0xc9   : > { %v504_v53 = vrot.slane %v503_v51, 1  ;;  %v472_v54 = vrot.slane %v471_v52, 1  ;;  %v419_v55 = vpop.permute.xlu2 %418 }
  0xca   : > { %421 = vst.msk [vmem:[#allocation4 + $0x6] sm:$0x1] %vm394_vm3, %v419_v55 }
  0xcb   : > { %v505_v56 = vperm.slane %v504_v53, 0  ;;  %v473_v57 = vperm.slane %v472_v54, 0 }
  0xcd   : > { %506 = vrot.lane.b32.xlu1 %v505_v56, %s2096_s7  ;;  %474 = vrot.lane.b32.xlu2 %v473_v57, %s2096_s7 }
  0xd0   : > { %v519_v59 = vpop.permute.xlu1 %518  ;;  %v487_v60 = vpop.permute.xlu0 %486 }
  0xd1   : > { %v520_v62 = vrot.slane %v519_v59, 1  ;;  %v488_v63 = vrot.slane %v487_v60, 1  ;;  %v495_v0 = vpop.permute.xlu2 %494 }
  0xd2   : > { %v496_v3 = vrot.slane %v495_v0, 1 }
  0xd3   : > { %v521_v1 = vperm.slane %v520_v62, 0  ;;  %v489_v2 = vperm.slane %v488_v63, 0 }
  0xd4   : > { %v497_v8 = vperm.slane %v496_v3, 0  ;;  %v593_v3 = vstv %s1791_s30  ;;  %s2497_s30 = sld [smem:[#allocation6 + $0x32]] }
  0xd5   : > { %554 = vrot.lane.b32.xlu1 %v553_v61, %s2096_s7  ;;  %490 = vrot.lane.b32.xlu0 %v489_v2, %s2096_s7 }
  0xd6   : > { %522 = vrot.lane.b32.xlu2 %v521_v1, %s2096_s7  ;;  %v2348_v1 = vshrl.u32 %v243_v15, 7  ;;  %v588_v15 = vstv %s2343_s4  ;;  %s2500_s4 = sld [smem:[#allocation6 + $0x2]] }
  0xd8   : > { %v567_v5 = vpop.permute.xlu0 %566  ;;  %v411_v6 = vpop.permute.xlu1 %410  ;;  %vm603_vm4 = vcmp.lt.s32.totalorder %v2348_v1, 7  ;;  %vm624_vm5 = vcmp.lt.s32.totalorder %v2348_v1, 6  ;;  %vm645_vm6 = vcmp.lt.s32.totalorder %v2348_v1, 5  ;;  %vm666_vm7 = vcmp.lt.s32.totalorder %v2348_v1, 4 }
  0xd9   : > { %v568_v7 = vrot.slane %v567_v5, 1  ;;  %413 = vst.msk [vmem:[#allocation4 + $0x5] sm:$0x1] %vm394_vm3, %v411_v6  ;;  %v543_v9 = vpop.permute.xlu2 %542  ;;  %v611_v6 = vstv %s2345_s5  ;;  %vm687_vm8 = vcmp.lt.s32.totalorder %v2348_v1, 3  ;;  %vm708_vm9 = vcmp.lt.s32.totalorder %v2348_v1, 2  ;;  %s2507_s5 = sld [smem:[#allocation6 + $0x33]] }
  0xda   : > { %v544_v12 = vrot.slane %v543_v9, 1 }
  0xdb   : > { %v569_v11 = vperm.slane %v568_v7, 0 }
  0xdc   : > { %v545_v17 = vperm.slane %v544_v12, 0 }
  0xdd   : > { %538 = vrot.lane.b32.xlu0 %v537_v10, %s2096_s7  ;;  %498 = vrot.lane.b32.xlu1 %v497_v8, %s2096_s7 }
  0xde   : > { %570 = vrot.lane.b32.xlu2 %v569_v11, %s2096_s7  ;;  %v616_v11 = vstv %s2350_s6  ;;  %s2515_s6 = sld [smem:[#allocation6 + $0x34]] }
  0xe0   : > { %v479_v13 = vpop.permute.xlu1 %478  ;;  %v403_v14 = vpop.permute.xlu0 %402 }
  0xe1   : > { %v480_v16 = vrot.slane %v479_v13, 1  ;;  %405 = vst.msk [vmem:[#allocation4 + $0x4] sm:$0x1] %vm394_vm3, %v403_v14  ;;  %v443_v18 = vpop.permute.xlu2 %442 }
  0xe2   : > { %445 = vst.msk [vmem:[#allocation4 + $0x9] sm:$0x1] %vm394_vm3, %v443_v18 }
  0xe3   : > { %v481_v19 = vperm.slane %v480_v16, 0 }
  0xe5   : > { %482 = vrot.lane.b32.xlu0 %v481_v19, %s2096_s7  ;;  %546 = vrot.lane.b32.xlu1 %v545_v17, %s2096_s7 }
  0xe8   : > { %v527_v20 = vpop.permute.xlu1 %526  ;;  %v511_v21 = vpop.permute.xlu0 %510 }
  0xe9   : > { %v528_v22 = vrot.slane %v527_v20, 1  ;;  %v512_v23 = vrot.slane %v511_v21, 1  ;;  %v415_v24 = vpop.permute.xlu2 %414 }
  0xea   : > { %417 = vst.msk [vmem:[#allocation5 + $0x5] sm:$0x1] %vm394_vm3, %v415_v24 }
  0xeb   : > { %v529_v25 = vperm.slane %v528_v22, 0  ;;  %v513_v26 = vperm.slane %v512_v23, 0 }
  0xed   : > { %530 = vrot.lane.b32.xlu0 %v529_v25, %s2096_s7  ;;  %514 = vrot.lane.b32.xlu2 %v513_v26, %s2096_s7 }
  0xf0   : > { %v575_v27 = vpop.permute.xlu1 %574  ;;  %v559_v28 = vpop.permute.xlu0 %558 }
  0xf1   : > { %v576_v29 = vrot.slane %v575_v27, 1  ;;  %v560_v30 = vrot.slane %v559_v28, 1  ;;  %v439_v35 = vpop.permute.xlu2 %438 }
  0xf2   : > { %441 = vst.msk [vmem:[#allocation5 + $0x8] sm:$0x1] %vm394_vm3, %v439_v35 }
  0xf3   : > { %v577_v31 = vperm.slane %v576_v29, 0  ;;  %v561_v32 = vperm.slane %v560_v30, 0 }
  0xf5   : > { %578 = vrot.lane.b32.xlu0 %v577_v31, %s2096_s7  ;;  %562 = vrot.lane.b32.xlu2 %v561_v32, %s2096_s7  ;;  %s2360_s7 = sld [smem:[#allocation6 + $0xe]] }
  0xf8   : > { %v435_v33 = vpop.permute.xlu1 %434  ;;  %v427_v34 = vpop.permute.xlu0 %426 }
  0xf9   : > { %437 = vst.msk [vmem:[#allocation4 + $0x8] sm:$0x1] %vm394_vm3, %v435_v33  ;;  %v467_v39 = vpop.permute.xlu2 %466 }
  0xfa   : > { %429 = vst.msk [vmem:[#allocation4 + $0x7] sm:$0x1] %vm394_vm3, %v427_v34 }
  0xfb   : > { %469 = vst.msk [vmem:[#allocation5 + $0xb] sm:$0x1] %vm394_vm3, %v467_v39  ;;  %v632_v28 = vstv %s2360_s7  ;;  %s2517_s7 = sld [smem:[#allocation6 + $0x8]] }
 0x100   : > { %v461_v36 = vpop.permute.xlu1 %460  ;;  %v451_v37 = vpop.permute.xlu0 %450 }
 0x101   : > { %v2266_v38 = vld [vmem:[#allocation4] sm:$0xff]  ;;  %463 = vst.msk [vmem:[#allocation4 + $0xb] sm:$0x1] %vm394_vm3, %v461_v36 }
 0x102   : > { %453 = vst.msk [vmem:[#allocation4 + $0xa] sm:$0x1] %vm394_vm3, %v451_v37  ;;  %726 = vrot.lane.b32.xlu1 %v2266_v38, %s2104_s26  ;;  %v598_v4 = vrot.slane %v2266_v38, 1  ;;  %v589_v16 = vmul.f32 %v588_v15, %v2266_v38  ;;  %v621_v23 = vrot.slane %v2266_v38, 2  ;;  %v637_v37 = vstv %s2375_s8  ;;  %s2525_s8 = sld [smem:[#allocation6 + $0xf]] }
 0x108   : > { %v407_v40 = vpop.permute.xlu1 %406  ;;  %v399_v41 = vpop.permute.xlu0 %398 }
 0x109   : > { %409 = vst.msk [vmem:[#allocation5 + $0x4] sm:$0x1] %vm394_vm3, %v407_v40 }
 0x10a   : > { %401 = vst.msk [vmem:[#allocation5 + $0x3] sm:$0x1] %vm394_vm3, %v399_v41 }
 0x110   : > { %v431_v42 = vpop.permute.xlu1 %430  ;;  %v423_v43 = vpop.permute.xlu0 %422 }
 0x111   : > { %433 = vst.msk [vmem:[#allocation5 + $0x7] sm:$0x1] %vm394_vm3, %v431_v42 }
 0x112   : > { %425 = vst.msk [vmem:[#allocation5 + $0x6] sm:$0x1] %vm394_vm3, %v423_v43 }
 0x118   : > { %v455_v44 = vpop.permute.xlu1 %454  ;;  %v447_v46 = vpop.permute.xlu0 %446 }
 0x119   : > { %v2277_v45 = vld [vmem:[#allocation5] sm:$0xff]  ;;  %457 = vst.msk [vmem:[#allocation5 + $0xa] sm:$0x1] %vm394_vm3, %v455_v44 }
 0x11a   : > { %732 = vrot.lane.b32.xlu1 %v2277_v45, %s2104_s26  ;;  %449 = vst.msk [vmem:[#allocation5 + $0x9] sm:$0x1] %vm394_vm3, %v447_v46  ;;  %v606_v8 = vrot.slane %v2277_v45, 1  ;;  %v594_v10 = vmul.f32 %v593_v3, %v2277_v45  ;;  %v627_v36 = vrot.slane %v2277_v45, 2 }
 0x11c   : > { %v596_v20 = vadd.f32 %v594_v10, %v589_v16  ;;  %v663_v10 = vrot.slane %v2266_v38, 4 }
 0x122   : > { %868 = vrot.lane.b32.xlu1 %v2266_v38, %s2105_s27 }
 0x127   : > { %v475_v47 = vpop.permute.xlu2 %474 }
 0x128   : > { %477 = vst.msk [vmem:[#allocation4 + $0xc] sm:$0x1] %vm394_vm3, %v475_v47 }
 0x12a   : > { %874 = vrot.lane.b32.xlu1 %v2277_v45, %s2105_s27 }
 0x130   : > { %v523_v48 = vpop.permute.xlu2 %522 }
 0x131   : > { %525 = vst.msk [vmem:[#allocation4 + $0xf] sm:$0x1] %vm394_vm3, %v523_v48  ;;  %v642_v48 = vrot.slane %v2266_v38, 3 }
 0x132   : > { %1010 = vrot.lane.b32.xlu1 %v2266_v38, %s2106_s17 }
 0x138   : > { %v571_v49 = vpop.permute.xlu2 %570 }
 0x139   : > { %573 = vst.msk [vmem:[#allocation4 + $0x12] sm:$0x1] %vm394_vm3, %v571_v49  ;;  %v653_v49 = vstv %s2391_s15  ;;  %s2531_s15 = sld [smem:[#allocation6 + $0x16]] }
 0x13a   : > { %1016 = vrot.lane.b32.xlu1 %v2277_v45, %s2106_s17 }
 0x13f   : > { %v507_v50 = vpop.permute.xlu1 %506 }
 0x140   : > { %509 = vst.msk [vmem:[#allocation4 + $0xe] sm:$0x1] %vm394_vm3, %v507_v50 }
 0x142   : > { %1152 = vrot.lane.b32.xlu1 %v2266_v38, %s2107_s19 }
 0x147   : > { %v555_v51 = vpop.permute.xlu1 %554  ;;  %v491_v52 = vpop.permute.xlu0 %490 }
 0x148   : > { %557 = vst.msk [vmem:[#allocation4 + $0x11] sm:$0x1] %vm394_vm3, %v555_v51  ;;  %v515_v53 = vpop.permute.xlu2 %514 }
 0x149   : > { %493 = vst.msk [vmem:[#allocation4 + $0xd] sm:$0x1] %vm394_vm3, %v491_v52 }
 0x14a   : > { %1158 = vrot.lane.b32.xlu1 %v2277_v45, %s2107_s19  ;;  %517 = vst.msk [vmem:[#allocation5 + $0xe] sm:$0x1] %vm394_vm3, %v515_v53 }
 0x14f   : > { %v539_v54 = vpop.permute.xlu0 %538  ;;  %v499_v55 = vpop.permute.xlu1 %498 }
 0x150   : > { %v2302_v56 = vld [vmem:[#allocation4 + $0x8] sm:$0xff]  ;;  %541 = vst.msk [vmem:[#allocation4 + $0x10] sm:$0x1] %vm394_vm3, %v539_v54  ;;  %v563_v57 = vpop.permute.xlu2 %562 }
 0x151   : > { %728 = vrot.lane.b32.xlu2 %v2302_v56, %s2104_s26  ;;  %501 = vst.msk [vmem:[#allocation5 + $0xd] sm:$0x1] %vm394_vm3, %v499_v55  ;;  %v599_v2 = vrot.slane %v2302_v56, 1  ;;  %v622_v19 = vrot.slane %v2302_v56, 2  ;;  %v590_v22 = vmul.f32 %v588_v15, %v2302_v56  ;;  %v643_v42 = vrot.slane %v2302_v56, 3 }
 0x152   : > { %1294 = vrot.lane.b32.xlu1 %v2266_v38, %s2108_s24  ;;  %565 = vst.msk [vmem:[#allocation5 + $0x11] sm:$0x1] %vm394_vm3, %v563_v57 }
 0x153   : > { %v605_v7 = vsel %vm603_vm4, %v598_v4, %v599_v2  ;;  %v626_v29 = vsel %vm624_vm5, %v621_v23, %v622_v19  ;;  %v647_v52 = vsel %vm645_vm6, %v642_v48, %v643_v42 }
 0x154   : > { %v612_v17 = vmul.f32 %v611_v6, %v605_v7  ;;  %v633_v39 = vmul.f32 %v632_v28, %v626_v29 }
 0x156   : > { %v614_v26 = vadd.f32 %v612_v17, %v596_v20 }
 0x157   : > { %v2311_v58 = vld [vmem:[#allocation4 + $0x10] sm:$0xff]  ;;  %v483_v59 = vpop.permute.xlu0 %482  ;;  %v547_v60 = vpop.permute.xlu1 %546 }
 0x158   : > { %485 = vst.msk [vmem:[#allocation5 + $0xc] sm:$0x1] %vm394_vm3, %v483_v59  ;;  %730 = vrot.lane.b32.xlu0 %v2311_v58, %s2104_s26  ;;  %v600_v13 = vrot.slane %v2311_v58, 1  ;;  %v623_v31 = vrot.slane %v2311_v58, 2  ;;  %v644_v55 = vrot.slane %v2311_v58, 3 }
 0x159   : > { %549 = vst.msk [vmem:[#allocation5 + $0x10] sm:$0x1] %vm394_vm3, %v547_v60  ;;  %v648_v60 = vrot.slane %v2277_v45, 3 }
 0x15a   : > { %1300 = vrot.lane.b32.xlu1 %v2277_v45, %s2108_s24  ;;  %v604_v24 = vsel %vm603_vm4, %v599_v2, %v600_v13  ;;  %v625_v43 = vsel %vm624_vm5, %v622_v19, %v623_v31  ;;  %v646_v15 = vsel %vm645_vm6, %v643_v42, %v644_v55  ;;  %v705_v55 = vrot.slane %v2266_v38, 6 }
 0x15b   : > { %v613_v34 = vmul.f32 %v611_v6, %v604_v24  ;;  %v634_v51 = vmul.f32 %v632_v28, %v625_v43  ;;  %v655_v13 = vmul.f32 %v653_v49, %v646_v15  ;;  %v711_v15 = vrot.slane %v2277_v45, 6 }
 0x15f   : > { %v531_v61 = vpop.permute.xlu0 %530 }
 0x160   : > { %533 = vst.msk [vmem:[#allocation5 + $0xf] sm:$0x1] %vm394_vm3, %v531_v61  ;;  %v658_v61 = vstv %s2401_s16  ;;  %s2533_s16 = sld [smem:[#allocation6 + $0x1d]] }
 0x162   : > { %1436 = vrot.lane.b32.xlu1 %v2266_v38, %s2109_s28 }
 0x167   : > { %v2322_v62 = vld [vmem:[#allocation5 + $0x8] sm:$0xff]  ;;  %v579_v63 = vpop.permute.xlu0 %578 }
 0x168   : > { %581 = vst.msk [vmem:[#allocation5 + $0x12] sm:$0x1] %vm394_vm3, %v579_v63  ;;  %734 = vrot.lane.b32.xlu2 %v2322_v62, %s2104_s26  ;;  %v607_v5 = vrot.slane %v2322_v62, 1  ;;  %v595_v18 = vmul.f32 %v593_v3, %v2322_v62  ;;  %v628_v30 = vrot.slane %v2322_v62, 2  ;;  %v649_v53 = vrot.slane %v2322_v62, 3 }
 0x169   : > { %v654_v63 = vmul.f32 %v653_v49, %v647_v52  ;;  %v670_v16 = vrot.slane %v2322_v62, 4 }
 0x16a   : > { %1442 = vrot.lane.b32.xlu1 %v2277_v45, %s2109_s28  ;;  %v610_v12 = vsel %vm603_vm4, %v606_v8, %v607_v5  ;;  %v597_v27 = vadd.f32 %v595_v18, %v590_v22  ;;  %v631_v41 = vsel %vm624_vm5, %v627_v36, %v628_v30  ;;  %v652_v4 = vsel %vm645_vm6, %v648_v60, %v649_v53 }
 0x16b   : > { %v617_v21 = vmul.f32 %v616_v11, %v610_v12  ;;  %v638_v50 = vmul.f32 %v637_v37, %v631_v41  ;;  %v659_v12 = vmul.f32 %v658_v61, %v652_v4  ;;  %v665_v18 = vrot.slane %v2311_v58, 4 }
 0x16c   : > { %v615_v40 = vadd.f32 %v613_v34, %v597_v27  ;;  %v679_v22 = vstv %s2426_s18  ;;  %v695_v34 = vstv %s2443_s23  ;;  %v686_v41 = vrot.slane %v2311_v58, 5  ;;  %s2541_s18 = sld [smem:[#allocation6 + $0x4]] }
 0x16d   : > { %v619_v32 = vadd.f32 %v617_v21, %v614_v26  ;;  %v669_v21 = vrot.slane %v2277_v45, 4  ;;  %v685_v26 = vrot.slane %v2302_v56, 5  ;;  %s2545_s23 = sld [smem:[#allocation6 + $0x2b]] }
 0x16f   : > { %v2329_v0 = vld [vmem:[#allocation5 + $0x10] sm:$0xff]  ;;  %v635_v46 = vadd.f32 %v633_v39, %v619_v32  ;;  %v684_v32 = vrot.slane %v2266_v38, 5  ;;  %v691_v39 = vrot.slane %v2322_v62, 5 }
 0x170   : > { %870 = vrot.lane.b32.xlu2 %v2302_v56, %s2105_s27  ;;  %736 = vrot.lane.b32.xlu0 %v2329_v0, %s2104_s26  ;;  %v608_v14 = vrot.slane %v2329_v0, 1  ;;  %v629_v44 = vrot.slane %v2329_v0, 2  ;;  %v650_v6 = vrot.slane %v2329_v0, 3  ;;  %s2453_s26 = sld [smem:[#allocation6 + $0x54]]  ;;  %v671_v28 = vrot.slane %v2329_v0, 4 }
 0x171   : > { %v640_v57 = vadd.f32 %v638_v50, %v635_v46  ;;  %v706_v50 = vrot.slane %v2302_v56, 6  ;;  %v692_v52 = vrot.slane %v2329_v0, 5 }
 0x172   : > { %v609_v25 = vsel %vm603_vm4, %v607_v5, %v608_v14  ;;  %v630_v54 = vsel %vm624_vm5, %v628_v30, %v629_v44  ;;  %v664_v5 = vrot.slane %v2302_v56, 4  ;;  %v651_v17 = vsel %vm645_vm6, %v649_v53, %v650_v6 }
 0x173   : > { %v618_v35 = vmul.f32 %v616_v11, %v609_v25  ;;  %v639_v3 = vmul.f32 %v637_v37, %v630_v54  ;;  %v656_v7 = vadd.f32 %v654_v63, %v640_v57  ;;  %v674_v11 = vstv %s2416_s21  ;;  %s2536_s21 = sld [smem:[#allocation6 + $0x24]] }
 0x174   : > { %v2367_v9 = vpop.permute.xlu1 %726  ;;  %v668_v14 = vsel %vm666_vm7, %v663_v10, %v664_v5  ;;  %v660_v24 = vmul.f32 %v658_v61, %v651_v17  ;;  %v673_v25 = vsel %vm666_vm7, %v669_v21, %v670_v16  ;;  %v667_v27 = vsel %vm666_vm7, %v664_v5, %v665_v18 }
 0x175   : > { %v620_v47 = vadd.f32 %v618_v35, %v615_v40  ;;  %v661_v19 = vadd.f32 %v659_v12, %v656_v7  ;;  %v675_v23 = vmul.f32 %v674_v11, %v668_v14  ;;  %v680_v35 = vmul.f32 %v679_v22, %v673_v25 }
 0x176   : > { %v676_v36 = vmul.f32 %v674_v11, %v667_v27  ;;  %v689_v37 = vsel %vm687_vm8, %v684_v32, %v685_v26  ;;  %v672_v40 = vsel %vm666_vm7, %v670_v16, %v671_v28  ;;  %v690_v44 = vrot.slane %v2277_v45, 5 }
 0x177   : > { %v636_v59 = vadd.f32 %v634_v51, %v620_v47  ;;  %v677_v29 = vadd.f32 %v675_v23, %v661_v19  ;;  %v700_v46 = vstv %s2453_s26  ;;  %v696_v47 = vmul.f32 %v695_v34, %v689_v37  ;;  %s2556_s26 = sld [smem:[#allocation6 + $0x35]] }
 0x178   : > { %876 = vrot.lane.b32.xlu2 %v2322_v62, %s2105_s27  ;;  %872 = vrot.lane.b32.xlu0 %v2311_v58, %s2105_s27  ;;  %v681_v48 = vmul.f32 %v679_v22, %v672_v40  ;;  %v694_v49 = vsel %vm687_vm8, %v690_v44, %v691_v39  ;;  %v688_v51 = vsel %vm687_vm8, %v685_v26, %v686_v41  ;;  %v713_v12 = vrot.slane %v2329_v0, 6 }
 0x179   : > { %v641_v8 = vadd.f32 %v639_v3, %v636_v59  ;;  %v682_v42 = vadd.f32 %v680_v35, %v677_v29  ;;  %v701_v59 = vmul.f32 %v700_v46, %v694_v49  ;;  %v697_v61 = vmul.f32 %v695_v34, %v688_v51 }
 0x17a   : > { %v710_v63 = vsel %vm708_vm9, %v705_v55, %v706_v50  ;;  %v693_v38 = vsel %vm687_vm8, %v691_v39, %v692_v52  ;;  %v707_v3 = vrot.slane %v2311_v58, 6  ;;  %v743_v18 = vstv %s2497_s30  ;;  %s2804_s30 = sld [smem:[#allocation6 + $0x41]] }
 0x17b   : > { %v657_v20 = vadd.f32 %v655_v13, %v641_v8  ;;  %v698_v53 = vadd.f32 %v696_v47, %v682_v42  ;;  %v702_v7 = vmul.f32 %v700_v46, %v693_v38  ;;  %v880_v22 = vstv %s2500_s4  ;;  %s3346_s4 = sld [smem:[#allocation6 + $0x57]] }
 0x17c   : > { %v709_v11 = vsel %vm708_vm9, %v706_v50, %v707_v3  ;;  %v748_v23 = vrot.slane %v2367_v9, 1  ;;  %v788_v27 = vrot.slane %v2367_v9, 3  ;;  %v808_v28 = vrot.slane %v2367_v9, 4 }
 0x17d   : > { %v662_v31 = vadd.f32 %v660_v24, %v657_v20  ;;  %v703_v4 = vadd.f32 %v701_v59, %v698_v53  ;;  %v768_v24 = vrot.slane %v2367_v9, 2  ;;  %v828_v29 = vrot.slane %v2367_v9, 5 }
 0x17e   : > { %v4179_v35 = vstv %s2507_s5  ;;  %v4169_v47 = vstv %s2515_s6  ;;  %v778_v49 = vstv %s2525_s8  ;;  %v798_v50 = vstv %s2531_s15  ;;  %s3457_s8 = sld [smem:[#allocation6 + $0x12]] }
 0x17f   : > { %v678_v43 = vadd.f32 %v676_v36, %v662_v31  ;;  %v848_v31 = vrot.slane %v2367_v9, 6  ;;  %v4184_v52 = vstv %s2533_s16  ;;  %v4183_v53 = vstv %s2536_s21  ;;  %s3479_s15 = sld [smem:[#allocation6 + $0x43]] }
 0x180   : > { %1012 = vrot.lane.b32.xlu2 %v2302_v56, %s2106_s17  ;;  %878 = vrot.lane.b32.xlu0 %v2329_v0, %s2105_s27  ;;  %s2470_s27 = sld [smem:[#allocation6 + $0x2a]]  ;;  %v920_v59 = vstv %s2708_s10 }
 0x181   : > { %v683_v54 = vadd.f32 %v681_v48, %v678_v43  ;;  %v4180_v48 = vstv %s2541_s18  ;;  %s3208_s10 = sld [smem:[#allocation6 + $0x3b]] }
 0x183   : > { %v699_v5 = vadd.f32 %v697_v61, %v683_v54  ;;  %v4182_v54 = vstv %s2545_s23 }
 0x185   : > { %v704_v13 = vadd.f32 %v702_v7, %v699_v5 }
 0x186   : > { %v716_v57 = vstv %s2470_s27  ;;  %s2605_s27 = sld [smem:[#allocation6 + $0x39]] }
 0x187   : > { %v717_v6 = vmul.f32 %v716_v57, %v710_v63  ;;  %v718_v17 = vmul.f32 %v716_v57, %v709_v11 }
 0x188   : > { %1018 = vrot.lane.b32.xlu2 %v2322_v62, %s2106_s17  ;;  %1014 = vrot.lane.b32.xlu0 %v2311_v58, %s2106_s17 }
 0x189   : > { %v719_v45 = vadd.f32 %v717_v6, %v703_v4  ;;  %v720_v20 = vadd.f32 %v718_v17, %v704_v13  ;;  %v4181_v4 = vstv %s2556_s26 }
 0x18c   : > { %v2398_v33 = vpop.permute.xlu1 %732 }
 0x18d   : > { %v744_v25 = vmul.f32 %v743_v18, %v2398_v33  ;;  %v753_v39 = vrot.slane %v2398_v33, 1  ;;  %v773_v40 = vrot.slane %v2398_v33, 2  ;;  %v793_v41 = vrot.slane %v2398_v33, 3 }
 0x18e   : > { %v813_v42 = vrot.slane %v2398_v33, 4  ;;  %v833_v44 = vrot.slane %v2398_v33, 5  ;;  %v853_v46 = vrot.slane %v2398_v33, 6 }
 0x190   : > { %1154 = vrot.lane.b32.xlu2 %v2302_v56, %s2107_s19  ;;  %1020 = vrot.lane.b32.xlu0 %v2329_v0, %s2106_s17  ;;  %s2481_s17 = sld [smem:[#allocation6 + $0x5b]] }
 0x194   : > { %v2429_v2 = vpop.permute.xlu1 %868 }
 0x195   : > { %v2584_v51 = vmul.f32 %v880_v22, %v2429_v2 }
 0x196   : > { %v721_v8 = vstv %s2481_s17  ;;  %s2613_s17 = sld [smem:[#allocation6 + $0x40]] }
 0x198   : > { %1160 = vrot.lane.b32.xlu2 %v2322_v62, %s2107_s19  ;;  %1156 = vrot.lane.b32.xlu0 %v2311_v58, %s2107_s19 }
 0x19c   : > { %v2463_v30 = vpop.permute.xlu1 %874  ;;  %v783_v6 = vstv %s2613_s17  ;;  %s3589_s17 = sld [smem:[#allocation6 + $0x58]] }
 0x19d   : > { %v2600_v38 = vmul.f32 %v4179_v35, %v2463_v30 }
 0x1a0   : > { %1296 = vrot.lane.b32.xlu2 %v2302_v56, %s2108_s24  ;;  %1162 = vrot.lane.b32.xlu0 %v2329_v0, %s2107_s19  ;;  %s2490_s19 = sld [smem:[#allocation6 + $0x1]] }
 0x1a4   : > { %v2502_v60 = vpop.permute.xlu1 %1010 }
 0x1a6   : > { %v738_v14 = vstv %s2490_s19  ;;  %s2637_s19 = sld [smem:[#allocation6 + $0x36]] }
 0x1a7   : > { %v739_v21 = vmul.f32 %v738_v14, %v2367_v9 }
 0x1a8   : > { %1302 = vrot.lane.b32.xlu2 %v2322_v62, %s2108_s24  ;;  %1298 = vrot.lane.b32.xlu0 %v2311_v58, %s2108_s24 }
 0x1ab   : > { %v2562_v32 = vpop.permute.xlu2 %728 }
 0x1ac   : > { %v749_v7 = vrot.slane %v2562_v32, 1  ;;  %v740_v13 = vmul.f32 %v738_v14, %v2562_v32  ;;  %v789_v17 = vrot.slane %v2562_v32, 3 }
 0x1b0   : > { %1438 = vrot.lane.b32.xlu2 %v2302_v56, %s2109_s28  ;;  %1304 = vrot.lane.b32.xlu0 %v2329_v0, %s2108_s24  ;;  %v712_v56 = vrot.slane %v2322_v62, 6  ;;  %s2512_s24 = sld [smem:[#allocation6 + $0x3]] }
 0x1b2   : > { %v715_v10 = vsel %vm708_vm9, %v711_v15, %v712_v56  ;;  %v714_v19 = vsel %vm708_vm9, %v712_v56, %v713_v12  ;;  %v843_v15 = vstv %s2648_s25  ;;  %s3288_s25 = sld [smem:[#allocation6 + $0x49]] }
 0x1b3   : > { %v722_v16 = vmul.f32 %v721_v8, %v715_v10  ;;  %v723_v26 = vmul.f32 %v721_v8, %v714_v19  ;;  %v809_v19 = vrot.slane %v2562_v32, 4 }
 0x1b5   : > { %v725_v37 = vadd.f32 %v723_v26, %v720_v20  ;;  %v849_v20 = vrot.slane %v2562_v32, 6 }
 0x1b6   : > { %v4167_v36 = vstv %s2512_s24 }
 0x1b7   : > { %v2660_v12 = vadd.f32 %v740_v13, %v725_v37  ;;  %v812_v37 = vsel %vm666_vm7, %v808_v28, %v809_v19  ;;  %v763_v13 = vstv %s2605_s27  ;;  %s3575_s27 = sld [smem:[#allocation6 + $0x27]] }
 0x1b8   : > { %1444 = vrot.lane.b32.xlu2 %v2322_v62, %s2109_s28  ;;  %1440 = vrot.lane.b32.xlu0 %v2311_v58, %s2109_s28  ;;  %v724_v62 = vadd.f32 %v722_v16, %v719_v45  ;;  %v2543_v58 = vpop.permute.xlu1 %1016  ;;  %v2621_v45 = vmul.f32 %v4167_v36, %v2502_v60  ;;  %v769_v16 = vrot.slane %v2562_v32, 2 }
 0x1b9   : > { %v2655_v26 = vmul.f32 %v4169_v47, %v2543_v58  ;;  %v792_v47 = vsel %vm645_vm6, %v788_v27, %v789_v17 }
 0x1ba   : > { %v741_v34 = vadd.f32 %v739_v21, %v724_v62  ;;  %v829_v21 = vrot.slane %v2562_v32, 5 }
 0x1bc   : > { %v2572_v43 = vadd.f32 %v744_v25, %v741_v34  ;;  %v752_v34 = vsel %vm603_vm4, %v748_v23, %v749_v7  ;;  %v772_v23 = vsel %vm624_vm5, %v768_v24, %v769_v16  ;;  %v832_v24 = vsel %vm687_vm8, %v828_v29, %v829_v21 }
 0x1bd   : > { %v852_v29 = vsel %vm708_vm9, %v848_v31, %v849_v20  ;;  %v779_v36 = vmul.f32 %v778_v49, %v772_v23  ;;  %v2729_v11 = vmul.f32 %v4183_v53, %v832_v24  ;;  %v823_v24 = vstv %s2631_s1  ;;  %s3098_s1 = sld [smem:[#allocation6 + $0x56]] }
 0x1be   : > { %v2738_v23 = vmul.f32 %v4182_v54, %v852_v29  ;;  %v863_v29 = vstv %s2658_s13  ;;  %s3124_s13 = sld [smem:[#allocation6 + $0x5d]] }
 0x1c0   : > { %1446 = vrot.lane.b32.xlu0 %v2329_v0, %s2109_s28  ;;  %v758_v0 = vstv %s2517_s7  ;;  %s2586_s28 = sld [smem:[#allocation6 + $0x5]]  ;;  %v2602_v3 = vpop.permute.xlu1 %1152 }
 0x1c1   : > { %v759_v28 = vmul.f32 %v758_v0, %v752_v34  ;;  %v2721_v34 = vmul.f32 %v798_v50, %v792_v47  ;;  %s3444_s7 = sld [smem:[#allocation6 + $0x3c]] }
 0x1c2   : > { %v2611_v8 = vpop.permute.xlu2 %734 }
 0x1c3   : > { %v754_v25 = vrot.slane %v2611_v8, 1  ;;  %v761_v62 = vadd.f32 %v759_v28, %v2572_v43  ;;  %v774_v47 = vrot.slane %v2611_v8, 2  ;;  %v745_v35 = vmul.f32 %v743_v18, %v2611_v8 }
 0x1c4   : > { %v794_v5 = vrot.slane %v2611_v8, 3  ;;  %v814_v61 = vrot.slane %v2611_v8, 4  ;;  %v834_v56 = vrot.slane %v2611_v8, 5  ;;  %v900_v28 = vstv %s2697_s11  ;;  %s3181_s11 = sld [smem:[#allocation6 + $0xa]] }
 0x1c5   : > { %v757_v27 = vsel %vm603_vm4, %v753_v39, %v754_v25  ;;  %v2725_v39 = vmul.f32 %v4184_v52, %v812_v37  ;;  %v803_v37 = vstv %s2623_s0  ;;  %v747_v52 = vadd.f32 %v745_v35, %v2660_v12  ;;  %s3056_s0 = sld [smem:[#allocation6 + $0x4f]] }
 0x1c6   : > { %v4187_v14 = vstv %s2586_s28  ;;  %v764_v9 = vmul.f32 %v763_v13, %v757_v27  ;;  %v2753_v27 = vmul.f32 %v4180_v48, %v2602_v3  ;;  %v817_v35 = vsel %vm666_vm7, %v813_v42, %v814_v61 }
 0x1c8   : > { %v2713_v31 = vpop.permute.xlu1 %1158  ;;  %v766_v63 = vadd.f32 %v764_v9, %v761_v62  ;;  %v777_v62 = vsel %vm624_vm5, %v773_v40, %v774_v47  ;;  %v854_v40 = vrot.slane %v2611_v8, 6 }
 0x1c9   : > { %v2767_v48 = vmul.f32 %v4181_v4, %v2713_v31  ;;  %v784_v18 = vmul.f32 %v783_v6, %v777_v62 }
 0x1ca   : > { %v2786_v10 = vpop.permute.xlu0 %730  ;;  %v781_v9 = vadd.f32 %v779_v36, %v766_v63  ;;  %v797_v36 = vsel %vm645_vm6, %v793_v41, %v794_v5  ;;  %v837_v41 = vsel %vm687_vm8, %v833_v44, %v834_v56  ;;  %v857_v12 = vsel %vm708_vm9, %v853_v46, %v854_v40  ;;  %v2857_v46 = vpop.permute.xlu2 %870 }
 0x1cb   : > { %v750_v57 = vrot.slane %v2786_v10, 1  ;;  %v770_v62 = vrot.slane %v2786_v10, 2  ;;  %v790_v43 = vrot.slane %v2786_v10, 3  ;;  %v804_v53 = vmul.f32 %v803_v37, %v797_v36 }
 0x1cc   : > { %v786_v63 = vadd.f32 %v784_v18, %v781_v9  ;;  %v824_v44 = vmul.f32 %v823_v24, %v817_v35  ;;  %v810_v33 = vrot.slane %v2786_v10, 4  ;;  %v844_v55 = vmul.f32 %v843_v15, %v837_v41 }
 0x1cd   : > { %v830_v36 = vrot.slane %v2786_v10, 5  ;;  %v791_v41 = vsel %vm645_vm6, %v789_v17, %v790_v43  ;;  %v891_v17 = vrot.slane %v2857_v46, 1 }
 0x1ce   : > { %v801_v18 = vadd.f32 %v2721_v34, %v786_v63  ;;  %v771_v34 = vsel %vm624_vm5, %v769_v16, %v770_v62  ;;  %v2883_v16 = vmul.f32 %v880_v22, %v2857_v46 }
 0x1cf   : > { %v780_v54 = vmul.f32 %v778_v49, %v771_v34  ;;  %v831_v49 = vsel %vm687_vm8, %v829_v21, %v830_v36  ;;  %v911_v21 = vrot.slane %v2857_v46, 2 }
 0x1d0   : > { %v2793_v4 = vpop.permute.xlu1 %1294  ;;  %v806_v35 = vadd.f32 %v804_v53, %v801_v18  ;;  %v925_v53 = vstv %s2804_s30  ;;  %v945_v18 = vstv %s2814_s22  ;;  %s3300_s22 = sld [smem:[#allocation6 + $0x1f]] }
 0x1d1   : > { %v2837_v9 = vmul.f32 %v4187_v14, %v2793_v4  ;;  %v751_v14 = vsel %vm603_vm4, %v749_v7, %v750_v57  ;;  %v864_v57 = vmul.f32 %v863_v29, %v857_v12  ;;  %v905_v7 = vstv %s2791_s12  ;;  %s3236_s12 = sld [smem:[#allocation6 + $0x11]] }
 0x1d2   : > { %v760_v42 = vmul.f32 %v758_v0, %v751_v14  ;;  %v850_v12 = vrot.slane %v2786_v10, 6  ;;  %v821_v62 = vadd.f32 %v2725_v39, %v806_v35  ;;  %v811_v10 = vsel %vm666_vm7, %v809_v19, %v810_v33  ;;  %s3628_s30 = sld [smem:[#allocation6 + $0x5f]] }
 0x1d3   : > { %v800_v39 = vmul.f32 %v798_v50, %v791_v41  ;;  %v4212_v35 = vstv %s2536_s21  ;;  %v4213_v41 = vrot.slane %v2429_v2, 1  ;;  %s3510_s21 = sld [smem:[#allocation6 + $0x4a]] }
 0x1d4   : > { %v762_v43 = vadd.f32 %v760_v42, %v747_v52  ;;  %v851_v19 = vsel %vm708_vm9, %v849_v20, %v850_v12  ;;  %v4211_v42 = vstv %s2533_s16  ;;  %v840_v20 = vmul.f32 %v4212_v35, %v831_v49  ;;  %v2940_v49 = vpop.permute.xlu2 %876  ;;  %s3494_s16 = sld [smem:[#allocation6 + $0x19]] }
 0x1d5   : > { %v820_v33 = vmul.f32 %v4211_v42, %v811_v10  ;;  %v4218_v42 = vrot.slane %v2429_v2, 4  ;;  %v936_v35 = vrot.slane %v2940_v49, 3 }
 0x1d8   : > { %v2920_v36 = vpop.permute.xlu1 %1300 }
 0x1e2   : > { %v2871_v63 = vpop.permute.xlu0 %736 }
 0x1e3   : > { %v755_v0 = vrot.slane %v2871_v63, 1  ;;  %v775_v14 = vrot.slane %v2871_v63, 2  ;;  %v795_v50 = vrot.slane %v2871_v63, 3 }
 0x1e5   : > { %v756_v22 = vsel %vm603_vm4, %v754_v25, %v755_v0  ;;  %v776_v52 = vsel %vm624_vm5, %v774_v47, %v775_v14  ;;  %v826_v25 = vadd.f32 %v824_v44, %v821_v62  ;;  %v894_v47 = vsel %vm603_vm4, %v4213_v41, %v891_v17 }
 0x1e6   : > { %v765_v34 = vmul.f32 %v763_v13, %v756_v22  ;;  %v931_v13 = vrot.slane %v2857_v46, 3  ;;  %v951_v44 = vrot.slane %v2857_v46, 4  ;;  %v4214_v0 = vstv %s2545_s23  ;;  %s3565_s23 = sld [smem:[#allocation6 + $0x51]] }
 0x1e7   : > { %v841_v12 = vadd.f32 %v2729_v11, %v826_v25  ;;  %v2934_v14 = vmul.f32 %v4214_v0, %v851_v19  ;;  %v971_v62 = vrot.slane %v2857_v46, 5  ;;  %v785_v22 = vmul.f32 %v783_v6, %v776_v52 }
 0x1e8   : > { %v767_v32 = vadd.f32 %v765_v34, %v762_v43  ;;  %v4188_v43 = vrot.slane %v2857_v46, 6  ;;  %v796_v34 = vsel %vm645_vm6, %v794_v5, %v795_v50  ;;  %v815_v11 = vrot.slane %v2871_v63, 4 }
 0x1e9   : > { %v846_v25 = vadd.f32 %v844_v55, %v841_v12  ;;  %v4215_v19 = vrot.slane %v2429_v2, 2  ;;  %v4216_v6 = vrot.slane %v2429_v2, 3  ;;  %v4217_v5 = vstv %s2637_s19 }
 0x1ea   : > { %v782_v10 = vadd.f32 %v780_v54, %v767_v32  ;;  %v2964_v50 = vmul.f32 %v4217_v5, %v2920_v36  ;;  %v2972_v32 = vsel %vm666_vm7, %v4218_v42, %v951_v44  ;;  %v4219_v0 = vrot.slane %v2429_v2, 5  ;;  %v2988_v5 = vpop.permute.xlu0 %872 }
 0x1eb   : > { %v914_v54 = vsel %vm624_vm5, %v4215_v19, %v911_v21  ;;  %v2959_v52 = vsel %vm645_vm6, %v4216_v6, %v931_v13  ;;  %v861_v12 = vadd.f32 %v2738_v23, %v846_v25  ;;  %v805_v6 = vmul.f32 %v803_v37, %v796_v34 }
 0x1ec   : > { %v787_v55 = vadd.f32 %v785_v22, %v782_v10  ;;  %v2983_v10 = vsel %vm687_vm8, %v4219_v0, %v971_v62  ;;  %v896_v22 = vrot.slane %v2940_v49, 1  ;;  %v4220_v42 = vrot.slane %v2429_v2, 6 }
 0x1ed   : > { %v816_v25 = vsel %vm666_vm7, %v814_v61, %v815_v11  ;;  %v916_v41 = vrot.slane %v2940_v49, 2  ;;  %v4222_v34 = vstv %s2507_s5  ;;  %s3363_s5 = sld [smem:[#allocation6 + $0x2d]] }
 0x1ee   : > { %v802_v19 = vadd.f32 %v800_v39, %v787_v55  ;;  %v2996_v23 = vsel %vm708_vm9, %v4220_v42, %v4188_v43  ;;  %v835_v39 = vrot.slane %v2871_v63, 5  ;;  %v866_v55 = vadd.f32 %v864_v57, %v861_v12 }
 0x1ef   : > { %v4221_v57 = vrot.slane %v2463_v30, 1  ;;  %v956_v12 = vrot.slane %v2940_v49, 4  ;;  %v825_v42 = vmul.f32 %v823_v24, %v816_v25  ;;  %v887_v37 = vmul.f32 %v4222_v34, %v2940_v49 }
 0x1f0   : > { %v807_v0 = vadd.f32 %v805_v6, %v802_v19  ;;  %v883_v61 = vadd.f32 %v2584_v51, %v866_v55  ;;  %v3017_v19 = vpop.permute.xlu1 %1436  ;;  %v836_v51 = vsel %vm687_vm8, %v834_v56, %v835_v39  ;;  %v855_v55 = vrot.slane %v2871_v63, 6 }
 0x1f1   : > { %v899_v11 = vsel %vm603_vm4, %v4221_v57, %v896_v22  ;;  %v901_v57 = vmul.f32 %v900_v28, %v894_v47  ;;  %v996_v24 = vrot.slane %v2940_v49, 6  ;;  %v1458_v56 = vrot.slane %v3017_v19, 1 }
 0x1f2   : > { %v822_v6 = vadd.f32 %v820_v33, %v807_v0  ;;  %v888_v2 = vadd.f32 %v2600_v38, %v883_v61  ;;  %v976_v33 = vrot.slane %v2940_v49, 5  ;;  %v4223_v0 = vstv %s2680_s3 }
 0x1f3   : > { %v3037_v43 = vmul.f32 %v4223_v0, %v3017_v19  ;;  %v906_v38 = vmul.f32 %v905_v7, %v899_v11  ;;  %v4224_v47 = vrot.slane %v2463_v30, 2  ;;  %v4225_v34 = vrot.slane %v2463_v30, 3 }
 0x1f4   : > { %v827_v25 = vadd.f32 %v825_v42, %v822_v6  ;;  %v903_v63 = vadd.f32 %v901_v57, %v888_v2  ;;  %v845_v2 = vmul.f32 %v843_v15, %v836_v51  ;;  %v4226_v11 = vrot.slane %v2463_v30, 4 }
 0x1f5   : > { %v919_v39 = vsel %vm624_vm5, %v4224_v47, %v916_v41  ;;  %v939_v42 = vsel %vm645_vm6, %v4225_v34, %v936_v35  ;;  %v856_v57 = vsel %vm708_vm9, %v854_v40, %v855_v55  ;;  %v4227_v15 = vrot.slane %v2463_v30, 5  ;;  %v3085_v55 = vpop.permute.xlu0 %878 }
 0x1f6   : > { %v842_v61 = vadd.f32 %v840_v20, %v827_v25  ;;  %v959_v6 = vsel %vm666_vm7, %v4226_v11, %v956_v12  ;;  %v921_v20 = vmul.f32 %v920_v59, %v914_v54  ;;  %v908_v25 = vadd.f32 %v906_v38, %v903_v63  ;;  %v3088_v38 = vpop.permute.xlu2 %1012 }
 0x1f7   : > { %v979_v51 = vsel %vm687_vm8, %v4227_v15, %v976_v33  ;;  %v4228_v0 = vrot.slane %v2463_v30, 6  ;;  %v892_v47 = vrot.slane %v2988_v5, 1  ;;  %v926_v30 = vmul.f32 %v925_v53, %v919_v39 }
 0x1f8   : > { %v847_v54 = vadd.f32 %v845_v2, %v842_v61  ;;  %v923_v34 = vadd.f32 %v921_v20, %v908_v25  ;;  %v865_v2 = vmul.f32 %v863_v29, %v856_v57  ;;  %v4229_v63 = vstv %s2717_s14 }
 0x1f9   : > { %v3082_v8 = vsel %vm708_vm9, %v4228_v0, %v996_v24  ;;  %v941_v40 = vmul.f32 %v4229_v63, %v2959_v52  ;;  %v897_v20 = vrot.slane %v3085_v55, 1  ;;  %v4230_v25 = vstv %s2512_s24  ;;  %s3374_s24 = sld [smem:[#allocation6 + $0x5e]] }
 0x1fa   : > { %v862_v61 = vadd.f32 %v2934_v14, %v847_v54  ;;  %v928_v39 = vadd.f32 %v926_v30, %v923_v34  ;;  %v3108_v11 = vmul.f32 %v4230_v25, %v3088_v38  ;;  %v1033_v15 = vrot.slane %v3088_v38, 1 }
 0x1fb   : > { %v4231_v29 = vstv %s2742_s9  ;;  %v893_v54 = vsel %vm603_vm4, %v891_v17, %v892_v47  ;;  %v912_v52 = vrot.slane %v2988_v5, 2  ;;  %v946_v34 = vmul.f32 %v945_v18, %v939_v42 }
 0x1fc   : > { %v867_v14 = vadd.f32 %v865_v2, %v862_v61  ;;  %v961_v57 = vmul.f32 %v4231_v29, %v2972_v32  ;;  %v943_v63 = vadd.f32 %v941_v40, %v928_v39  ;;  %v1053_v30 = vrot.slane %v3088_v38, 2 }
 0x1fd   : > { %v1073_v25 = vrot.slane %v3088_v38, 3  ;;  %v965_v32 = vstv %s3056_s0  ;;  %v1093_v17 = vrot.slane %v3088_v38, 4  ;;  %v898_v40 = vsel %vm603_vm4, %v896_v22, %v897_v20  ;;  %s3672_s0 = sld [smem:[#allocation6 + $0x3d]] }
 0x1fe   : > { %v884_v61 = vadd.f32 %v2883_v16, %v867_v14  ;;  %v917_v42 = vrot.slane %v3085_v55, 2  ;;  %v948_v47 = vadd.f32 %v946_v34, %v943_v63  ;;  %v1113_v2 = vrot.slane %v3088_v38, 5 }
 0x1ff   : > { %v1133_v16 = vrot.slane %v3088_v38, 6  ;;  %v902_v14 = vmul.f32 %v900_v28, %v893_v54  ;;  %v913_v29 = vsel %vm624_vm5, %v911_v21, %v912_v52  ;;  %v932_v0 = vrot.slane %v2988_v5, 3  ;;  %v3153_v21 = vpop.permute.xlu1 %1442 }
 0x200   : > { %v889_v39 = vadd.f32 %v887_v37, %v884_v61  ;;  %v963_v22 = vadd.f32 %v961_v57, %v948_v47  ;;  %v966_v20 = vmul.f32 %v965_v32, %v959_v6  ;;  %v4232_v63 = vrot.slane %v2502_v60, 1 }
 0x201   : > { %v985_v28 = vstv %s3098_s1  ;;  %v907_v54 = vmul.f32 %v905_v7, %v898_v40  ;;  %v4233_v57 = vstv %s2748_s29  ;;  %v918_v6 = vsel %vm624_vm5, %v916_v41, %v917_v42  ;;  %s3691_s1 = sld [smem:[#allocation6 + $0x13]] }
 0x202   : > { %v1036_v37 = vsel %vm603_vm4, %v4232_v63, %v1033_v15  ;;  %v904_v34 = vadd.f32 %v902_v14, %v889_v39  ;;  %v981_v52 = vmul.f32 %v4233_v57, %v2983_v10  ;;  %v937_v61 = vrot.slane %v3085_v55, 3 }
 0x203   : > { %v968_v47 = vadd.f32 %v966_v20, %v963_v22  ;;  %v4234_v7 = vrot.slane %v2502_v60, 2  ;;  %v4235_v10 = vrot.slane %v2502_v60, 3  ;;  %v922_v41 = vmul.f32 %v920_v59, %v913_v29 }
 0x204   : > { %v909_v42 = vadd.f32 %v907_v54, %v904_v34  ;;  %v933_v14 = vsel %vm645_vm6, %v931_v13, %v932_v0  ;;  %v952_v22 = vrot.slane %v2988_v5, 4  ;;  %v986_v63 = vmul.f32 %v985_v28, %v979_v51  ;;  %v3198_v34 = vpop.permute.xlu2 %1018 }
 0x205   : > { %v3169_v40 = vsel %vm624_vm5, %v4234_v7, %v1053_v30  ;;  %v3177_v39 = vsel %vm645_vm6, %v4235_v10, %v1073_v25  ;;  %v983_v20 = vadd.f32 %v981_v52, %v968_v47  ;;  %v4236_v57 = vstv %s2731_s20 }
 0x206   : > { %v3193_v7 = vmul.f32 %v4236_v57, %v3153_v21  ;;  %v1005_v10 = vstv %s3124_s13  ;;  %v924_v59 = vadd.f32 %v922_v41, %v909_v42  ;;  %v927_v29 = vmul.f32 %v925_v53, %v918_v6  ;;  %s3704_s13 = sld [smem:[#allocation6 + $0x44]] }
 0x207   : > { %v4237_v54 = vstv %s2758_s2  ;;  %v938_v51 = vsel %vm645_vm6, %v936_v35, %v937_v61  ;;  %v957_v0 = vrot.slane %v3085_v55, 4  ;;  %v988_v52 = vadd.f32 %v986_v63, %v983_v20 }
 0x208   : > { %v1001_v13 = vmul.f32 %v4237_v54, %v2996_v23  ;;  %v4238_v53 = vrot.slane %v2502_v60, 4  ;;  %v4239_v23 = vrot.slane %v2502_v60, 5  ;;  %v4240_v61 = vstv %s2717_s14  ;;  %s3257_s14 = sld [smem:[#allocation6 + $0x42]] }
 0x209   : > { %v942_v47 = vmul.f32 %v4240_v61, %v933_v14  ;;  %v929_v41 = vadd.f32 %v927_v29, %v924_v59  ;;  %v953_v42 = vsel %vm666_vm7, %v951_v44, %v952_v22  ;;  %v972_v20 = vrot.slane %v2988_v5, 5  ;;  %v3242_v29 = vpop.permute.xlu0 %1014 }
 0x20a   : > { %v3216_v6 = vsel %vm666_vm7, %v4238_v53, %v1093_v17  ;;  %v3224_v35 = vsel %vm687_vm8, %v4239_v23, %v1113_v2  ;;  %v1003_v63 = vadd.f32 %v1001_v13, %v988_v52  ;;  %v1006_v57 = vmul.f32 %v1005_v10, %v3082_v8 }
 0x20b   : > { %v1038_v54 = vrot.slane %v3198_v34, 1  ;;  %v944_v53 = vadd.f32 %v942_v47, %v929_v41  ;;  %v947_v14 = vmul.f32 %v945_v18, %v938_v51  ;;  %v977_v59 = vrot.slane %v3085_v55, 5 }
 0x20c   : > { %v4241_v44 = vrot.slane %v2502_v60, 6  ;;  %v1463_v8 = vrot.slane %v3153_v21, 1  ;;  %v958_v18 = vsel %vm666_vm7, %v956_v12, %v957_v0  ;;  %v1008_v13 = vadd.f32 %v1006_v57, %v1003_v63 }
 0x20d   : > { %v4242_v51 = vstv %s2742_s9  ;;  %v992_v60 = vrot.slane %v2988_v5, 6  ;;  %v949_v23 = vadd.f32 %v947_v14, %v944_v53  ;;  %v1042_v61 = vstv %s3181_s11  ;;  %s3270_s9 = sld [smem:[#allocation6 + $0x18]] }
 0x20e   : > { %v3250_v22 = vsel %vm708_vm9, %v4241_v44, %v1133_v16  ;;  %v962_v52 = vmul.f32 %v4242_v51, %v953_v42  ;;  %v1483_v47 = vrot.slane %v3153_v21, 2  ;;  %v1058_v41 = vrot.slane %v3198_v34, 2  ;;  %s3723_s11 = sld [smem:[#allocation6 + $0x1a]] }
 0x20f   : > { %v973_v12 = vsel %vm687_vm8, %v971_v62, %v972_v20  ;;  %v1025_v0 = vadd.f32 %v2621_v45, %v1008_v13  ;;  %v4243_v5 = vrot.slane %v2543_v58, 1  ;;  %v967_v57 = vmul.f32 %v965_v32, %v958_v18 }
 0x210   : > { %v964_v63 = vadd.f32 %v962_v52, %v949_v23  ;;  %v978_v62 = vsel %vm687_vm8, %v976_v33, %v977_v59  ;;  %v997_v45 = vrot.slane %v3085_v55, 6  ;;  %v1043_v53 = vmul.f32 %v1042_v61, %v1036_v37 }
 0x211   : > { %v1041_v42 = vsel %vm603_vm4, %v4243_v5, %v1038_v54  ;;  %v1030_v20 = vadd.f32 %v2655_v26, %v1025_v0  ;;  %v1047_v14 = vstv %s3208_s10  ;;  %v1503_v44 = vrot.slane %v3153_v21, 3  ;;  %s3741_s10 = sld [smem:[#allocation6 + $0x4b]] }
 0x212   : > { %v4244_v32 = vstv %s2748_s29  ;;  %v4245_v13 = vrot.slane %v2857_v46, 6  ;;  %v969_v55 = vadd.f32 %v967_v57, %v964_v63  ;;  %v1523_v26 = vrot.slane %v3153_v21, 4  ;;  %s3320_s29 = sld [smem:[#allocation6 + $0x50]] }
 0x213   : > { %v982_v18 = vmul.f32 %v4244_v32, %v973_v12  ;;  %v1543_v59 = vrot.slane %v3153_v21, 5  ;;  %v1062_v37 = vstv %s3236_s12  ;;  %v1045_v51 = vadd.f32 %v1043_v53, %v1030_v20  ;;  %v3325_v53 = vpop.permute.xlu0 %1020  ;;  %s3760_s12 = sld [smem:[#allocation6 + $0x21]] }
 0x214   : > { %v993_v33 = vsel %vm708_vm9, %v4245_v13, %v992_v60  ;;  %v1078_v52 = vrot.slane %v3198_v34, 3  ;;  %v987_v12 = vmul.f32 %v985_v28, %v978_v62  ;;  %v1048_v46 = vmul.f32 %v1047_v14, %v1041_v42 }
 0x215   : > { %v984_v23 = vadd.f32 %v982_v18, %v969_v55  ;;  %v4246_v60 = vrot.slane %v2543_v58, 2  ;;  %v4247_v5 = vstv %s2758_s2  ;;  %v998_v57 = vsel %vm708_vm9, %v996_v24, %v997_v45  ;;  %s3332_s2 = sld [smem:[#allocation6 + $0x26]] }
 0x216   : > { %v1002_v63 = vmul.f32 %v4247_v5, %v993_v33  ;;  %v1067_v28 = vstv %s3257_s14  ;;  %v1034_v62 = vrot.slane %v3242_v29, 1  ;;  %v1063_v20 = vmul.f32 %v1062_v37, %v3169_v40  ;;  %s3778_s14 = sld [smem:[#allocation6 + $0x52]] }
 0x217   : > { %v1061_v0 = vsel %vm624_vm5, %v4246_v60, %v1058_v41  ;;  %v989_v42 = vadd.f32 %v987_v12, %v984_v23  ;;  %v1050_v32 = vadd.f32 %v1048_v46, %v1045_v51  ;;  %v4248_v49 = vstv %s2515_s6  ;;  %s3426_s6 = sld [smem:[#allocation6 + $0xb]] }
 0x218   : > { %v1029_v13 = vmul.f32 %v4248_v49, %v3198_v34  ;;  %v1098_v24 = vrot.slane %v3198_v34, 4  ;;  %v1082_v45 = vstv %s3270_s9  ;;  %v1007_v55 = vmul.f32 %v1005_v10, %v998_v57  ;;  %s3800_s9 = sld [smem:[#allocation6 + $0x28]] }
 0x219   : > { %v1004_v33 = vadd.f32 %v1002_v63, %v989_v42  ;;  %v1065_v23 = vadd.f32 %v1063_v20, %v1050_v32  ;;  %v1068_v40 = vmul.f32 %v1067_v28, %v1061_v0  ;;  %v4249_v51 = vrot.slane %v2543_v58, 3 }
 0x21a   : > { %v1054_v46 = vrot.slane %v3242_v29, 2  ;;  %v1087_v60 = vstv %s3288_s25  ;;  %v1039_v10 = vrot.slane %v3325_v53, 1  ;;  %v1035_v0 = vsel %vm603_vm4, %v1033_v15, %v1034_v62  ;;  %s3814_s25 = sld [smem:[#allocation6 + $0x59]] }
 0x21b   : > { %v1081_v12 = vsel %vm645_vm6, %v4249_v51, %v1078_v52  ;;  %v1009_v5 = vadd.f32 %v1007_v55, %v1004_v33  ;;  %v1083_v63 = vmul.f32 %v1082_v45, %v3177_v39  ;;  %v1070_v57 = vadd.f32 %v1068_v40, %v1065_v23  ;;  %v3366_v55 = vpop.permute.xlu2 %1154 }
 0x21c   : > { %v4250_v42 = vrot.slane %v2543_v58, 4  ;;  %v1118_v32 = vrot.slane %v3198_v34, 5  ;;  %v1138_v49 = vrot.slane %v3198_v34, 6  ;;  %v1102_v33 = vstv %s3300_s22  ;;  %s3843_s22 = sld [smem:[#allocation6 + $0x60]] }
 0x21d   : > { %v1026_v15 = vadd.f32 %v3108_v11, %v1009_v5  ;;  %v1074_v39 = vrot.slane %v3242_v29, 3  ;;  %v1085_v62 = vadd.f32 %v1083_v63, %v1070_v57  ;;  %v1088_v23 = vmul.f32 %v1087_v60, %v1081_v12 }
 0x21e   : > { %v1101_v20 = vsel %vm666_vm7, %v4250_v42, %v1098_v24  ;;  %v1044_v40 = vmul.f32 %v1042_v61, %v1035_v0  ;;  %v1107_v51 = vstv %s3320_s29  ;;  %v1040_v42 = vsel %vm603_vm4, %v1038_v54, %v1039_v10  ;;  %s3881_s29 = sld [smem:[#allocation6 + $0xd]] }
 0x21f   : > { %v1059_v11 = vrot.slane %v3325_v53, 2  ;;  %v1031_v5 = vadd.f32 %v1029_v13, %v1026_v15  ;;  %v1055_v12 = vsel %vm624_vm5, %v1053_v30, %v1054_v46  ;;  %v1103_v61 = vmul.f32 %v1102_v33, %v3216_v6 }
 0x220   : > { %v1090_v0 = vadd.f32 %v1088_v23, %v1085_v62  ;;  %v4251_v63 = vrot.slane %v2543_v58, 5  ;;  %v4252_v54 = vrot.slane %v2543_v58, 6  ;;  %v4253_v30 = vstv %s2541_s18  ;;  %s3539_s18 = sld [smem:[#allocation6 + $0x20]] }
 0x221   : > { %v3404_v46 = vmul.f32 %v4253_v30, %v3366_v55  ;;  %v1122_v6 = vstv %s3332_s2  ;;  %v1046_v10 = vadd.f32 %v1044_v40, %v1031_v5  ;;  %v1049_v15 = vmul.f32 %v1047_v14, %v1040_v42  ;;  %s3896_s2 = sld [smem:[#allocation6 + $0x3e]] }
 0x222   : > { %v1121_v57 = vsel %vm687_vm8, %v4251_v63, %v1118_v32  ;;  %v1141_v13 = vsel %vm708_vm9, %v4252_v54, %v1138_v49  ;;  %v1105_v62 = vadd.f32 %v1103_v61, %v1090_v0  ;;  %v1108_v23 = vmul.f32 %v1107_v51, %v1101_v20 }
 0x223   : > { %v1064_v63 = vmul.f32 %v1062_v37, %v1055_v12  ;;  %v1127_v18 = vstv %s3346_s4  ;;  %v1060_v58 = vsel %vm624_vm5, %v1058_v41, %v1059_v11  ;;  %v1079_v54 = vrot.slane %v3325_v53, 3  ;;  %s3928_s4 = sld [smem:[#allocation6 + $0x45]] }
 0x224   : > { %v1075_v14 = vsel %vm645_vm6, %v1073_v25, %v1074_v39  ;;  %v1123_v40 = vmul.f32 %v1122_v6, %v3224_v35  ;;  %v1051_v42 = vadd.f32 %v1049_v15, %v1046_v10  ;;  %v1110_v20 = vadd.f32 %v1108_v23, %v1105_v62  ;;  %v3438_v15 = vpop.permute.xlu2 %1160 }
 0x225   : > { %v1175_v37 = vrot.slane %v3366_v55, 1  ;;  %v1195_v5 = vrot.slane %v3366_v55, 2  ;;  %v1142_v12 = vstv %s3363_s5  ;;  %v1094_v41 = vrot.slane %v3242_v29, 4  ;;  %s3937_s5 = sld [smem:[#allocation6 + $0x1b]] }
 0x226   : > { %v1066_v11 = vadd.f32 %v1064_v63, %v1051_v42  ;;  %v1069_v61 = vmul.f32 %v1067_v28, %v1060_v58  ;;  %v1125_v0 = vadd.f32 %v1123_v40, %v1110_v20  ;;  %v1128_v25 = vmul.f32 %v1127_v18, %v1121_v57  ;;  %v3459_v42 = vpop.permute.xlu0 %1156 }
 0x227   : > { %v1084_v35 = vmul.f32 %v1082_v45, %v1075_v14  ;;  %v1147_v39 = vstv %s3374_s24  ;;  %v1080_v30 = vsel %vm645_vm6, %v1078_v52, %v1079_v54  ;;  %v1099_v10 = vrot.slane %v3325_v53, 4  ;;  %s3955_s24 = sld [smem:[#allocation6 + $0x4c]] }
 0x228   : > { %v1114_v62 = vrot.slane %v3242_v29, 5  ;;  %v1143_v28 = vmul.f32 %v1142_v12, %v3250_v22  ;;  %v1071_v23 = vadd.f32 %v1069_v61, %v1066_v11  ;;  %v1130_v57 = vadd.f32 %v1128_v25, %v1125_v0 }
 0x229   : > { %v1215_v45 = vrot.slane %v3366_v55, 3  ;;  %v1235_v63 = vrot.slane %v3366_v55, 4  ;;  %v1255_v52 = vrot.slane %v3366_v55, 5  ;;  %v1095_v58 = vsel %vm666_vm7, %v1093_v17, %v1094_v41 }
 0x22a   : > { %v1086_v54 = vadd.f32 %v1084_v35, %v1071_v23  ;;  %v1089_v14 = vmul.f32 %v1087_v60, %v1080_v30  ;;  %v1145_v22 = vadd.f32 %v1143_v28, %v1130_v57  ;;  %v1148_v40 = vmul.f32 %v1147_v39, %v1141_v13 }
 0x22b   : > { %v4254_v20 = vrot.slane %v2602_v3, 1  ;;  %v1180_v17 = vrot.slane %v3438_v15, 1  ;;  %v1100_v60 = vsel %vm666_vm7, %v1098_v24, %v1099_v10  ;;  %v1119_v13 = vrot.slane %v3325_v53, 5 }
 0x22c   : > { %v1104_v41 = vmul.f32 %v1102_v33, %v1095_v58  ;;  %v1115_v61 = vsel %vm687_vm8, %v1113_v2, %v1114_v62  ;;  %v1091_v0 = vadd.f32 %v1089_v14, %v1086_v54  ;;  %v1150_v25 = vadd.f32 %v1148_v40, %v1145_v22 }
 0x22d   : > { %v1178_v11 = vsel %vm603_vm4, %v4254_v20, %v1175_v37  ;;  %v4255_v35 = vrot.slane %v2602_v3, 2  ;;  %v1275_v30 = vrot.slane %v3366_v55, 6  ;;  %v1134_v33 = vrot.slane %v3242_v29, 6 }
 0x22e   : > { %v1184_v10 = vstv %s3426_s6  ;;  %v1200_v2 = vrot.slane %v3438_v15, 2  ;;  %v1106_v62 = vadd.f32 %v1104_v41, %v1091_v0  ;;  %v1109_v28 = vmul.f32 %v1107_v51, %v1100_v60  ;;  %s3972_s6 = sld [smem:[#allocation6 + $0x22]] }
 0x22f   : > { %v1198_v24 = vsel %vm624_vm5, %v4255_v35, %v1195_v5  ;;  %v1167_v23 = vadd.f32 %v2753_v27, %v1150_v25  ;;  %v4256_v57 = vrot.slane %v2713_v31, 1  ;;  %v1124_v29 = vmul.f32 %v1122_v6, %v1115_v61 }
 0x230   : > { %v1120_v54 = vsel %vm687_vm8, %v1118_v32, %v1119_v13  ;;  %v1139_v51 = vrot.slane %v3325_v53, 6  ;;  %v1111_v27 = vadd.f32 %v1109_v28, %v1106_v62  ;;  %v1185_v22 = vmul.f32 %v1184_v10, %v1178_v11 }
 0x231   : > { %v1183_v58 = vsel %vm603_vm4, %v4256_v57, %v1180_v17  ;;  %v1172_v14 = vadd.f32 %v2767_v48, %v1167_v23  ;;  %v1189_v40 = vstv %s3444_s7  ;;  %v4257_v6 = vrot.slane %v2602_v3, 3  ;;  %v3568_v23 = vpop.permute.xlu0 %1162  ;;  %s3990_s7 = sld [smem:[#allocation6 + $0x53]] }
 0x232   : > { %v4258_v53 = vrot.slane %v2602_v3, 4  ;;  %v4259_v32 = vrot.slane %v2602_v3, 5  ;;  %v1135_v60 = vsel %vm708_vm9, %v1133_v16, %v1134_v33  ;;  %v1126_v13 = vadd.f32 %v1124_v29, %v1111_v27 }
 0x233   : > { %v1218_v20 = vsel %vm645_vm6, %v4257_v6, %v1215_v45  ;;  %v1129_v41 = vmul.f32 %v1127_v18, %v1120_v54  ;;  %v1204_v61 = vstv %s3457_s8  ;;  %v1187_v0 = vadd.f32 %v1185_v22, %v1172_v14  ;;  %s4010_s8 = sld [smem:[#allocation6 + $0x29]] }
 0x234   : > { %v1238_v48 = vsel %vm666_vm7, %v4258_v53, %v1235_v63  ;;  %v3531_v11 = vsel %vm687_vm8, %v4259_v32, %v1255_v52  ;;  %v4260_v25 = vrot.slane %v2602_v3, 6  ;;  %v1220_v38 = vrot.slane %v3438_v15, 3 }
 0x235   : > { %v1140_v16 = vsel %vm708_vm9, %v1138_v49, %v1139_v51  ;;  %v1190_v18 = vmul.f32 %v1189_v40, %v1183_v58  ;;  %v4261_v33 = vrot.slane %v2713_v31, 2  ;;  %v1144_v62 = vmul.f32 %v1142_v12, %v1135_v60 }
 0x236   : > { %v3548_v35 = vsel %vm708_vm9, %v4260_v25, %v1275_v30  ;;  %v1131_v28 = vadd.f32 %v1129_v41, %v1126_v13  ;;  %v1209_v34 = vstv %s3479_s15  ;;  %v1240_v49 = vrot.slane %v3438_v15, 4  ;;  %s4027_s15 = sld [smem:[#allocation6 + $0x5a]] }
 0x237   : > { %v1203_v3 = vsel %vm624_vm5, %v4261_v33, %v1200_v2  ;;  %v1176_v57 = vrot.slane %v3459_v42, 1  ;;  %v1205_v58 = vmul.f32 %v1204_v61, %v1198_v24  ;;  %v1192_v29 = vadd.f32 %v1190_v18, %v1187_v0 }
 0x238   : > { %v1260_v54 = vrot.slane %v3438_v15, 5  ;;  %v1146_v51 = vadd.f32 %v1144_v62, %v1131_v28  ;;  %v1149_v27 = vmul.f32 %v1147_v39, %v1140_v16  ;;  %v1224_v12 = vstv %s3494_s16  ;;  %s4040_s16 = sld [smem:[#allocation6 + $0x30]] }
 0x239   : > { %v4262_v14 = vstv %s2556_s26  ;;  %v1181_v6 = vrot.slane %v3568_v23, 1  ;;  %v1207_v53 = vadd.f32 %v1205_v58, %v1192_v29  ;;  %v1210_v32 = vmul.f32 %v1209_v34, %v1203_v3  ;;  %s3610_s26 = sld [smem:[#allocation6 + $0x2e]] }
 0x23a   : > { %v1171_v22 = vmul.f32 %v4262_v14, %v3438_v15  ;;  %v4263_v24 = vrot.slane %v2713_v31, 3  ;;  %v1280_v39 = vrot.slane %v3438_v15, 6  ;;  %v1151_v13 = vadd.f32 %v1149_v27, %v1146_v51 }
 0x23b   : > { %v1229_v41 = vstv %s3510_s21  ;;  %v1177_v0 = vsel %vm603_vm4, %v1175_v37, %v1176_v57  ;;  %v1196_v25 = vrot.slane %v3459_v42, 2  ;;  %v1225_v16 = vmul.f32 %v1224_v12, %v1218_v20  ;;  %v3613_v57 = vpop.permute.xlu2 %1296  ;;  %s4289_s21 = sld [smem:[#allocation25_spill]] }
 0x23c   : > { %v1223_v60 = vsel %vm645_vm6, %v4263_v24, %v1220_v38  ;;  %v1212_v18 = vadd.f32 %v1210_v32, %v1207_v53  ;;  %v4264_v33 = vrot.slane %v2713_v31, 4  ;;  %v4265_v62 = vrot.slane %v2713_v31, 5 }
 0x23d   : > { %v1168_v28 = vadd.f32 %v3404_v46, %v1151_v13  ;;  %v1244_v20 = vstv %s3539_s18  ;;  %v1182_v58 = vsel %vm603_vm4, %v1180_v17, %v1181_v6  ;;  %v1201_v29 = vrot.slane %v3568_v23, 2  ;;  %s4290_s18 = sld [smem:[#allocation18_spill]] }
 0x23e   : > { %v1243_v3 = vsel %vm666_vm7, %v4264_v33, %v1240_v49  ;;  %v1263_v37 = vsel %vm687_vm8, %v4265_v62, %v1260_v54  ;;  %v1227_v51 = vadd.f32 %v1225_v16, %v1212_v18  ;;  %v1230_v27 = vmul.f32 %v1229_v41, %v1223_v60 }
 0x23f   : > { %v4266_v46 = vrot.slane %v2713_v31, 6  ;;  %v1173_v53 = vadd.f32 %v1171_v22, %v1168_v28  ;;  %v1186_v32 = vmul.f32 %v1184_v10, %v1177_v0  ;;  %v1249_v24 = vstv %s3565_s23 }
 0x240   : > { %v1197_v17 = vsel %vm624_vm5, %v1195_v5, %v1196_v25  ;;  %v1216_v6 = vrot.slane %v3459_v42, 3  ;;  %v1245_v60 = vmul.f32 %v1244_v20, %v1238_v48  ;;  %v1232_v31 = vadd.f32 %v1230_v27, %v1227_v51 }
 0x241   : > { %v1283_v14 = vsel %vm708_vm9, %v4266_v46, %v1280_v39  ;;  %v4267_v13 = vstv %s2586_s28  ;;  %v1264_v22 = vstv %s3575_s27  ;;  %v1188_v10 = vadd.f32 %v1186_v32, %v1173_v53  ;;  %s3661_s28 = sld [smem:[#allocation6 + $0xc]]  ;;  %s1742_s23 = sshll.u32 %s4289_s21, 4 }
 0x242   : > { %v3639_v16 = vmul.f32 %v4267_v13, %v3613_v57  ;;  %v1191_v0 = vmul.f32 %v1189_v40, %v1182_v58  ;;  %v1202_v18 = vsel %vm624_vm5, %v1200_v2, %v1201_v29  ;;  %v1221_v5 = vrot.slane %v3568_v23, 3 }
 0x243   : > { %v1247_v25 = vadd.f32 %v1245_v60, %v1232_v31  ;;  %v1250_v48 = vmul.f32 %v1249_v24, %v1243_v3  ;;  %v1317_v33 = vrot.slane %v3613_v57, 1  ;;  %v1206_v62 = vmul.f32 %v1204_v61, %v1197_v17  ;;  %s1848_s27 = sshll.u32 %s4290_s18, 4 }
 0x244   : > { %v1269_v28 = vstv %s3589_s17  ;;  %v1193_v51 = vadd.f32 %v1191_v0, %v1188_v10  ;;  %v1217_v40 = vsel %vm645_vm6, %v1215_v45, %v1216_v6  ;;  %v1236_v58 = vrot.slane %v3459_v42, 4  ;;  %s191_s17 = scalar_lea.vmem [#allocation11], %s1742_s23 }
 0x245   : > { %v1265_v2 = vmul.f32 %v1264_v22, %v3531_v11  ;;  %v1252_v29 = vadd.f32 %v1250_v48, %v1247_v25  ;;  %v1337_v3 = vrot.slane %v3613_v57, 2  ;;  %v1284_v27 = vstv %s3610_s26 }
 0x246   : > { %v1208_v46 = vadd.f32 %v1206_v62, %v1193_v51  ;;  %v1211_v61 = vmul.f32 %v1209_v34, %v1202_v18  ;;  %v1222_v53 = vsel %vm645_vm6, %v1220_v38, %v1221_v5  ;;  %v1241_v45 = vrot.slane %v3568_v23, 4  ;;  %v3674_v34 = vpop.permute.xlu2 %1302 }
 0x247   : > { %v1267_v32 = vadd.f32 %v1265_v2, %v1252_v29  ;;  %v1270_v17 = vmul.f32 %v1269_v28, %v1263_v37  ;;  %v1357_v11 = vrot.slane %v3613_v57, 3  ;;  %v1226_v6 = vmul.f32 %v1224_v12, %v1217_v40 }
 0x248   : > { %v1289_v60 = vstv %s3628_s30  ;;  %v1213_v31 = vadd.f32 %v1211_v61, %v1208_v46  ;;  %v1237_v38 = vsel %vm666_vm7, %v1235_v63, %v1236_v58  ;;  %v1256_v13 = vrot.slane %v3459_v42, 5  ;;  %v3693_v63 = vpop.permute.xlu0 %1298 }
 0x249   : > { %v1285_v37 = vmul.f32 %v1284_v27, %v3548_v35  ;;  %v1272_v10 = vadd.f32 %v1270_v17, %v1267_v32  ;;  %v4268_v12 = vrot.slane %v2793_v4, 1  ;;  %v1377_v18 = vrot.slane %v3613_v57, 4 }
 0x24a   : > { %v1228_v5 = vadd.f32 %v1226_v6, %v1213_v31  ;;  %v1231_v25 = vmul.f32 %v1229_v41, %v1222_v53  ;;  %v1242_v35 = vsel %vm666_vm7, %v1240_v49, %v1241_v45  ;;  %v1261_v48 = vrot.slane %v3568_v23, 5 }
 0x24b   : > { %v1320_v0 = vsel %vm603_vm4, %v4268_v12, %v1317_v33  ;;  %v1287_v62 = vadd.f32 %v1285_v37, %v1272_v10  ;;  %v1290_v51 = vmul.f32 %v1289_v60, %v1283_v14  ;;  %v1397_v40 = vrot.slane %v3613_v57, 5 }
 0x24c   : > { %v1322_v58 = vrot.slane %v3674_v34, 1  ;;  %v1246_v41 = vmul.f32 %v1244_v20, %v1237_v38  ;;  %v1233_v2 = vadd.f32 %v1231_v25, %v1228_v5  ;;  %v4269_v29 = vrot.slane %v2793_v4, 2 }
 0x24d   : > { %v1257_v14 = vsel %vm687_vm8, %v1255_v52, %v1256_v13  ;;  %v1276_v46 = vrot.slane %v3459_v42, 6  ;;  %v1292_v20 = vadd.f32 %v1290_v51, %v1287_v62  ;;  %v4270_v61 = vrot.slane %v2793_v4, 3 }
 0x24e   : > { %v1340_v49 = vsel %vm624_vm5, %v4269_v29, %v1337_v3  ;;  %v1248_v45 = vadd.f32 %v1246_v41, %v1233_v2  ;;  %v1251_v32 = vmul.f32 %v1249_v24, %v1242_v35  ;;  %v1326_v17 = vstv %s3661_s28  ;;  %s4291_s28 = sld [smem:[#allocation28_spill]] }
 0x24f   : > { %v1360_v53 = vsel %vm645_vm6, %v4270_v61, %v1357_v11  ;;  %v1342_v52 = vrot.slane %v3674_v34, 2  ;;  %v1262_v42 = vsel %vm687_vm8, %v1260_v54, %v1261_v48  ;;  %v1281_v6 = vrot.slane %v3568_v23, 6 }
 0x250   : > { %v1309_v31 = vadd.f32 %v2837_v9, %v1292_v20  ;;  %v4271_v24 = vrot.slane %v2920_v36, 1  ;;  %v1266_v13 = vmul.f32 %v1264_v22, %v1257_v14  ;;  %v1253_v37 = vadd.f32 %v1251_v32, %v1248_v45  ;;  %v3781_v29 = vpop.permute.xlu0 %1304 }
 0x251   : > { %v1331_v54 = vstv %s3672_s0  ;;  %v1417_v10 = vrot.slane %v3613_v57, 6  ;;  %v1277_v9 = vsel %vm708_vm9, %v1275_v30, %v1276_v46  ;;  %v1327_v12 = vmul.f32 %v1326_v17, %v1320_v0 }
 0x252   : > { %v1325_v38 = vsel %vm603_vm4, %v4271_v24, %v1322_v58  ;;  %v1314_v23 = vadd.f32 %v2964_v50, %v1309_v31  ;;  %v4272_v22 = vrot.slane %v2793_v4, 4  ;;  %v1268_v25 = vadd.f32 %v1266_v13, %v1253_v37 }
 0x253   : > { %v1271_v35 = vmul.f32 %v1269_v28, %v1262_v42  ;;  %v1346_v55 = vstv %s3691_s1  ;;  %v4273_v30 = vrot.slane %v2920_v36, 2  ;;  %v1282_v0 = vsel %vm708_vm9, %v1280_v39, %v1281_v6  ;;  %s1632_s1 = sshll.u32 %s191_s17, 4  ;;  %s1633_s1 = int_to_ptr.vmem [resolvable:$true] %s1632_s1 }
 0x254   : > { %v1380_v5 = vsel %vm666_vm7, %v4272_v22, %v1377_v18  ;;  %v1329_v48 = vadd.f32 %v1327_v12, %v1314_v23  ;;  %v1332_v28 = vmul.f32 %v1331_v54, %v1325_v38  ;;  %v1362_v62 = vrot.slane %v3674_v34, 3  ;;  %s1631_s0 = scalar_lea.hbm %s4291_s28, %s1848_s27 }
 0x255   : > { %v1345_v50 = vsel %vm624_vm5, %v4273_v30, %v1342_v52  ;;  %v1286_v51 = vmul.f32 %v1284_v27, %v1277_v9  ;;  %v1273_v41 = vadd.f32 %v1271_v35, %v1268_v25  ;;  %v1351_v2 = vstv %s3704_s13  ;;  %s1634_s13 = sshll.u32 %s1631_s0, 4  ;;  %s1635_s13 = int_to_ptr.hbm [resolvable:$true] %s1634_s13 }
 0x256   : > { %v4274_v15 = vrot.slane %v2793_v4, 5  ;;  %v1318_v14 = vrot.slane %v3693_v63, 1  ;;  %v1347_v46 = vmul.f32 %v1346_v55, %v1340_v49  ;;  %v1334_v20 = vadd.f32 %v1332_v28, %v1329_v48  ;;  %v3828_v48 = vpop.permute.xlu2 %1438 }
 0x257   : > { %v4275_v27 = vrot.slane %v2793_v4, 6  ;;  %v1288_v45 = vadd.f32 %v1286_v51, %v1273_v41  ;;  %v1291_v32 = vmul.f32 %v1289_v60, %v1282_v0  ;;  %v1366_v42 = vstv %s3723_s11 }
 0x258   : > { %v1400_v39 = vsel %vm687_vm8, %v4274_v15, %v1397_v40  ;;  %v4276_v6 = vstv %s2637_s19  ;;  %v1323_v49 = vrot.slane %v3781_v29, 1  ;;  %v1349_v24 = vadd.f32 %v1347_v46, %v1334_v20  ;;  %s3825_s19 = sld [smem:[#allocation6 + $0x2f]] }
 0x259   : > { %v3796_v61 = vsel %vm708_vm9, %v4275_v27, %v1417_v10  ;;  %v1313_v31 = vmul.f32 %v4276_v6, %v3674_v34  ;;  %v1352_v38 = vmul.f32 %v1351_v2, %v1345_v50  ;;  %v4277_v4 = vrot.slane %v2920_v36, 3 }
 0x25a   : > { %v1382_v60 = vrot.slane %v3674_v34, 4  ;;  %v1293_v37 = vadd.f32 %v1291_v32, %v1288_v45  ;;  %v1371_v9 = vstv %s3741_s10  ;;  %v1319_v23 = vsel %vm603_vm4, %v1317_v33, %v1318_v14  ;;  %s1620_s10 = scalar_lea.sflag [#allocation8], %s4289_s21 }
 0x25b   : > { %v1365_v13 = vsel %vm645_vm6, %v4277_v4, %v1362_v62  ;;  %v1338_v12 = vrot.slane %v3693_v63, 2  ;;  %v1367_v22 = vmul.f32 %v1366_v42, %v1360_v53  ;;  %v1354_v25 = vadd.f32 %v1352_v38, %v1349_v24 }
 0x25c   : > { %v1402_v35 = vrot.slane %v3674_v34, 5  ;;  %v1422_v30 = vrot.slane %v3674_v34, 6  ;;  %v1310_v50 = vadd.f32 %v3639_v16, %v1293_v37  ;;  %v1386_v0 = vstv %s3760_s12  ;;  %s2013_s12 = sshra.s32 %s1635_s13, 4  ;;  %s2014_s12 = int_to_ptr.hbm [resolvable:$true] %s2013_s12 }
 0x25d   : > { %v1324_v33 = vsel %vm603_vm4, %v1322_v58, %v1323_v49  ;;  %v1343_v53 = vrot.slane %v3781_v29, 2  ;;  %v1369_v28 = vadd.f32 %v1367_v22, %v1354_v25  ;;  %v1372_v51 = vmul.f32 %v1371_v9, %v1365_v13  ;;  %p2020_p8 = scmp.lt.s32.totalorder %s2014_s12, %s4291_s28 }
 0x25e   : > { %v4278_v16 = vrot.slane %v2920_v36, 4  ;;  %v1315_v15 = vadd.f32 %v1313_v31, %v1310_v50  ;;  %v1328_v14 = vmul.f32 %v1326_v17, %v1319_v23  ;;  %v1391_v46 = vstv %s3778_s14  ;;  %s2015_s14 = scalar_lea.hbm %s2014_s12, 16 }
 0x25f   : > { %v1339_v58 = vsel %vm624_vm5, %v1337_v3, %v1338_v12  ;;  %v1358_v20 = vrot.slane %v3693_v63, 3  ;;  %v1387_v27 = vmul.f32 %v1386_v0, %v1380_v5  ;;  %v1374_v45 = vadd.f32 %v1372_v51, %v1369_v28  ;;  %p2016_p1 = scmp.ne.s32.totalorder %s2014_s12, %s2015_s14 }
 0x260   : > { %v1385_v41 = vsel %vm666_vm7, %v4278_v16, %v1382_v60  ;;  %v4279_v32 = vrot.slane %v2920_v36, 5  ;;  %v1406_v6 = vstv %s3800_s9  ;;  %v1330_v31 = vadd.f32 %v1328_v14, %v1315_v15 }
 0x261   : > { %v1333_v49 = vmul.f32 %v1331_v54, %v1324_v33  ;;  %v1344_v3 = vsel %vm624_vm5, %v1342_v52, %v1343_v53  ;;  %v1363_v5 = vrot.slane %v3781_v29, 3  ;;  %v1389_v24 = vadd.f32 %v1387_v27, %v1374_v45  ;;  %p2017_p2 = pnand %p2016_p1, %p2205_p9 }
 0x262   : > { %v1405_v17 = vsel %vm687_vm8, %v4279_v32, %v1402_v35  ;;  %v1392_v38 = vmul.f32 %v1391_v46, %v1385_v41  ;;  %v4280_v4 = vrot.slane %v2920_v36, 6  ;;  %v1348_v37 = vmul.f32 %v1346_v55, %v1339_v58 }
 0x263   : > { %v1411_v54 = vstv %s3814_s25  ;;  %v1335_v23 = vadd.f32 %v1333_v49, %v1330_v31  ;;  %v1359_v52 = vsel %vm645_vm6, %v1357_v11, %v1358_v20  ;;  %v1378_v12 = vrot.slane %v3693_v63, 4  ;;  %p2018_p4 = pneg %p2017_p2 }
 0x264   : > { %v1425_v13 = vsel %vm708_vm9, %v4280_v4, %v1422_v30  ;;  %v1407_v22 = vmul.f32 %v1406_v6, %v1400_v39  ;;  %v1394_v25 = vadd.f32 %v1392_v38, %v1389_v24  ;;  %v1459_v36 = vrot.slane %v3828_v48, 1 }
 0x265   : > { %v1426_v50 = vstv %s3825_s19  ;;  %v1350_v33 = vadd.f32 %v1348_v37, %v1335_v23  ;;  %v1353_v55 = vmul.f32 %v1351_v2, %v1344_v3  ;;  %v1364_v53 = vsel %vm645_vm6, %v1362_v62, %v1363_v5  ;;  %v3898_v2 = vpop.permute.xlu2 %1444  ;;  %s2019_s19 = scalar_lea.hbm %s4291_s28, 32 }
 0x266   : > { %v1383_v11 = vrot.slane %v3781_v29, 4  ;;  %v1409_v28 = vadd.f32 %v1407_v22, %v1394_v25  ;;  %v1412_v51 = vmul.f32 %v1411_v54, %v1405_v17  ;;  %v4281_v39 = vstv %s2680_s3  ;;  %s3915_s3 = sld [smem:[#allocation6 + $0x14]]  ;;  %p2021_p11 = scmp.lt.s32.totalorder %s2019_s19, %s2015_s14 }
 0x267   : > { %v3893_v16 = vmul.f32 %v4281_v39, %v3828_v48  ;;  %v1368_v41 = vmul.f32 %v1366_v42, %v1359_v52  ;;  %v1431_v15 = vstv %s3843_s22  ;;  %v1355_v14 = vadd.f32 %v1353_v55, %v1350_v33 }
 0x268   : > { %v1379_v62 = vsel %vm666_vm7, %v1377_v18, %v1378_v12  ;;  %v1398_v58 = vrot.slane %v3693_v63, 5  ;;  %v1427_v20 = vmul.f32 %v1426_v50, %v3796_v61  ;;  %v1414_v27 = vadd.f32 %v1412_v51, %v1409_v28  ;;  %v3917_v18 = vpop.permute.xlu0 %1440  ;;  %p2022_p12 = por %p2021_p11, %p2020_p8 }
 0x269   : > { %v1462_v42 = vsel %vm603_vm4, %v1458_v56, %v1459_v36  ;;  %v1479_v45 = vrot.slane %v3828_v48, 2  ;;  %v1370_v32 = vadd.f32 %v1368_v41, %v1355_v14  ;;  %v1373_v17 = vmul.f32 %v1371_v9, %v1364_v53 }
 0x26a   : > { %v1384_v61 = vsel %vm666_vm7, %v1382_v60, %v1383_v11  ;;  %v1403_v31 = vrot.slane %v3781_v29, 5  ;;  %v1429_v49 = vadd.f32 %v1427_v20, %v1414_v27  ;;  %v1432_v3 = vmul.f32 %v1431_v15, %v1425_v13  ;;  %p2023_p13 = pnand %p2022_p12, %p2018_p4 }
 0x26b   : > { %v1499_v56 = vrot.slane %v3828_v48, 3  ;;  %v1464_v5 = vrot.slane %v3898_v2, 1  ;;  %v1388_v9 = vmul.f32 %v1386_v0, %v1379_v62  ;;  %v1375_v24 = vadd.f32 %v1373_v17, %v1370_v32 }
 0x26c   : > { %v1519_v38 = vrot.slane %v3828_v48, 4  ;;  %v1399_v60 = vsel %vm687_vm8, %v1397_v40, %v1398_v58  ;;  %v1418_v4 = vrot.slane %v3693_v63, 6  ;;  %v1434_v13 = vadd.f32 %v1432_v3, %v1429_v49 }
 0x26d   : > { %v1539_v37 = vrot.slane %v3828_v48, 5  ;;  %v1390_v23 = vadd.f32 %v1388_v9, %v1375_v24  ;;  %v1393_v52 = vmul.f32 %v1391_v46, %v1384_v61  ;;  %v1468_v0 = vstv %s3881_s29 }
 0x26e   : > { %v1484_v12 = vrot.slane %v3898_v2, 2  ;;  %v1404_v22 = vsel %vm687_vm8, %v1402_v35, %v1403_v31  ;;  %v1423_v40 = vrot.slane %v3781_v29, 6  ;;  %v1451_v63 = vadd.f32 %v3037_v43, %v1434_v13 }
 0x26f   : > { %v1467_v46 = vsel %vm603_vm4, %v1463_v8, %v1464_v5  ;;  %v1408_v25 = vmul.f32 %v1406_v6, %v1399_v60  ;;  %v1395_v33 = vadd.f32 %v1393_v52, %v1390_v23  ;;  %v1473_v35 = vstv %s3896_s2 }
 0x270   : > { %v1559_v55 = vrot.slane %v3828_v48, 6  ;;  %v1419_v43 = vsel %vm708_vm9, %v1417_v10, %v1418_v4  ;;  %v1469_v29 = vmul.f32 %v1468_v0, %v1462_v42  ;;  %v1456_v53 = vadd.f32 %v3193_v7, %v1451_v63  ;;  %v3993_v62 = vpop.permute.xlu0 %1446 }
 0x271   : > { %v4282_v8 = vrot.slane %v3017_v19, 2  ;;  %v1410_v11 = vadd.f32 %v1408_v25, %v1395_v33  ;;  %v1413_v28 = vmul.f32 %v1411_v54, %v1404_v22  ;;  %v1488_v57 = vstv %s3915_s3 }
 0x272   : > { %v1504_v51 = vrot.slane %v3898_v2, 3  ;;  %v1424_v7 = vsel %vm708_vm9, %v1422_v30, %v1423_v40  ;;  %v1471_v10 = vadd.f32 %v1469_v29, %v1456_v53  ;;  %v1474_v39 = vmul.f32 %v1473_v35, %v1467_v46 }
 0x273   : > { %v1482_v6 = vsel %vm624_vm5, %v4282_v8, %v1479_v45  ;;  %v1487_v54 = vsel %vm624_vm5, %v1483_v47, %v1484_v12  ;;  %v1428_v41 = vmul.f32 %v1426_v50, %v1419_v43  ;;  %v1415_v14 = vadd.f32 %v1413_v28, %v1410_v11 }
 0x274   : > { %v1493_v34 = vstv %s3928_s4  ;;  %v4283_v30 = vrot.slane %v3017_v19, 3  ;;  %v1460_v20 = vrot.slane %v3917_v18, 1  ;;  %v1489_v27 = vmul.f32 %v1488_v57, %v1482_v6 }
 0x275   : > { %v1476_v47 = vadd.f32 %v1474_v39, %v1471_v10  ;;  %v4284_v50 = vrot.slane %v3017_v19, 4  ;;  %v1430_v32 = vadd.f32 %v1428_v41, %v1415_v14  ;;  %v1433_v17 = vmul.f32 %v1431_v15, %v1424_v7 }
 0x276   : > { %v1502_v58 = vsel %vm645_vm6, %v4283_v30, %v1499_v56  ;;  %v1508_v61 = vstv %s3937_s5  ;;  %v4285_v31 = vrot.slane %v3017_v19, 5  ;;  %v1465_v3 = vrot.slane %v3993_v62, 1 }
 0x277   : > { %v1522_v42 = vsel %vm666_vm7, %v4284_v50, %v1519_v38  ;;  %v1491_v9 = vadd.f32 %v1489_v27, %v1476_v47  ;;  %v1494_v24 = vmul.f32 %v1493_v34, %v1487_v54  ;;  %v1507_v15 = vsel %vm645_vm6, %v1503_v44, %v1504_v51 }
 0x278   : > { %v1542_v49 = vsel %vm687_vm8, %v4285_v31, %v1539_v37  ;;  %v1524_v60 = vrot.slane %v3898_v2, 4  ;;  %v1435_v4 = vadd.f32 %v1433_v17, %v1430_v32  ;;  %v1513_v13 = vstv %s3955_s24 }
 0x279   : > { %v1461_v23 = vsel %vm603_vm4, %v1459_v36, %v1460_v20  ;;  %v1480_v52 = vrot.slane %v3917_v18, 2  ;;  %v1509_v22 = vmul.f32 %v1508_v61, %v1502_v58  ;;  %v1496_v40 = vadd.f32 %v1494_v24, %v1491_v9 }
 0x27a   : > { %v4286_v63 = vstv %s2731_s20  ;;  %v1544_v44 = vrot.slane %v3898_v2, 5  ;;  %v1452_v25 = vadd.f32 %v3893_v16, %v1435_v4  ;;  %v1528_v33 = vstv %s3972_s6  ;;  %s4052_s20 = sld [smem:[#allocation6 + $0x61]] }
 0x27b   : > { %v1455_v46 = vmul.f32 %v4286_v63, %v3898_v2  ;;  %v1466_v36 = vsel %vm603_vm4, %v1464_v5, %v1465_v3  ;;  %v1485_v43 = vrot.slane %v3993_v62, 2  ;;  %v1511_v29 = vadd.f32 %v1509_v22, %v1496_v40 }
 0x27c   : > { %v1514_v53 = vmul.f32 %v1513_v13, %v1507_v15  ;;  %v1527_v8 = vsel %vm666_vm7, %v1523_v26, %v1524_v60  ;;  %v1470_v16 = vmul.f32 %v1468_v0, %v1461_v23  ;;  %v1533_v6 = vstv %s3990_s7 }
 0x27d   : > { %v1457_v11 = vadd.f32 %v1455_v46, %v1452_v25  ;;  %v1481_v5 = vsel %vm624_vm5, %v1479_v45, %v1480_v52  ;;  %v1500_v28 = vrot.slane %v3917_v18, 3  ;;  %v1529_v7 = vmul.f32 %v1528_v33, %v1522_v42 }
 0x27e   : > { %v1516_v10 = vadd.f32 %v1514_v53, %v1511_v29  ;;  %v1564_v39 = vrot.slane %v3898_v2, 6  ;;  %v1548_v54 = vstv %s4010_s8  ;;  %v1475_v0 = vmul.f32 %v1473_v35, %v1466_v36 }
 0x27f   : > { %v1472_v26 = vadd.f32 %v1470_v16, %v1457_v11  ;;  %v1486_v41 = vsel %vm624_vm5, %v1484_v12, %v1485_v43  ;;  %v1505_v14 = vrot.slane %v3993_v62, 3  ;;  %v1534_v45 = vmul.f32 %v1533_v6, %v1527_v8 }
 0x280   : > { %v1531_v30 = vadd.f32 %v1529_v7, %v1516_v10  ;;  %v1547_v58 = vsel %vm687_vm8, %v1543_v59, %v1544_v44  ;;  %v1490_v20 = vmul.f32 %v1488_v57, %v1481_v5  ;;  %v1553_v27 = vstv %s4027_s15 }
 0x281   : > { %v1477_v35 = vadd.f32 %v1475_v0, %v1472_v26  ;;  %v1501_v12 = vsel %vm645_vm6, %v1499_v56, %v1500_v28  ;;  %v1520_v47 = vrot.slane %v3917_v18, 4  ;;  %v1549_v50 = vmul.f32 %v1548_v54, %v1542_v49 }
 0x282   : > { %v1536_v42 = vadd.f32 %v1534_v45, %v1531_v30  ;;  %v4287_v32 = vrot.slane %v3017_v19, 6  ;;  %v1568_v57 = vstv %s4040_s16  ;;  %v1495_v31 = vmul.f32 %v1493_v34, %v1486_v41 }
 0x283   : > { %v1492_v17 = vadd.f32 %v1490_v20, %v1477_v35  ;;  %v1506_v3 = vsel %vm645_vm6, %v1504_v51, %v1505_v14  ;;  %v1525_v56 = vrot.slane %v3993_v62, 4  ;;  %v1554_v49 = vmul.f32 %v1553_v27, %v1547_v58 }
 0x284   : > { %v1562_v59 = vsel %vm708_vm9, %v4287_v32, %v1559_v55  ;;  %v1551_v9 = vadd.f32 %v1549_v50, %v1536_v42  ;;  %v4288_v24 = vrot.slane %v3153_v21, 6  ;;  %v1510_v15 = vmul.f32 %v1508_v61, %v1501_v12 }
 0x285   : > { %v1573_v4 = vstv %s4052_s20  ;;  %v1497_v23 = vadd.f32 %v1495_v31, %v1492_v17  ;;  %v1521_v34 = vsel %vm666_vm7, %v1519_v38, %v1520_v47  ;;  %v1540_v52 = vrot.slane %v3917_v18, 5 }
 0x286   : > { %v1567_v19 = vsel %vm708_vm9, %v4288_v24, %v1564_v39  ;;  %v1569_v51 = vmul.f32 %v1568_v57, %v1562_v59  ;;  %v1556_v22 = vadd.f32 %v1554_v49, %v1551_v9  ;;  %v1515_v63 = vmul.f32 %v1513_v13, %v1506_v3 }
 0x287   : > { %v1512_v40 = vadd.f32 %v1510_v15, %v1497_v23  ;;  %v1526_v21 = vsel %vm666_vm7, %v1524_v60, %v1525_v56  ;;  %v1545_v46 = vrot.slane %v3993_v62, 5  ;;  %v1574_v61 = vmul.f32 %v1573_v4, %v1567_v19 }
 0x288   : > { %v1571_v25 = vadd.f32 %v1569_v51, %v1556_v22  ;;  %v1530_v36 = vmul.f32 %v1528_v33, %v1521_v34  ;;  %v1541_v38 = vsel %vm687_vm8, %v1539_v37, %v1540_v52  ;;  %v1560_v29 = vrot.slane %v3917_v18, 6 }
 0x289   : > { %v1517_v43 = vadd.f32 %v1515_v63, %v1512_v40  ;;  %v1535_v16 = vmul.f32 %v1533_v6, %v1526_v21  ;;  %v1546_v60 = vsel %vm687_vm8, %v1544_v44, %v1545_v46  ;;  %v1565_v13 = vrot.slane %v3993_v62, 6 }
 0x28a   : > { %v1576_v53 = vadd.f32 %v1574_v61, %v1571_v25  ;;  %v1550_v33 = vmul.f32 %v1548_v54, %v1541_v38  ;;  %v1561_v37 = vsel %vm708_vm9, %v1559_v55, %v1560_v29  ;;  %v1555_v28 = vmul.f32 %v1553_v27, %v1546_v60 }
 0x28b   : > { %v1532_v8 = vadd.f32 %v1530_v36, %v1517_v43  ;;  %v1566_v6 = vsel %vm708_vm9, %v1564_v39, %v1565_v13  ;;  %v1570_v2 = vmul.f32 %v1568_v57, %v1561_v37 }
 0x28c   : > { %v1840_v11 = vmul.f32 -1.442695, %v1576_v53  ;;  %v1575_v10 = vmul.f32 %v1573_v4, %v1566_v6 }
 0x28d   : > { %v1537_v5 = vadd.f32 %v1535_v16, %v1532_v8 }
 0x28e   : > { %1946 = vpow2.f32 %v1840_v11 }
 0x28f   : > { %v1552_v18 = vadd.f32 %v1550_v33, %v1537_v5 }
 0x291   : > { %v1557_v7 = vadd.f32 %v1555_v28, %v1552_v18 }
 0x293   : > { %v1572_v44 = vadd.f32 %v1570_v2, %v1557_v7 }
 0x294   : > { %v1947_v62 = vpop.eup %1946 }
 0x295   : > { %v1577_v26 = vadd.f32 %v1575_v10, %v1572_v44  ;;  %v1584_v54 = vadd.f32 1.0, %v1947_v62 }
 0x297   : > { %v1841_v0 = vmul.f32 -1.442695, %v1577_v26  ;;  %1948 = vrcp.f32 %v1584_v54  ;;  %v1597_v45 = vand.u32 2147483648, %v1584_v54  ;;  %v1595_v39 = vand.u32 2147483647, %v1584_v54 }
 0x298   : > { %vm1591_vm11 = vweird.f32 %v1584_v54 }
 0x299   : > { %1950 = vpow2.f32 %v1841_v0  ;;  %v1598_v20 = vor.u32 1.1754944e-38, %v1597_v45  ;;  %vm1596_vm14 = vcmp.eq.f32.partialorder %v1595_v39, 8.507059e+37 }
 0x29d   : > { %v1949_v48 = vpop.eup %1948 }
 0x29e   : > { %v1587_v41 = vmul.f32 %v1949_v48, %v1584_v54  ;;  %vm1592_vm10 = vweird.f32 %v1949_v48 }
 0x29f   : > { %v1951_v55 = vpop.eup %1950  ;;  %vm1593_vm12 = vmor %vm1591_vm11, %vm1592_vm10 }
 0x2a0   : > { %v1585_v14 = vadd.f32 1.0, %v1951_v55  ;;  %v1588_v30 = vsub.f32 1.0, %v1587_v41 }
 0x2a2   : > { %1952 = vrcp.f32 %v1585_v14  ;;  %v1589_v1 = vmul.f32 %v1949_v48, %v1588_v30  ;;  %v1612_v42 = vand.u32 2147483648, %v1585_v14  ;;  %v1610_v59 = vand.u32 2147483647, %v1585_v14 }
 0x2a3   : > { %vm1606_vm0 = vweird.f32 %v1585_v14 }
 0x2a4   : > { %v1590_v58 = vadd.f32 %v1949_v48, %v1589_v1  ;;  %v1613_v17 = vor.u32 1.1754944e-38, %v1612_v42  ;;  %vm1611_vm2 = vcmp.eq.f32.partialorder %v1610_v59, 8.507059e+37 }
 0x2a6   : > { %v1594_v27 = vsel %vm1593_vm12, %v1949_v48, %v1590_v58 }
 0x2a7   : > { %v1599_v35 = vsel %vm1596_vm14, %v1598_v20, %v1594_v27 }
 0x2a8   : > { %v1953_v12 = vpop.eup %1952  ;;  %1617 = vst.msk [vmem:[%s191_s17] sm:$0xff] %vm1616_vm13, %v1599_v35 }
 0x2a9   : > { %v1602_v47 = vmul.f32 %v1953_v12, %v1585_v14  ;;  %vm1607_vm15 = vweird.f32 %v1953_v12 }
 0x2aa   : > { %vm1608_vm1 = vmor %vm1606_vm0, %vm1607_vm15 }
 0x2ab   : > { %v1603_v50 = vsub.f32 1.0, %v1602_v47 }
 0x2ad   : > { %v1604_v32 = vmul.f32 %v1953_v12, %v1603_v50 }
 0x2af   : > { %v1605_v57 = vadd.f32 %v1953_v12, %v1604_v32 }
 0x2b1   : > { %v1609_v31 = vsel %vm1608_vm1, %v1953_v12, %v1605_v57 }
 0x2b2   : > { %v1614_v3 = vsel %vm1611_vm2, %v1613_v17, %v1609_v31 }
 0x2b3   : > { %1618 = vst.msk [vmem:[%s191_s17 + $0x8] sm:$0xff] %vm1616_vm13, %v1614_v3 }
 0x2b4   : > { %2026 = shalt.err (!%p2023_p13)
}
 0x2b5   : > { %s2110_s2 = smov 128   ;;  %s2111_s3 = smov 8  }
 0x2b6   : > { %1855 = dma.vmem_to_hbm [thread:$0]  (%p2205_p9), %s1633_s1, 256, %s1635_s13, %s1620_s10, %s2110_s2, %s2110_s2, %s2111_s3  }
 0x2b7 PF: > { %s4293_s4 = sld [smem:[#allocation15_spill]] }
 0x2b8   : > { %s4295_s24 = sld [smem:[#allocation20_spill]] }
 0x2bd   : > { %s1649_s6 = sand.u32 1, %s4293_s4  }
 0x2be   : > { %p4296_p0 = scmp.ge.s32.totalorder %s4295_s24, 2  ;;  %s1650_s7 = scalar_lea.sflag [#allocation8], %s1649_s6 }
 0x2c0   : > { %p1866_p3 = pnand %p4296_p0, %p2176_p6 }
 0x2c2   : > { %p1867_p5 = pneg %p1866_p3 }
 0x2c4   : > { %2060 = dma.done.wait (%p1867_p5), %s1650_s7, 256  }
 0x2c5   : > { %2062 = vsyncadd (%p1867_p5), %s1650_s7, 4294967040  ;;  %s19_s14 = sadd.s32 1, %s4295_s24   ;;  %s4297_s9 = sld [smem:[#allocation16_spill]] }
 0x2c6   : > { %p16_p7 = scmp.ge.s32.totalorder %s19_s14, 4   ;;  %s4298_s10 = sld [smem:[#allocation17_spill]] }
 0x2c7   : > { %s4299_s11 = sld [smem:[#allocation24_spill]] }
 0x2c8   : > { %s4300_s12 = sld [smem:[#allocation19_spill]]  ;;  %18 = sbr.rel (!%p16_p7) target bundleno = 11 (0xb), region = 90 }
 0x2c9   : > { %s4301_s13 = sld [smem:[#allocation22_spill]] }
 0x2cd   :  { %1656 = vsyncpa [#allocation7], 1 }
 0x2ce   :  { %1658 = vsyncpa [#allocation7 + $0x1], 1 }
 0x2cf   :  { %1659 = vsyncpa [#allocation8], 1 }
 0x2d0   :  { %1661 = vsyncpa [#allocation8 + $0x1], 1 }
 0x2d1   :  { %1662 = vsyncpa [#allocation9], 1 }
 0x2d2   :  { %1664 = vsyncpa [#allocation9 + $0x1], 1 }

</bundles_post_ra>
